<compile_context>
chip_gen: v7x
topology: tpu7x:2x2x1
jax: 0.10.0
libtpu: 0.0.40
codegen_flags: <defaults>
</compile_context>

<pallas_src>
import functools

import jax
import jax.numpy as jnp
from jax import lax
from jax.experimental import pallas as pl
from jax.experimental.pallas import tpu as pltpu

EPS = 1e-5
LANE = 128          # pad all channel dims to a full lane width


def _pad_to(a, shape):
    return jnp.pad(a, [(0, s - d) for d, s in zip(a.shape, shape)])


def _bottleneck_kernel(x_ref, yy_ref, xx_ref, w1_ref, a1_ref, w2_ref, a2_ref,
                       w3_ref, a3_ref, out_ref, *, H, W):
    # x_ref:  (R, 128)    row-flattened, channel-padded activations (bb whole images)
    # yy/xx:  (R, 1)      in-image row / column coordinate per flattened row (resident)
    # w1_ref: (128, 128)  bn1+conv1+bn2 folded      a1_ref: (1, 128)
    # w2_ref: (1152, 128) conv2 (im2col) + bn3      a2_ref: (1, 128)
    # w3_ref: (128, 128)  conv3 + bn4 folded        a3_ref: (1, 128)
    R, _ = x_ref.shape
    x = x_ref[...]

    # Stage 1: bn1 -> conv1 -> bn2 -> relu  (one lane-dense MXU matmul + bias + relu).
    t = jnp.dot(x, w1_ref[...], preferred_element_type=jnp.float32) + a1_ref[...]
    t = jnp.maximum(t, 0.0)

    # Per-row 0/1 border factors for the off-center 3x3 taps (VPU compares on (R,1) columns).
    yy = yy_ref[...]
    xx = xx_ref[...]
    fy = {-1: (yy >= 1).astype(jnp.float32), 1: (yy <= H - 2).astype(jnp.float32)}
    fx = {-1: (xx >= 1).astype(jnp.float32), 1: (xx <= W - 2).astype(jnp.float32)}

    # Stage 2: 3x3 conv (pad=1) + bn3 + relu as ONE im2col matmul (K = 9*128).
    # Row shifts via XLU sublane rolls; out-of-image taps (incl. image boundaries inside
    # the flattened batch tile) are zeroed with the border factors.
    patches = []
    for dy in (-1, 0, 1):
        for dx in (-1, 0, 1):
            off = dy * W + dx
            if off == 0:
                patches.append(t)
                continue
            p = pltpu.roll(t, shift=(-off) % R, axis=0)   # p[r] = t[(r + off) % R]
            if dy != 0:
                p = p * fy[dy]
            if dx != 0:
                p = p * fx[dx]
            patches.append(p)
    slab = jnp.concatenate(patches, axis=-1)              # (R, 9*128), lane-aligned chunks
    u = jnp.dot(slab, w2_ref[...], preferred_element_type=jnp.float32) + a2_ref[...]
    u = jnp.maximum(u, 0.0)

    # Stage 3: conv3 + bn4, then residual add (shortcut = channel-zero-padded input == x).
    v = jnp.dot(u, w3_ref[...], preferred_element_type=jnp.float32) + a3_ref[...]
    out_ref[...] = v + x


def bottleneck_forward(x_nchw, kp, *, target_rows=512):
    """x_nchw: (B, Cin, H, W) float32. kp: folded + lane-padded kernel params."""
    B, Cin, H, W = x_nchw.shape
    Cout = kp["Cout"]
    assert Cin <= Cout, "shortcut channel-padding assumes Cout >= Cin"
    HW = H * W

    # TODO(synk): the NCHW<->NHWC transposes stay at this boundary only to match the PyTorch
    #             interface; a production model should run NHWC end-to-end instead.
    x = jnp.transpose(x_nchw, (0, 2, 3, 1)).astype(jnp.float32).reshape(B * HW, Cin)
    x = _pad_to(x, (B * HW, LANE))

    # Whole images per grid step: keeps the matmul M dimension at a few hundred rows when
    # possible, while each image stays intact so the roll-based taps never need halos.
    bb = 1
    for d in range(1, B + 1):
        if B % d == 0 and d * HW <= max(target_rows, HW):
            bb = d
    R = bb * HW
    assert R % 8 == 0 or R == B * HW, "tile row count must be sublane-aligned"

    # Resident (R, 1) in-image coordinates used for the conv2 border masks.
    r = jnp.arange(R, dtype=jnp.int32)
    yy = ((r % HW) // W).reshape(R, 1)
    xx = (r % W).reshape(R, 1)

    def resident(arr):
        return pl.BlockSpec(arr.shape, lambda i: (0,) * arr.ndim)

    kernel = functools.partial(_bottleneck_kernel, H=H, W=W)
    out = pl.pallas_call(
        kernel,
        out_shape=jax.ShapeDtypeStruct((B * HW, LANE), jnp.float32),
        grid=(B // bb,),
        in_specs=[
            pl.BlockSpec((R, LANE), lambda i: (i, 0)),
            resident(yy), resident(xx),
            resident(kp["w1"]), resident(kp["a1"]),
            resident(kp["w2"]), resident(kp["a2"]),
            resident(kp["w3"]), resident(kp["a3"]),
        ],
        out_specs=pl.BlockSpec((R, LANE), lambda i: (i, 0)),
        compiler_params=pltpu.CompilerParams(
            dimension_semantics=("parallel",)),
    )(x, yy, xx, kp["w1"], kp["a1"], kp["w2"], kp["a2"], kp["w3"], kp["a3"])

    out = out[:, :Cout].reshape(B, H, W, Cout)
    return jnp.transpose(out, (0, 3, 1, 2))          # back to NCHW


# ------------------------- parameter construction -------------------------

def make_params(key, inplanes, planes):
    """Deterministic synthetic params: raw (PyTorch-layout) + folded/padded kernel params."""
    Cout = planes * 4
    ks = jax.random.split(key, 8)

    def bn_params(k, c):
        k1, k2, k3, k4 = jax.random.split(k, 4)
        gamma = 1.0 + 0.1 * jax.random.normal(k1, (c,), jnp.float32)
        beta = 0.1 * jax.random.normal(k2, (c,), jnp.float32)
        mean = 0.1 * jax.random.normal(k3, (c,), jnp.float32)
        var = jnp.abs(jax.random.normal(k4, (c,), jnp.float32)) + 0.5
        return gamma, beta, mean, var

    raw = {
        "bn1": bn_params(ks[0], inplanes),
        "conv1": 0.2 * jax.random.normal(ks[1], (planes, inplanes, 1, 1), jnp.float32),
        "bn2": bn_params(ks[2], planes),
        "conv2": 0.2 * jax.random.normal(ks[3], (planes, planes, 3, 3), jnp.float32),
        "bn3": bn_params(ks[4], planes),
        "conv3": 0.2 * jax.random.normal(ks[5], (Cout, planes, 1, 1), jnp.float32),
        "bn4": bn_params(ks[6], Cout),
    }

    def fold(bn):
        g, b, m, v = bn
        s = g / jnp.sqrt(v + EPS)
        return s, b - m * s

    s1, b1 = fold(raw["bn1"])
    s2, b2 = fold(raw["bn2"])
    s3, b3 = fold(raw["bn3"])
    s4, b4 = fold(raw["bn4"])

    # conv weights OIHW -> channel-matmul layout
    w1m = jnp.transpose(raw["conv1"][:, :, 0, 0], (1, 0))                        # (Cin, P)
    w2m = jnp.transpose(raw["conv2"], (2, 3, 1, 0)).reshape(9, planes, planes)   # (9, P, P)
    w3m = jnp.transpose(raw["conv3"][:, :, 0, 0], (1, 0))                        # (P, Cout)

    # Fold all four BatchNorms (inference running-stats) into the conv weights / biases:
    #   relu(bn2(conv1(bn1(x)))) == relu(x @ w1f + a1f)
    #   relu(bn3(conv2(t)))      == relu(im2col(t) @ w2f + a2f)
    #   bn4(conv3(u))            == u @ w3f + a3f
    w1f = (s1[:, None] * w1m) * s2[None, :]
    a1f = (b1 @ w1m) * s2 + b2
    w2f = w2m * s3[None, None, :]
    a2f = b3
    w3f = w3m * s4[None, :]
    a3f = b4

    # Zero-pad every channel dimension up to a full 128-lane width.
    kp = {
        "Cout": Cout,
        "w1": _pad_to(w1f, (LANE, LANE)),
        "a1": _pad_to(a1f.reshape(1, -1), (1, LANE)),
        "w2": _pad_to(w2f, (9, LANE, LANE)).reshape(9 * LANE, LANE),
        "a2": _pad_to(a2f.reshape(1, -1), (1, LANE)),
        "w3": _pad_to(w3f, (LANE, LANE)),
        "a3": _pad_to(a3f.reshape(1, -1), (1, LANE)),
    }
    return raw, kp


# ----------------------------- pure-JAX reference -----------------------------

def ref_forward(x, raw):
    def bn(t, p):
        g, b, m, v = (a[None, :, None, None] for a in p)
        return g * (t - m) / jnp.sqrt(v + EPS) + b

    dn = ("NCHW", "OIHW", "NCHW")
    out = bn(x, raw["bn1"])
    out = lax.conv_general_dilated(out, raw["conv1"], (1, 1), "VALID", dimension_numbers=dn)
    out = jax.nn.relu(bn(out, raw["bn2"]))
    out = lax.conv_general_dilated(out, raw["conv2"], (1, 1), ((1, 1), (1, 1)), dimension_numbers=dn)
    out = jax.nn.relu(bn(out, raw["bn3"]))
    out = lax.conv_general_dilated(out, raw["conv3"], (1, 1), "VALID", dimension_numbers=dn)
    out = bn(out, raw["bn4"])
    B, Cout, H, W = out.shape
    Cin = x.shape[1]
    shortcut = jnp.concatenate(
        [x, jnp.zeros((B, Cout - Cin, H, W), jnp.float32)], axis=1)
    return out + shortcut


# ------------------------------------ main ------------------------------------

if __name__ == "__main__":
    # TODO(synk): BatchNorm uses inference (running-stats) semantics folded into the conv
    #             weights; PyTorch train-mode batch statistics are not reproduced. The
    #             se=False / downsample=None / stride=1 defaults are implemented, so the
    #             SEBlock and downsample branches are not exercised.
    B, inplanes, planes, H, W = 2, 8, 8, 8, 8   # residual channels = planes*4 = 32

    key = jax.random.PRNGKey(0)
    k_x, k_p = jax.random.split(key)
    x = jax.random.normal(k_x, (B, inplanes, H, W), jnp.float32)

    raw, kp = make_params(k_p, inplanes, planes)

    out = jax.block_until_ready(bottleneck_forward(x, kp))
    expected = jax.block_until_ready(ref_forward(x, raw))

    assert out.shape == (B, planes * 4, H, W), out.shape
    assert jnp.allclose(out, expected, atol=1e-3, rtol=1e-3), (
        float(jnp.max(jnp.abs(out - expected))))

    print("KERNEL_OK")
</pallas_src>

<mosaic_0001>
module attributes {stable_mosaic.version = 11 : i64} {
  func.func @_bottleneck_kernel(%arg0: i32, %arg1: memref<128x128xf32, #tpu.memory_space<vmem>>, %arg2: memref<128x1xi32, #tpu.memory_space<vmem>>, %arg3: memref<128x1xi32, #tpu.memory_space<vmem>>, %arg4: memref<128x128xf32, #tpu.memory_space<vmem>>, %arg5: memref<1x128xf32, #tpu.memory_space<vmem>>, %arg6: memref<1152x128xf32, #tpu.memory_space<vmem>>, %arg7: memref<1x128xf32, #tpu.memory_space<vmem>>, %arg8: memref<128x128xf32, #tpu.memory_space<vmem>>, %arg9: memref<1x128xf32, #tpu.memory_space<vmem>>, %arg10: memref<128x128xf32, #tpu.memory_space<vmem>>) attributes {dimension_semantics = [#tpu.dimension_semantics<parallel>], iteration_bounds = array<i64: 1>, scalar_prefetch = 0 : i64, scratch_operands = 0 : i64, tpu.core_type = #tpu.core_type<tc>, window_params = [{transform_indices = @transform_0, window_bounds = array<i64: 128, 128>}, {pipeline_mode = #tpu.pipeline_mode<synchronous>, transform_indices = @transform_1, window_bounds = array<i64: 128, 1>}, {pipeline_mode = #tpu.pipeline_mode<synchronous>, transform_indices = @transform_2, window_bounds = array<i64: 128, 1>}, {pipeline_mode = #tpu.pipeline_mode<synchronous>, transform_indices = @transform_3, window_bounds = array<i64: 128, 128>}, {pipeline_mode = #tpu.pipeline_mode<synchronous>, transform_indices = @transform_4, window_bounds = array<i64: 1, 128>}, {pipeline_mode = #tpu.pipeline_mode<synchronous>, transform_indices = @transform_5, window_bounds = array<i64: 1152, 128>}, {pipeline_mode = #tpu.pipeline_mode<synchronous>, transform_indices = @transform_6, window_bounds = array<i64: 1, 128>}, {pipeline_mode = #tpu.pipeline_mode<synchronous>, transform_indices = @transform_7, window_bounds = array<i64: 128, 128>}, {pipeline_mode = #tpu.pipeline_mode<synchronous>, transform_indices = @transform_8, window_bounds = array<i64: 1, 128>}, {transform_indices = @transform_9, window_bounds = array<i64: 128, 128>}]} {
    %c0 = arith.constant 0 : index
    %c0_0 = arith.constant 0 : index
    %0 = vector.load %arg1[%c0, %c0_0] : memref<128x128xf32, #tpu.memory_space<vmem>>, vector<128x128xf32>
    %c0_1 = arith.constant 0 : index
    %c0_2 = arith.constant 0 : index
    %1 = vector.load %arg4[%c0_1, %c0_2] : memref<128x128xf32, #tpu.memory_space<vmem>>, vector<128x128xf32>
    %cst = arith.constant dense<0.000000e+00> : vector<128x128xf32>
    %2 = tpu.matmul %0, %1, %cst {dimension_numbers = #tpu.dot_dimension_numbers<[1], [0], [0], [1], [0, 0, 1, 1], [], []>} : vector<128x128xf32>, vector<128x128xf32>, vector<128x128xf32> -> vector<128x128xf32>
    %c0_3 = arith.constant 0 : index
    %c0_4 = arith.constant 0 : index
    %3 = vector.load %arg5[%c0_3, %c0_4] : memref<1x128xf32, #tpu.memory_space<vmem>>, vector<1x128xf32>
    %4 = vector.broadcast %3 : vector<1x128xf32> to vector<128x128xf32>
    %5 = arith.addf %2, %4 : vector<128x128xf32>
    %cst_5 = arith.constant 0.000000e+00 : f32
    %6 = vector.broadcast %cst_5 : f32 to vector<128x128xf32>
    %7 = arith.maximumf %5, %6 : vector<128x128xf32>
    %c0_6 = arith.constant 0 : index
    %c0_7 = arith.constant 0 : index
    %8 = vector.load %arg2[%c0_6, %c0_7] : memref<128x1xi32, #tpu.memory_space<vmem>>, vector<128x1xi32>
    %c0_8 = arith.constant 0 : index
    %c0_9 = arith.constant 0 : index
    %9 = vector.load %arg3[%c0_8, %c0_9] : memref<128x1xi32, #tpu.memory_space<vmem>>, vector<128x1xi32>
    %c1_i32 = arith.constant 1 : i32
    %10 = vector.broadcast %c1_i32 : i32 to vector<128x1xi32>
    %11 = arith.cmpi sge, %8, %10 : vector<128x1xi32>
    %12 = arith.extui %11 : vector<128x1xi1> to vector<128x1xi32>
    %13 = arith.sitofp %12 : vector<128x1xi32> to vector<128x1xf32>
    %c6_i32 = arith.constant 6 : i32
    %14 = vector.broadcast %c6_i32 : i32 to vector<128x1xi32>
    %15 = arith.cmpi sle, %8, %14 : vector<128x1xi32>
    %16 = arith.extui %15 : vector<128x1xi1> to vector<128x1xi32>
    %17 = arith.sitofp %16 : vector<128x1xi32> to vector<128x1xf32>
    %c1_i32_10 = arith.constant 1 : i32
    %18 = vector.broadcast %c1_i32_10 : i32 to vector<128x1xi32>
    %19 = arith.cmpi sge, %9, %18 : vector<128x1xi32>
    %20 = arith.extui %19 : vector<128x1xi1> to vector<128x1xi32>
    %21 = arith.sitofp %20 : vector<128x1xi32> to vector<128x1xf32>
    %c6_i32_11 = arith.constant 6 : i32
    %22 = vector.broadcast %c6_i32_11 : i32 to vector<128x1xi32>
    %23 = arith.cmpi sle, %9, %22 : vector<128x1xi32>
    %24 = arith.extui %23 : vector<128x1xi1> to vector<128x1xi32>
    %25 = arith.sitofp %24 : vector<128x1xi32> to vector<128x1xf32>
    %c9_i32 = arith.constant 9 : i32
    %26 = tpu.dynamic_rotate %7 by %c9_i32 dim 0 : vector<128x128xf32>, i32 -> vector<128x128xf32>
    %27 = vector.broadcast %13 : vector<128x1xf32> to vector<128x128xf32>
    %28 = arith.mulf %26, %27 : vector<128x128xf32>
    %29 = vector.broadcast %21 : vector<128x1xf32> to vector<128x128xf32>
    %30 = arith.mulf %28, %29 : vector<128x128xf32>
    %c8_i32 = arith.constant 8 : i32
    %31 = tpu.dynamic_rotate %7 by %c8_i32 dim 0 : vector<128x128xf32>, i32 -> vector<128x128xf32>
    %32 = vector.broadcast %13 : vector<128x1xf32> to vector<128x128xf32>
    %33 = arith.mulf %31, %32 : vector<128x128xf32>
    %c7_i32 = arith.constant 7 : i32
    %34 = tpu.dynamic_rotate %7 by %c7_i32 dim 0 : vector<128x128xf32>, i32 -> vector<128x128xf32>
    %35 = vector.broadcast %13 : vector<128x1xf32> to vector<128x128xf32>
    %36 = arith.mulf %34, %35 : vector<128x128xf32>
    %37 = vector.broadcast %25 : vector<128x1xf32> to vector<128x128xf32>
    %38 = arith.mulf %36, %37 : vector<128x128xf32>
    %c1_i32_12 = arith.constant 1 : i32
    %39 = tpu.dynamic_rotate %7 by %c1_i32_12 dim 0 : vector<128x128xf32>, i32 -> vector<128x128xf32>
    %40 = vector.broadcast %21 : vector<128x1xf32> to vector<128x128xf32>
    %41 = arith.mulf %39, %40 : vector<128x128xf32>
    %c127_i32 = arith.constant 127 : i32
    %42 = tpu.dynamic_rotate %7 by %c127_i32 dim 0 : vector<128x128xf32>, i32 -> vector<128x128xf32>
    %43 = vector.broadcast %25 : vector<128x1xf32> to vector<128x128xf32>
    %44 = arith.mulf %42, %43 : vector<128x128xf32>
    %c121_i32 = arith.constant 121 : i32
    %45 = tpu.dynamic_rotate %7 by %c121_i32 dim 0 : vector<128x128xf32>, i32 -> vector<128x128xf32>
    %46 = vector.broadcast %17 : vector<128x1xf32> to vector<128x128xf32>
    %47 = arith.mulf %45, %46 : vector<128x128xf32>
    %48 = vector.broadcast %21 : vector<128x1xf32> to vector<128x128xf32>
    %49 = arith.mulf %47, %48 : vector<128x128xf32>
    %c120_i32 = arith.constant 120 : i32
    %50 = tpu.dynamic_rotate %7 by %c120_i32 dim 0 : vector<128x128xf32>, i32 -> vector<128x128xf32>
    %51 = vector.broadcast %17 : vector<128x1xf32> to vector<128x128xf32>
    %52 = arith.mulf %50, %51 : vector<128x128xf32>
    %c119_i32 = arith.constant 119 : i32
    %53 = tpu.dynamic_rotate %7 by %c119_i32 dim 0 : vector<128x128xf32>, i32 -> vector<128x128xf32>
    %54 = vector.broadcast %17 : vector<128x1xf32> to vector<128x128xf32>
    %55 = arith.mulf %53, %54 : vector<128x128xf32>
    %56 = vector.broadcast %25 : vector<128x1xf32> to vector<128x128xf32>
    %57 = arith.mulf %55, %56 : vector<128x128xf32>
    %58 = tpu.concatenate %30, %33, %38, %41, %7, %44, %49, %52, %57 in 1 : vector<128x128xf32>, vector<128x128xf32>, vector<128x128xf32>, vector<128x128xf32>, vector<128x128xf32>, vector<128x128xf32>, vector<128x128xf32>, vector<128x128xf32>, vector<128x128xf32> -> vector<128x1152xf32>
    %c0_13 = arith.constant 0 : index
    %c0_14 = arith.constant 0 : index
    %59 = vector.load %arg6[%c0_13, %c0_14] : memref<1152x128xf32, #tpu.memory_space<vmem>>, vector<1152x128xf32>
    %cst_15 = arith.constant dense<0.000000e+00> : vector<128x128xf32>
    %60 = tpu.matmul %58, %59, %cst_15 {dimension_numbers = #tpu.dot_dimension_numbers<[1], [0], [0], [1], [0, 0, 1, 1], [], []>} : vector<128x1152xf32>, vector<1152x128xf32>, vector<128x128xf32> -> vector<128x128xf32>
    %c0_16 = arith.constant 0 : index
    %c0_17 = arith.constant 0 : index
    %61 = vector.load %arg7[%c0_16, %c0_17] : memref<1x128xf32, #tpu.memory_space<vmem>>, vector<1x128xf32>
    %62 = vector.broadcast %61 : vector<1x128xf32> to vector<128x128xf32>
    %63 = arith.addf %60, %62 : vector<128x128xf32>
    %cst_18 = arith.constant 0.000000e+00 : f32
    %64 = vector.broadcast %cst_18 : f32 to vector<128x128xf32>
    %65 = arith.maximumf %63, %64 : vector<128x128xf32>
    %c0_19 = arith.constant 0 : index
    %c0_20 = arith.constant 0 : index
    %66 = vector.load %arg8[%c0_19, %c0_20] : memref<128x128xf32, #tpu.memory_space<vmem>>, vector<128x128xf32>
    %cst_21 = arith.constant dense<0.000000e+00> : vector<128x128xf32>
    %67 = tpu.matmul %65, %66, %cst_21 {dimension_numbers = #tpu.dot_dimension_numbers<[1], [0], [0], [1], [0, 0, 1, 1], [], []>} : vector<128x128xf32>, vector<128x128xf32>, vector<128x128xf32> -> vector<128x128xf32>
    %c0_22 = arith.constant 0 : index
    %c0_23 = arith.constant 0 : index
    %68 = vector.load %arg9[%c0_22, %c0_23] : memref<1x128xf32, #tpu.memory_space<vmem>>, vector<1x128xf32>
    %69 = vector.broadcast %68 : vector<1x128xf32> to vector<128x128xf32>
    %70 = arith.addf %67, %69 : vector<128x128xf32>
    %71 = arith.addf %70, %0 : vector<128x128xf32>
    %c0_24 = arith.constant 0 : index
    %c0_25 = arith.constant 0 : index
    %72 = vector.load %arg10[%c0_24, %c0_25] : memref<128x128xf32, #tpu.memory_space<vmem>>, vector<128x128xf32>
    tpu.vector_store %arg10[%c0_24, %c0_25], %71 {strides = array<i32>} : memref<128x128xf32, #tpu.memory_space<vmem>>, vector<128x128xf32>,
    return
  }
  func.func @transform_0(%arg0: i32) -> (i32, i32) {
    %c0_i32 = arith.constant 0 : i32
    %c0_i32_0 = arith.constant 0 : i32
    return %arg0, %c0_i32 : i32, i32
  }
  func.func @transform_1(%arg0: i32) -> (i32, i32) {
    %c0_i32 = arith.constant 0 : i32
    %c0_i32_0 = arith.constant 0 : i32
    %c0_i32_1 = arith.constant 0 : i32
    return %c0_i32, %c0_i32_0 : i32, i32
  }
  func.func @transform_2(%arg0: i32) -> (i32, i32) {
    %c0_i32 = arith.constant 0 : i32
    %c0_i32_0 = arith.constant 0 : i32
    %c0_i32_1 = arith.constant 0 : i32
    return %c0_i32, %c0_i32_0 : i32, i32
  }
  func.func @transform_3(%arg0: i32) -> (i32, i32) {
    %c0_i32 = arith.constant 0 : i32
    %c0_i32_0 = arith.constant 0 : i32
    %c0_i32_1 = arith.constant 0 : i32
    return %c0_i32, %c0_i32_0 : i32, i32
  }
  func.func @transform_4(%arg0: i32) -> (i32, i32) {
    %c0_i32 = arith.constant 0 : i32
    %c0_i32_0 = arith.constant 0 : i32
    %c0_i32_1 = arith.constant 0 : i32
    return %c0_i32, %c0_i32_0 : i32, i32
  }
  func.func @transform_5(%arg0: i32) -> (i32, i32) {
    %c0_i32 = arith.constant 0 : i32
    %c0_i32_0 = arith.constant 0 : i32
    %c0_i32_1 = arith.constant 0 : i32
    return %c0_i32, %c0_i32_0 : i32, i32
  }
  func.func @transform_6(%arg0: i32) -> (i32, i32) {
    %c0_i32 = arith.constant 0 : i32
    %c0_i32_0 = arith.constant 0 : i32
    %c0_i32_1 = arith.constant 0 : i32
    return %c0_i32, %c0_i32_0 : i32, i32
  }
  func.func @transform_7(%arg0: i32) -> (i32, i32) {
    %c0_i32 = arith.constant 0 : i32
    %c0_i32_0 = arith.constant 0 : i32
    %c0_i32_1 = arith.constant 0 : i32
    return %c0_i32, %c0_i32_0 : i32, i32
  }
  func.func @transform_8(%arg0: i32) -> (i32, i32) {
    %c0_i32 = arith.constant 0 : i32
    %c0_i32_0 = arith.constant 0 : i32
    %c0_i32_1 = arith.constant 0 : i32
    return %c0_i32, %c0_i32_0 : i32, i32
  }
  func.func @transform_9(%arg0: i32) -> (i32, i32) {
    %c0_i32 = arith.constant 0 : i32
    %c0_i32_0 = arith.constant 0 : i32
    return %arg0, %c0_i32 : i32, i32
  }
}

</mosaic_0001>

<bundles_post_ra>
// kernel: tpu_custom_call.1
= control target key start
LH: loop header
LB: loop body
LE: loop exit
PB: predicated region body
PF: predicated region fallthrough
CT: control target
= control target key end

     0   :  { %14 = vsyncpa [#allocation3], 0  ;;  %s4978_s0 = inlined_call_operand.vmem [shape: f32[128,128], index: 0, kind: input, shape index: {}]   ;;  %s4979_s1 = inlined_call_operand.vmem [shape: s32[128,1], index: 1, kind: input, shape index: {}]   ;;  %s4980_s2 = inlined_call_operand.vmem [shape: s32[128,1], index: 2, kind: input, shape index: {}]   ;;  %s4981_s3 = inlined_call_operand.vmem [shape: f32[128,128], index: 3, kind: input, shape index: {}]   ;;  %s4982_s4 = inlined_call_operand.vmem [shape: f32[1,128], index: 4, kind: input, shape index: {}]   ;;  %s4983_s5 = inlined_call_operand.hbm [shape: f32[1152,128], index: 5, kind: input, shape index: {}]   ;;  %s4984_s6 = inlined_call_operand.vmem [shape: f32[1,128], index: 6, kind: input, shape index: {}]   ;;  %s4985_s7 = inlined_call_operand.hbm [shape: f32[128,128], index: 7, kind: input, shape index: {}]   ;;  %s4986_s8 = inlined_call_operand.vmem [shape: f32[1,128], index: 8, kind: input, shape index: {}]   ;;  %s4987_s9 = inlined_call_operand.hbm [shape: f32[128,128], index: 9, kind: output, shape index: {}]  }
   0x1   :  { %15 = vsyncpa [#allocation6], 0 }
   0x2   :  { %16 = vsyncpa [#allocation4], 0  ;;  %s3263_s30 = smov [#allocation2]   ;;  %s3191_s13 = scalar_lea.hbm %s4983_s5, 18432 }
   0x3   :  { %s32_s10 = sshll.u32 %s3263_s30, 4  ;;  %p3192_p0 = scmp.ne.s32.totalorder %s4983_s5, %s3191_s13  ;;  %s33_s10 = int_to_ptr.vmem [resolvable:$true] %s32_s10 }
   0x4   :  { %p3195_p1 = scmp.lt.u32.totalorder %s3191_s13, %s4983_s5 }
   0x6   :  { %p3197_p2 = pnand %p3195_p1, %p3192_p0 }
   0x8   :  { %3200 = shalt.err (!%p3197_p2)
}
   0x9   :  { %s3201_s18 = scalar_lea.vmem %s33_s10, 18432  ;;  %p3206_p4 = scmp.lt.s32.totalorder %s33_s10, %s33_s10 }
   0xa   :  { %p3202_p3 = scmp.ne.s32.totalorder %s33_s10, %s3201_s18  ;;  %p3207_p5 = scmp.lt.s32.totalorder %s3201_s18, %s3201_s18 }
   0xc   :  { %p3208_p6 = por %p3207_p5, %p3206_p4 }
   0xe   :  { %p3209_p7 = pnand %p3208_p6, %p3202_p3 }
  0x10   :  { %3212 = shalt.err (!%p3209_p7)
}
  0x11   :  { %s3264_s19 = smov 128   ;;  %s3265_s20 = smov 8  }
  0x12   :  { %38 = dma.hbm_to_vmem [thread:$0]  %s4983_s5, 18432, %s33_s10, [#allocation3], %s3264_s19, %s3264_s19, %s3265_s20  }
  0x13   :  { %s3266_s23 = smov [#allocation5]   ;;  %s3213_s27 = scalar_lea.hbm %s4985_s7, 2048 }
  0x14   :  { %s46_s24 = sshll.u32 %s3266_s23, 4  ;;  %p3214_p8 = scmp.ne.s32.totalorder %s4985_s7, %s3213_s27  ;;  %s47_s24 = int_to_ptr.vmem [resolvable:$true] %s46_s24 }
  0x15   :  { %p3217_p9 = scmp.lt.u32.totalorder %s3213_s27, %s4985_s7 }
  0x17   :  { %p3219_p10 = pnand %p3217_p9, %p3214_p8 }
  0x19   :  { %3222 = shalt.err (!%p3219_p10)
}
  0x1a   :  { %s3223_s12 = scalar_lea.vmem %s47_s24, 2048  ;;  %p3228_p12 = scmp.lt.s32.totalorder %s47_s24, %s47_s24 }
  0x1b   :  { %p3224_p11 = scmp.ne.s32.totalorder %s47_s24, %s3223_s12  ;;  %p3229_p13 = scmp.lt.s32.totalorder %s3223_s12, %s3223_s12 }
  0x1d   :  { %p3230_p0 = por %p3229_p13, %p3228_p12 }
  0x1f   :  { %p3231_p1 = pnand %p3230_p0, %p3224_p11 }
  0x21   :  { %3234 = shalt.err (!%p3231_p1)
}
  0x22   :  { %52 = dma.hbm_to_vmem [thread:$0]  %s4985_s7, 2048, %s47_s24, [#allocation6], %s3264_s19, %s3264_s19, %s3265_s20  }
  0x23   :  { %3257 = dma.done.wait [#allocation3], 18432  }
  0x24   :  { %3258 = vsyncadd [#allocation3], 4294948864 }
  0x25   :  { %3259 = dma.done.wait [#allocation6], 2048  }
  0x26   :  { %3260 = vsyncadd [#allocation6], 4294965248  ;;  %v3267_v0 = vmov 0   ;;  %v77_v1 = vld [vmem:[%s4981_s3] sm:$0xff]  ;;  %v78_v2 = vld [vmem:[%s4981_s3 + $0x8] sm:$0xff]  ;;  %v3268_v15 = vmov 0.0  }
  0x27   :  { %3084 = vset.pattern.permute.xlu1 %v3267_v0  ;;  %3073 = vset.pattern.permute.xlu0 %v3267_v0  ;;  %v79_v3 = vld [vmem:[%s4981_s3 + $0x10] sm:$0xff]  ;;  %v2826_v4 = vpack.c.bf16 %v78_v2, %v77_v1  ;;  %v80_v5 = vld [vmem:[%s4981_s3 + $0x18] sm:$0xff]  ;;  %v81_v7 = vld [vmem:[%s4981_s3 + $0x20] sm:$0xff]  ;;  %s3269_s14 = smov [#allocation7]  }
  0x28   :  { %v2830_v6 = vpack.c.bf16 %v80_v5, %v79_v3  ;;  %v82_v8 = vld [vmem:[%s4981_s3 + $0x28] sm:$0xff]  ;;  %v61_v10 = vld [vmem:[%s4978_s0] sm:$0xff]  ;;  %v83_v11 = vld [vmem:[%s4981_s3 + $0x30] sm:$0xff]  ;;  %s2162_s15 = sshll.u32 %s3269_s14, 4  ;;  %s2163_s15 = int_to_ptr.vmem [resolvable:$true] %s2162_s15 }
  0x29   :  { %2827 = vmatprep.subr.bf16.mxu0 %v2826_v4  ;;  %v2834_v9 = vpack.c.bf16 %v82_v8, %v81_v7  ;;  %v84_v12 = vld [vmem:[%s4981_s3 + $0x38] sm:$0xff]  ;;  %2690 = vmatprep.mubr.f32.mxu0 %v61_v10  ;;  %v3380_v13 = vld [vmem:[%s4979_s1 + $0x10] sm:$0xff]  ;;  %v3406_v21 = vld [vmem:[%s4979_s1 + $0x28] sm:$0xff]  ;;  %p3240_p3 = scmp.lt.s32.totalorder %s2163_s15, %s2163_s15 }
  0x2a   :  { %2829 = vmatpush3.bf16.msra.mxu0 %v2826_v4  ;;  %v3385_v14 = vld [vmem:[%s4980_s2 + $0x10] sm:$0xff]  ;;  %vm295_vm0 = vcmp.ge.s32.totalorder %v3380_v13, 1  ;;  %v3393_v17 = vld [vmem:[%s4979_s1 + $0x18] sm:$0xff]  ;;  %v2838_v19 = vpack.c.bf16 %v84_v12, %v83_v11  ;;  %v3411_v22 = vld [vmem:[%s4980_s2 + $0x28] sm:$0xff]  ;;  %vm298_vm4 = vcmp.ge.s32.totalorder %v3406_v21, 1 }
  0x2b   :  { %2831 = vmatprep.subr.bf16.mxu0 %v2830_v6  ;;  %v2178_v16 = vsel %vm295_vm0, 1.0, %v3268_v15  ;;  %vm391_vm1 = vcmp.ge.s32.totalorder %v3385_v14, 1  ;;  %v3398_v18 = vld [vmem:[%s4980_s2 + $0x18] sm:$0xff]  ;;  %vm296_vm2 = vcmp.ge.s32.totalorder %v3393_v17, 1  ;;  %v85_v23 = vld [vmem:[%s4981_s3 + $0x40] sm:$0xff]  ;;  %v86_v24 = vld [vmem:[%s4981_s3 + $0x48] sm:$0xff] }
  0x2c   :  { %v2210_v20 = vsel %vm391_vm1, 1.0, %v3268_v15  ;;  %vm392_vm3 = vcmp.ge.s32.totalorder %v3398_v18, 1  ;;  %v2179_v26 = vsel %vm296_vm2, 1.0, %v3268_v15  ;;  %vm394_vm5 = vcmp.ge.s32.totalorder %v3411_v22, 1  ;;  %v3426_v28 = vld [vmem:[%s4979_s1 + $0x38] sm:$0xff]  ;;  %v87_v32 = vld [vmem:[%s4981_s3 + $0x50] sm:$0xff] }
  0x2d   :  { %v3085_v25 = vpack.i.bf16 %v2210_v20, %v2178_v16  ;;  %v2211_v27 = vsel %vm392_vm3, 1.0, %v3268_v15  ;;  %v3431_v29 = vld [vmem:[%s4980_s2 + $0x38] sm:$0xff]  ;;  %v2842_v31 = vpack.c.bf16 %v86_v24, %v85_v23  ;;  %v2181_v34 = vsel %vm298_vm4, 1.0, %v3268_v15  ;;  %v278_v36 = vld [vmem:[%s4980_s2 + $0x8] sm:$0xff]  ;;  %v3449_v37 = vld [vmem:[%s4980_s2 + $0x40] sm:$0xff] }
  0x2e   :  { %2833 = vmatpush3.bf16.msra.mxu0 %v2830_v6  ;;  %v3090_v30 = vpack.i.bf16 %v2211_v27, %v2179_v26  ;;  %v88_v33 = vld [vmem:[%s4981_s3 + $0x58] sm:$0xff]  ;;  %v2213_v35 = vsel %vm394_vm5, 1.0, %v3268_v15  ;;  %vm300_vm6 = vcmp.ge.s32.totalorder %v3426_v28, 1  ;;  %vm396_vm7 = vcmp.ge.s32.totalorder %v3431_v29, 1  ;;  %v3454_v38 = vld [vmem:[%s4979_s1] sm:$0xff]  ;;  %v90_v42 = vld [vmem:[%s4981_s3 + $0x68] sm:$0xff] }
  0x2f   :  { %2835 = vmatprep.subr.bf16.mxu0 %v2834_v9  ;;  %3086 = vperm.xlu1 %3084, %v3085_v25   ;;  %v3459_v39 = vld [vmem:[%s4980_s2] sm:$0xff]  ;;  %v2846_v40 = vpack.c.bf16 %v88_v33, %v87_v32  ;;  %v3100_v43 = vpack.i.bf16 %v2213_v35, %v2181_v34  ;;  %vm293_vm8 = vcmp.ge.s32.totalorder %v3454_v38, 1  ;;  %v3471_v44 = vld [vmem:[%s4979_s1 + $0x8] sm:$0xff]  ;;  %v2183_v45 = vsel %vm300_vm6, 1.0, %v3268_v15  ;;  %v3487_v51 = vld [vmem:[%s4979_s1 + $0x50] sm:$0xff] }
  0x30   :  { %v89_v41 = vld [vmem:[%s4981_s3 + $0x60] sm:$0xff]  ;;  %v2215_v46 = vsel %vm396_vm7, 1.0, %v3268_v15  ;;  %v2176_v47 = vsel %vm293_vm8, 1.0, %v3268_v15  ;;  %vm389_vm9 = vcmp.ge.s32.totalorder %v3459_v39, 1  ;;  %vm397_vm10 = vcmp.ge.s32.totalorder %v3449_v37, 1  ;;  %v91_v54 = vld [vmem:[%s4981_s3 + $0x70] sm:$0xff] }
  0x31   :  { %vm438_vm11 = vcmp.le.s32.totalorder %v278_v36, 6  ;;  %v2208_v48 = vsel %vm389_vm9, 1.0, %v3268_v15  ;;  %v3482_v49 = vld [vmem:[%s4979_s1 + $0x20] sm:$0xff]  ;;  %v2850_v50 = vpack.c.bf16 %v90_v42, %v89_v41  ;;  %vm294_vm12 = vcmp.ge.s32.totalorder %v3471_v44, 1  ;;  %v92_v57 = vld [vmem:[%s4981_s3 + $0x78] sm:$0xff]  ;;  %v3513_v61 = vld [vmem:[%s4979_s1 + $0x30] sm:$0xff] }
  0x32   :  { %2837 = vmatpush3.bf16.msra.mxu0 %v2834_v9  ;;  %v3074_v52 = vpack.i.bf16 %v2208_v48, %v2176_v47  ;;  %v3493_v53 = vld [vmem:[%s4980_s2 + $0x20] sm:$0xff]  ;;  %vm439_vm13 = vcmp.le.s32.totalorder %v3385_v14, 6  ;;  %v3110_v55 = vpack.i.bf16 %v2215_v46, %v2183_v45  ;;  %v2177_v56 = vsel %vm294_vm12, 1.0, %v3268_v15  ;;  %v3521_v0 = vld [vmem:[%s4979_s1 + $0x58] sm:$0xff]  ;;  %v283_v5 = vld [vmem:[%s4980_s2 + $0x30] sm:$0xff] }
  0x33   :  { %2839 = vmatprep.subr.bf16.mxu0 %v2838_v19  ;;  %3091 = vperm.xlu1 %3084, %v3090_v30   ;;  %vm390_vm14 = vcmp.ge.s32.totalorder %v278_v36, 1  ;;  %v2216_v58 = vsel %vm397_vm10, 1.0, %v3268_v15  ;;  %v2225_v59 = vsel %vm438_vm11, 1.0, %v3268_v15  ;;  %vm297_vm15 = vcmp.ge.s32.totalorder %v3482_v49, 1  ;;  %v3526_v1 = vld [vmem:[%s4980_s2 + $0x58] sm:$0xff]  ;;  %v3536_v6 = vld [vmem:[%s4979_s1 + $0x40] sm:$0xff] }
  0x34   :  { %3075 = vperm.xlu0 %3073, %v3074_v52   ;;  %v2209_v60 = vsel %vm390_vm14, 1.0, %v3268_v15  ;;  %vm303_vm0 = vcmp.ge.s32.totalorder %v3487_v51, 1  ;;  %v2180_v63 = vsel %vm297_vm15, 1.0, %v3268_v15  ;;  %vm393_vm1 = vcmp.ge.s32.totalorder %v3493_v53, 1  ;;  %v3550_v12 = vld [vmem:[%s4980_s2 + $0x60] sm:$0xff]  ;;  %v3556_v16 = vld [vmem:[%s4979_s1 + $0x48] sm:$0xff] }
  0x35   :  { %v3079_v62 = vpack.i.bf16 %v2209_v60, %v2177_v56  ;;  %v2212_v2 = vsel %vm393_vm1, 1.0, %v3268_v15  ;;  %v2854_v3 = vpack.c.bf16 %v92_v57, %v91_v54  ;;  %v3120_v4 = vpack.i.bf16 %v2225_v59, %v2216_v58  ;;  %v3565_v24 = vld [vmem:[%s4980_s2 + $0x48] sm:$0xff]  ;;  %v3574_v27 = vld [vmem:[%s4979_s1 + $0x70] sm:$0xff]  ;;  %v3602_v41 = vld [vmem:[%s4980_s2 + $0x78] sm:$0xff] }
  0x36   :  { %2841 = vmatpush3.bf16.msra.mxu0 %v2838_v19  ;;  %vm299_vm2 = vcmp.ge.s32.totalorder %v3513_v61, 1  ;;  %v2186_v7 = vsel %vm303_vm0, 1.0, %v3268_v15  ;;  %v2226_v8 = vsel %vm439_vm13, 1.0, %v3268_v15  ;;  %v3095_v9 = vpack.i.bf16 %v2212_v2, %v2180_v63  ;;  %v63_v32 = vld [vmem:[%s4978_s0 + $0x10] sm:$0xff]  ;;  %v64_v42 = vld [vmem:[%s4978_s0 + $0x18] sm:$0xff]  ;;  %v3612_v45 = vld [vmem:[%s4979_s1 + $0x60] sm:$0xff] }
  0x37   :  { %2843 = vmatprep.subr.bf16.mxu0 %v2842_v31  ;;  %3101 = vperm.xlu1 %3084, %v3100_v43   ;;  %vm395_vm3 = vcmp.ge.s32.totalorder %v283_v5, 1  ;;  %vm304_vm4 = vcmp.ge.s32.totalorder %v3521_v0, 1  ;;  %vm400_vm5 = vcmp.ge.s32.totalorder %v3526_v1, 1  ;;  %v2182_v10 = vsel %vm299_vm2, 1.0, %v3268_v15  ;;  %v65_v46 = vld [vmem:[%s4978_s0 + $0x20] sm:$0xff]  ;;  %v66_v54 = vld [vmem:[%s4978_s0 + $0x28] sm:$0xff] }
  0x38   :  { %3080 = vperm.xlu0 %3073, %v3079_v62   ;;  %v2214_v11 = vsel %vm395_vm3, 1.0, %v3268_v15  ;;  %vm437_vm6 = vcmp.le.s32.totalorder %v3459_v39, 6  ;;  %vm301_vm7 = vcmp.ge.s32.totalorder %v3536_v6, 1  ;;  %v3130_v14 = vpack.i.bf16 %v2186_v7, %v2226_v8  ;;  %v3632_v56 = vld [vmem:[%s4979_s1 + $0x68] sm:$0xff]  ;;  %v67_v57 = vld [vmem:[%s4978_s0 + $0x30] sm:$0xff]  ;;  %v68_v2 = vld [vmem:[%s4978_s0 + $0x38] sm:$0xff] }
  0x39   :  { %v2187_v19 = vsel %vm304_vm4, 1.0, %v3268_v15  ;;  %v2219_v20 = vsel %vm400_vm5, 1.0, %v3268_v15  ;;  %v3105_v23 = vpack.i.bf16 %v2214_v11, %v2182_v10  ;;  %vm401_vm8 = vcmp.ge.s32.totalorder %v3550_v12, 1  ;;  %v290_v59 = vld [vmem:[%s4980_s2 + $0x68] sm:$0xff]  ;;  %v69_v7 = vld [vmem:[%s4978_s0 + $0x40] sm:$0xff]  ;;  %v71_v11 = vld [vmem:[%s4978_s0 + $0x50] sm:$0xff] }
  0x3a   :  { %2845 = vmatpush3.bf16.msra.mxu0 %v2842_v31  ;;  %vm442_vm9 = vcmp.le.s32.totalorder %v3411_v22, 6  ;;  %v2184_v25 = vsel %vm301_vm7, 1.0, %v3268_v15  ;;  %v2224_v26 = vsel %vm437_vm6, 1.0, %v3268_v15  ;;  %vm398_vm10 = vcmp.ge.s32.totalorder %v3565_v24, 1  ;;  %v62_v22 = vld [vmem:[%s4978_s0 + $0x8] sm:$0xff]  ;;  %v3584_v31 = vld [vmem:[%s4980_s2 + $0x50] sm:$0xff] }
  0x3b   :  { %2847 = vmatprep.subr.bf16.mxu0 %v2846_v40  ;;  %3111 = vperm.xlu1 %3084, %v3110_v55   ;;  %vm302_vm11 = vcmp.ge.s32.totalorder %v3556_v16, 1  ;;  %v3140_v30 = vpack.i.bf16 %v2219_v20, %v2187_v19  ;;  %v2220_v33 = vsel %vm401_vm8, 1.0, %v3268_v15  ;;  %v2229_v34 = vsel %vm442_vm9, 1.0, %v3268_v15  ;;  %v70_v10 = vld [vmem:[%s4978_s0 + $0x48] sm:$0xff] }
  0x3c   :  { %3096 = vperm.xlu0 %3073, %v3095_v9   ;;  %v3115_v35 = vpack.i.bf16 %v2184_v25, %v2224_v26  ;;  %vm307_vm12 = vcmp.ge.s32.totalorder %v3574_v27, 1  ;;  %vm443_vm13 = vcmp.le.s32.totalorder %v283_v5, 6  ;;  %v2185_v36 = vsel %vm302_vm11, 1.0, %v3268_v15 }
  0x3d   :  { %v2217_v39 = vsel %vm398_vm10, 1.0, %v3268_v15  ;;  %vm399_vm14 = vcmp.ge.s32.totalorder %v3584_v31, 1  ;;  %vm440_vm15 = vcmp.le.s32.totalorder %v3398_v18, 6  ;;  %v3150_v43 = vpack.i.bf16 %v2229_v34, %v2220_v33 }
  0x3e   :  { %2849 = vmatpush3.bf16.msra.mxu0 %v2846_v40  ;;  %v3597_v40 = vld [vmem:[%s4979_s1 + $0x78] sm:$0xff]  ;;  %v2190_v47 = vsel %vm307_vm12, 1.0, %v3268_v15  ;;  %v2230_v18 = vsel %vm443_vm13, 1.0, %v3268_v15  ;;  %v3125_v48 = vpack.i.bf16 %v2217_v39, %v2185_v36  ;;  %vm404_vm1 = vcmp.ge.s32.totalorder %v3602_v41, 1 }
  0x3f   :  { %2851 = vmatprep.subr.bf16.mxu0 %v2850_v50  ;;  %3121 = vperm.xlu1 %3084, %v3120_v4   ;;  %vm308_vm0 = vcmp.ge.s32.totalorder %v3597_v40, 1  ;;  %v2227_v52 = vsel %vm440_vm15, 1.0, %v3268_v15  ;;  %vm305_vm2 = vcmp.ge.s32.totalorder %v3612_v45, 1  ;;  %vm441_vm3 = vcmp.le.s32.totalorder %v3493_v53, 6  ;;  %v291_v4 = vld [vmem:[%s4980_s2 + $0x70] sm:$0xff]  ;;  %s3235_s2 = scalar_lea.vmem %s2163_s15, 2048 }
  0x40   :  { %3106 = vperm.xlu0 %3073, %v3105_v23   ;;  %vm343_vm4 = vcmp.le.s32.totalorder %v3380_v13, 6  ;;  %v3160_v55 = vpack.i.bf16 %v2190_v47, %v2230_v18  ;;  %v2191_v53 = vsel %vm308_vm0, 1.0, %v3268_v15  ;;  %v2223_v13 = vsel %vm404_vm1, 1.0, %v3268_v15  ;;  %v72_v23 = vld [vmem:[%s4978_s0 + $0x58] sm:$0xff]  ;;  %v1114_v47 = vld [vmem:[#allocation2 + $0x188] sm:$0xff]  ;;  %v1097_v18 = vld [vmem:[#allocation2 + $0x100] sm:$0xff]  ;;  %p3236_p2 = scmp.ne.s32.totalorder %s2163_s15, %s3235_s2  ;;  %p3241_p4 = scmp.lt.s32.totalorder %s3235_s2, %s3235_s2 }
  0x41   :  { %v2188_v60 = vsel %vm305_vm2, 1.0, %v3268_v15  ;;  %v2228_v62 = vsel %vm441_vm3, 1.0, %v3268_v15  ;;  %v3645_v63 = vsel %vm343_vm4, 1.0, %v3268_v15  ;;  %vm402_vm5 = vcmp.ge.s32.totalorder %v290_v59, 1 }
  0x42   :  { %2853 = vmatpush3.bf16.msra.mxu0 %v2850_v50  ;;  %v2218_v50 = vsel %vm399_vm14, 1.0, %v3268_v15  ;;  %vm306_vm6 = vcmp.ge.s32.totalorder %v3632_v56, 1  ;;  %vm351_vm7 = vcmp.le.s32.totalorder %v3487_v51, 6  ;;  %v3145_v51 = vpack.i.bf16 %v2188_v60, %v2228_v62  ;;  %v1068_v60 = vld [vmem:[#allocation2 + $0x18] sm:$0xff]  ;;  %p3242_p5 = por %p3241_p4, %p3240_p3 }
  0x43   :  { %2855 = vmatprep.subr.bf16.mxu0 %v2854_v3  ;;  %3131 = vperm.xlu1 %3084, %v3130_v14   ;;  %v3135_v58 = vpack.i.bf16 %v2227_v52, %v2218_v50  ;;  %v3656_v5 = vsel %vm351_vm7, 1.0, %v3268_v15  ;;  %vm446_vm8 = vcmp.le.s32.totalorder %v3565_v24, 6  ;;  %v2189_v8 = vsel %vm306_vm6, 1.0, %v3268_v15  ;;  %v73_v24 = vld [vmem:[%s4978_s0 + $0x60] sm:$0xff]  ;;  %v1066_v52 = vld [vmem:[#allocation2 + $0x8] sm:$0xff]  ;;  %v1100_v62 = vld [vmem:[#allocation2 + $0x118] sm:$0xff] }
  0x44   :  { %3116 = vperm.xlu0 %3073, %v3115_v35   ;;  %v2221_v9 = vsel %vm402_vm5, 1.0, %v3268_v15  ;;  %vm403_vm9 = vcmp.ge.s32.totalorder %v291_v4, 1  ;;  %vm444_vm10 = vcmp.le.s32.totalorder %v3431_v29, 6  ;;  %v2233_v14 = vsel %vm446_vm8, 1.0, %v3268_v15  ;;  %p3243_p6 = pnand %p3242_p5, %p3236_p2 }
  0x45   :  { %v3155_v19 = vpack.i.bf16 %v2221_v9, %v2189_v8  ;;  %vm448_vm11 = vcmp.le.s32.totalorder %v3526_v1, 6  ;;  %v2222_v20 = vsel %vm403_vm9, 1.0, %v3268_v15  ;;  %v2231_v29 = vsel %vm444_vm10, 1.0, %v3268_v15  ;;  %v74_v1 = vld [vmem:[%s4978_s0 + $0x68] sm:$0xff]  ;;  %v1101_v8 = vld [vmem:[#allocation2 + $0x120] sm:$0xff] }
  0x46   :  { %2857 = vmatpush3.bf16.msra.mxu0 %v2854_v3  ;;  %v3170_v3 = vpack.i.bf16 %v2223_v13, %v2191_v53  ;;  %v2235_v25 = vsel %vm448_vm11, 1.0, %v3268_v15  ;;  %v3165_v26 = vpack.i.bf16 %v2231_v29, %v2222_v20  ;;  %vm450_vm12 = vcmp.le.s32.totalorder %v290_v59, 6  ;;  %v1099_v13 = vld [vmem:[#allocation2 + $0x110] sm:$0xff] }
  0x47   :  { %3141 = vperm.xlu1 %3084, %v3140_v30   ;;  %vm445_vm13 = vcmp.le.s32.totalorder %v3449_v37, 6  ;;  %v2237_v30 = vsel %vm450_vm12, 1.0, %v3268_v15  ;;  %vm452_vm14 = vcmp.le.s32.totalorder %v3602_v41, 6  ;;  %vm447_vm15 = vcmp.le.s32.totalorder %v3584_v31, 6  ;;  %v76_v37 = vld [vmem:[%s4978_s0 + $0x78] sm:$0xff]  ;;  %v1067_v59 = vld [vmem:[#allocation2 + $0x10] sm:$0xff] }
  0x48   :  { %3126 = vperm.xlu0 %3073, %v3125_v48   ;;  %v2239_v33 = vsel %vm452_vm14, 1.0, %v3268_v15  ;;  %vm342_vm0 = vcmp.le.s32.totalorder %v3471_v44, 6  ;;  %v2234_v34 = vsel %vm447_vm15, 1.0, %v3268_v15  ;;  %vm449_vm1 = vcmp.le.s32.totalorder %v3550_v12, 6  ;;  %v1098_v48 = vld [vmem:[#allocation2 + $0x108] sm:$0xff]  ;;  %v1119_v29 = vld [vmem:[#allocation2 + $0x1b0] sm:$0xff] }
  0x49   :  { %2691 = vmatmul.mubr.f32.vlgmr.msra.gmra.mrb[0].mxu0 %v62_v22  ;;  %v75_v22 = vld [vmem:[%s4978_s0 + $0x70] sm:$0xff]  ;;  %v2193_v35 = vsel %vm342_vm0, 1.0, %v3268_v15  ;;  %vm344_vm2 = vcmp.le.s32.totalorder %v3393_v17, 6  ;;  %v2236_v31 = vsel %vm449_vm1, 1.0, %v3268_v15  ;;  %vm451_vm3 = vcmp.le.s32.totalorder %v291_v4, 6  ;;  %v1118_v4 = vld [vmem:[#allocation2 + $0x1a8] sm:$0xff] }
  0x4a   :  { %2693 = vmatprep.mubr.f32.mxu0 %v63_v32  ;;  %v2232_v32 = vsel %vm445_vm13, 1.0, %v3268_v15  ;;  %v2195_v36 = vsel %vm344_vm2, 1.0, %v3268_v15  ;;  %vm346_vm4 = vcmp.le.s32.totalorder %v3406_v21, 6  ;;  %v2238_v44 = vsel %vm451_vm3, 1.0, %v3268_v15 }
  0x4b   :  { %3151 = vperm.xlu1 %3084, %v3150_v43   ;;  %vm341_vm5 = vcmp.le.s32.totalorder %v3454_v38, 6  ;;  %v2197_v12 = vsel %vm346_vm4, 1.0, %v3268_v15  ;;  %vm348_vm6 = vcmp.le.s32.totalorder %v3426_v28, 6  ;;  %vm350_vm7 = vcmp.le.s32.totalorder %v3556_v16, 6  ;;  %v1113_v43 = vld [vmem:[#allocation2 + $0x180] sm:$0xff] }
  0x4c   :  { %3136 = vperm.xlu0 %3073, %v3135_v58   ;;  %v2192_v17 = vsel %vm341_vm5, 1.0, %v3268_v15  ;;  %v2199_v39 = vsel %vm348_vm6, 1.0, %v3268_v15  ;;  %vm345_vm8 = vcmp.le.s32.totalorder %v3482_v49, 6  ;;  %v2201_v21 = vsel %vm350_vm7, 1.0, %v3268_v15 }
  0x4d   :  { %2694 = vmatmul.mubr.f32.gmra.mrb[2].mxu0 %v64_v42  ;;  %vm352_vm9 = vcmp.le.s32.totalorder %v3521_v0, 6  ;;  %v2196_v38 = vsel %vm345_vm8, 1.0, %v3268_v15  ;;  %vm347_vm10 = vcmp.le.s32.totalorder %v3513_v61, 6  ;;  %vm354_vm11 = vcmp.le.s32.totalorder %v3632_v56, 6  ;;  %v1082_v42 = vld [vmem:[#allocation2 + $0x88] sm:$0xff]  ;;  %v1115_v56 = vld [vmem:[#allocation2 + $0x190] sm:$0xff] }
  0x4e   :  { %2696 = vmatprep.mubr.f32.mxu0 %v65_v46  ;;  %v2203_v28 = vsel %vm352_vm9, 1.0, %v3268_v15  ;;  %v2198_v16 = vsel %vm347_vm10, 1.0, %v3268_v15  ;;  %vm349_vm12 = vcmp.le.s32.totalorder %v3536_v6, 6  ;;  %v2205_v49 = vsel %vm354_vm11, 1.0, %v3268_v15 }
  0x4f   :  { %3161 = vperm.xlu1 %3084, %v3160_v55   ;;  %vm356_vm13 = vcmp.le.s32.totalorder %v3597_v40, 6  ;;  %v2200_v0 = vsel %vm349_vm12, 1.0, %v3268_v15  ;;  %vm353_vm14 = vcmp.le.s32.totalorder %v3612_v45, 6  ;;  %vm355_vm15 = vcmp.le.s32.totalorder %v3574_v27, 6  ;;  %v1081_v40 = vld [vmem:[#allocation2 + $0x80] sm:$0xff]  ;;  %v1116_v27 = vld [vmem:[#allocation2 + $0x198] sm:$0xff] }
  0x50   :  { %3146 = vperm.xlu0 %3073, %v3145_v51   ;;  %v2207_v61 = vsel %vm356_vm13, 1.0, %v3268_v15  ;;  %v2204_v41 = vsel %vm353_vm14, 1.0, %v3268_v15  ;;  %v2206_v6 = vsel %vm355_vm15, 1.0, %v3268_v15  ;;  %v2858_v46 = vpack.c.bf16 %v1082_v42, %v1081_v40  ;;  %v1065_v45 = vld [vmem:[#allocation2] sm:$0xff]  ;;  %v1083_v15 = vld [vmem:[#allocation2 + $0x90] sm:$0xff] }
  0x51   :  { %2697 = vmatmul.mubr.f32.gmra.mrb[4].mxu0 %v66_v54  ;;  %v2890_v50 = vpack.c.bf16 %v1114_v47, %v1113_v43  ;;  %v2892_v54 = vpack.c.bf16 %v1098_v48, %v1097_v18  ;;  %v2860_v55 = vpack.c.bf16 %v1066_v52, %v1065_v45  ;;  %v2894_v53 = vpack.c.bf16 %v1116_v27, %v1115_v56  ;;  %v1107_v42 = vld [vmem:[#allocation2 + $0x150] sm:$0xff]  ;;  %v1076_v47 = vld [vmem:[#allocation2 + $0x58] sm:$0xff]  ;;  %v1125_v45 = vld [vmem:[#allocation2 + $0x1e0] sm:$0xff] }
  0x52   :  { %2699 = vmatprep.mubr.f32.mxu0 %v67_v57  ;;  %2859 = vmatprep.subr.bf16.mxu1 %v2858_v46  ;;  %v1084_v57 = vld [vmem:[#allocation2 + $0x98] sm:$0xff]  ;;  %v1075_v46 = vld [vmem:[#allocation2 + $0x50] sm:$0xff]  ;;  %v1126_v52 = vld [vmem:[#allocation2 + $0x1e8] sm:$0xff] }
  0x53   :  { %3171 = vperm.xlu1 %3084, %v3170_v3   ;;  %2891 = vmatprep.subr.bf16.mxu0 %v2890_v50  ;;  %v2862_v58 = vpack.c.bf16 %v1084_v57, %v1083_v15  ;;  %v1117_v3 = vld [vmem:[#allocation2 + $0x1a0] sm:$0xff]  ;;  %v1108_v18 = vld [vmem:[#allocation2 + $0x158] sm:$0xff]  ;;  %v2880_v48 = vpack.c.bf16 %v1076_v47, %v1075_v46  ;;  %v2914_v56 = vpack.c.bf16 %v1126_v52, %v1125_v45 }
  0x54   :  { %3156 = vperm.xlu0 %3073, %v3155_v19   ;;  %2861 = vmatpush3.bf16.msra.mxu1 %v2860_v55  ;;  %v2898_v51 = vpack.c.bf16 %v1118_v4, %v1117_v3  ;;  %v2912_v50 = vpack.c.bf16 %v1108_v18, %v1107_v42  ;;  %v1094_v55 = vld [vmem:[#allocation2 + $0xe8] sm:$0xff]  ;;  %v1109_v27 = vld [vmem:[#allocation2 + $0x160] sm:$0xff]  ;;  %v1111_v4 = vld [vmem:[#allocation2 + $0x170] sm:$0xff] }
  0x55   :  { %2700 = vmatmul.mubr.f32.gmra.mrb[6].mxu0 %v68_v2  ;;  %v2896_v2 = vpack.c.bf16 %v1100_v62, %v1099_v13  ;;  %2863 = vmatprep.subr.bf16.mxu1 %v2862_v58  ;;  %v1077_v57 = vld [vmem:[#allocation2 + $0x60] sm:$0xff]  ;;  %v1110_v13 = vld [vmem:[#allocation2 + $0x168] sm:$0xff]  ;;  %v1128_v62 = vld [vmem:[#allocation2 + $0x1f8] sm:$0xff] }
  0x56   :  { %2702 = vmatprep.mubr.f32.mxu0 %v69_v7  ;;  %2893 = vmatpush3.bf16.msra.mxu0 %v2892_v54  ;;  %v1086_v7 = vld [vmem:[#allocation2 + $0xa8] sm:$0xff]  ;;  %v1093_v54 = vld [vmem:[#allocation2 + $0xe0] sm:$0xff] }
  0x57   :  { %824 = vperm.xlu1 %3084, %v2233_v14   ;;  %2895 = vmatprep.subr.bf16.mxu0 %v2894_v53  ;;  %v1102_v14 = vld [vmem:[#allocation2 + $0x128] sm:$0xff]  ;;  %v2882_v15 = vpack.c.bf16 %v1094_v55, %v1093_v54  ;;  %v501_v54 = vlaneseq }
  0x58   :  { %3166 = vperm.xlu0 %3073, %v3165_v26   ;;  %v2900_v20 = vpack.c.bf16 %v1102_v14, %v1101_v8  ;;  %v1078_v53 = vld [vmem:[#allocation2 + $0x68] sm:$0xff]  ;;  %v1112_v8 = vld [vmem:[#allocation2 + $0x178] sm:$0xff]  ;;  %v1145_v14 = vld [vmem:[#allocation2 + $0x280] sm:$0xff] }
  0x59   :  { %2703 = vmatmul.mubr.f32.gmra.mrb[8].mxu0 %v70_v10  ;;  %v1069_v10 = vld [vmem:[#allocation2 + $0x20] sm:$0xff]  ;;  %v2884_v58 = vpack.c.bf16 %v1078_v53, %v1077_v57  ;;  %v3796_v57 = vshrl.u32 %v501_v54, 7 }
  0x5a   :  { %2705 = vmatprep.mubr.f32.mxu0 %v71_v11  ;;  %2897 = vmatpush3.bf16.msra.mxu0 %v2896_v2  ;;  %v1070_v11 = vld [vmem:[#allocation2 + $0x28] sm:$0xff]  ;;  %v1096_v2 = vld [vmem:[#allocation2 + $0xf8] sm:$0xff] }
  0x5b   :  { %834 = vperm.xlu1 %3084, %v2235_v25   ;;  %2899 = vmatprep.subr.bf16.mxu0 %v2898_v51  ;;  %v2868_v19 = vpack.c.bf16 %v1070_v11, %v1069_v10  ;;  %v1088_v25 = vld [vmem:[#allocation2 + $0xb8] sm:$0xff]  ;;  %v2920_v10 = vpack.c.bf16 %v1112_v8, %v1111_v4  ;;  %vm503_vm0 = vcmp.lt.s32.totalorder %v3796_v57, 1  ;;  %vm744_vm1 = vcmp.lt.s32.totalorder %v3796_v57, 7 }
  0x5c   :  { %819 = vperm.xlu0 %3073, %v2232_v32   ;;  %v1072_v32 = vld [vmem:[#allocation2 + $0x38] sm:$0xff] }
  0x5d   :  { %2706 = vmatmul.mubr.f32.gmra.mrb[10].mxu0 %v72_v23  ;;  %v1120_v23 = vld [vmem:[#allocation2 + $0x1b8] sm:$0xff] }
  0x5e   :  { %2708 = vmatprep.mubr.f32.mxu0 %v73_v24  ;;  %2901 = vmatpush3.bf16.msra.mxu0 %v2900_v20  ;;  %v1087_v24 = vld [vmem:[#allocation2 + $0xb0] sm:$0xff]  ;;  %v2902_v26 = vpack.c.bf16 %v1120_v23, %v1119_v29  ;;  %v1080_v51 = vld [vmem:[#allocation2 + $0x78] sm:$0xff] }
  0x5f   :  { %844 = vperm.xlu1 %3084, %v2237_v30   ;;  %v1071_v30 = vld [vmem:[#allocation2 + $0x30] sm:$0xff] }
  0x60   :  { %829 = vperm.xlu0 %3073, %v2234_v34   ;;  %2903 = vmatprep.subr.bf16.mxu0 %v2902_v26 }
  0x61   :  { %2709 = vmatmul.mubr.f32.gmra.mrb[12].mxu0 %v74_v1  ;;  %v1103_v1 = vld [vmem:[#allocation2 + $0x130] sm:$0xff] }
  0x62   :  { %2711 = vmatprep.mubr.f32.mxu0 %v75_v22  ;;  %v2870_v22 = vpack.c.bf16 %v1088_v25, %v1087_v24 }
  0x63   :  { %854 = vperm.xlu1 %3084, %v2239_v33   ;;  %v2872_v33 = vpack.c.bf16 %v1072_v32, %v1071_v30 }
  0x64   :  { %839 = vperm.xlu0 %3073, %v2236_v31   ;;  %v1122_v31 = vld [vmem:[#allocation2 + $0x1c8] sm:$0xff] }
  0x65   :  { %2712 = vmatmul.mubr.f32.gmra.mrb[14].mxu0 %v76_v37  ;;  %v1104_v37 = vld [vmem:[#allocation2 + $0x138] sm:$0xff] }
  0x66   :  { %v2904_v34 = vpack.c.bf16 %v1104_v37, %v1103_v1  ;;  %v1177_v1 = vld [vmem:[#allocation2 + $0x380] sm:$0xff] }
  0x67   :  { %912 = vperm.xlu1 %3084, %v2193_v35   ;;  %v1121_v35 = vld [vmem:[#allocation2 + $0x1c0] sm:$0xff] }
  0x68   :  { %849 = vperm.xlu0 %3073, %v2238_v44   ;;  %2905 = vmatpush3.bf16.msra.mxu0 %v2904_v34  ;;  %v1090_v44 = vld [vmem:[#allocation2 + $0xc8] sm:$0xff] }
  0x6b   :  { %922 = vperm.xlu1 %3084, %v2195_v36   ;;  %v1089_v36 = vld [vmem:[#allocation2 + $0xc0] sm:$0xff] }
  0x6c   :  { %907 = vperm.xlu0 %3073, %v2192_v17   ;;  %v1105_v17 = vld [vmem:[#allocation2 + $0x140] sm:$0xff] }
  0x6f   :  { %932 = vperm.xlu1 %3084, %v2197_v12   ;;  %v2906_v12 = vpack.c.bf16 %v1122_v31, %v1121_v35 }
  0x70   :  { %917 = vperm.xlu0 %3073, %v3645_v63   ;;  %v2864_v63 = vpack.c.bf16 %v1068_v60, %v1067_v59  ;;  %v2916_v59 = vpack.c.bf16 %v1110_v13, %v1109_v27  ;;  %v1127_v60 = vld [vmem:[#allocation2 + $0x1f0] sm:$0xff] }
  0x71   :  { %2907 = vmatprep.subr.bf16.mxu0 %v2906_v12  ;;  %v2918_v3 = vpack.c.bf16 %v1128_v62, %v1127_v60 }
  0x72   :  { %2865 = vmatpush3.bf16.msra.mxu1 %v2864_v63  ;;  %v1095_v63 = vld [vmem:[#allocation2 + $0xf0] sm:$0xff] }
  0x73   :  { %942 = vperm.xlu1 %3084, %v2199_v39   ;;  %v2874_v39 = vpack.c.bf16 %v1090_v44, %v1089_v36 }
  0x74   :  { %927 = vperm.xlu0 %3073, %v2196_v38   ;;  %v1074_v38 = vld [vmem:[#allocation2 + $0x48] sm:$0xff] }
  0x77   :  { %952 = vperm.xlu1 %3084, %v2201_v21   ;;  %v1073_v21 = vld [vmem:[#allocation2 + $0x40] sm:$0xff] }
  0x78   :  { %937 = vperm.xlu0 %3073, %v2198_v16   ;;  %v2876_v16 = vpack.c.bf16 %v1074_v38, %v1073_v21 }
  0x7b   :  { %962 = vperm.xlu1 %3084, %v2203_v28   ;;  %v1106_v28 = vld [vmem:[#allocation2 + $0x148] sm:$0xff] }
  0x7c   :  { %947 = vperm.xlu0 %3073, %v2200_v0   ;;  %v1123_v0 = vld [vmem:[#allocation2 + $0x1d0] sm:$0xff] }
  0x7f   :  { %972 = vperm.xlu1 %3084, %v2205_v49   ;;  %v2908_v49 = vpack.c.bf16 %v1106_v28, %v1105_v17 }
  0x80   :  { %957 = vperm.xlu0 %3073, %v3656_v5   ;;  %v1085_v5 = vld [vmem:[#allocation2 + $0xa0] sm:$0xff] }
  0x81   :  { %v2866_v9 = vpack.c.bf16 %v1086_v7, %v1085_v5  ;;  %2909 = vmatpush3.bf16.msra.mxu0 %v2908_v49  ;;  %v2886_v5 = vpack.c.bf16 %v1096_v2, %v1095_v63  ;;  %v1079_v7 = vld [vmem:[#allocation2 + $0x70] sm:$0xff] }
  0x83   :  { %982 = vperm.xlu1 %3084, %v2207_v61   ;;  %2867 = vmatprep.subr.bf16.mxu1 %v2866_v9  ;;  %v1124_v61 = vld [vmem:[#allocation2 + $0x1d8] sm:$0xff]  ;;  %v2888_v9 = vpack.c.bf16 %v1080_v51, %v1079_v7 }
  0x84   :  { %967 = vperm.xlu0 %3073, %v2204_v41   ;;  %2869 = vmatpush3.bf16.msra.mxu1 %v2868_v19  ;;  %v1091_v41 = vld [vmem:[#allocation2 + $0xd0] sm:$0xff]  ;;  %v2910_v40 = vpack.c.bf16 %v1124_v61, %v1123_v0  ;;  %v1146_v19 = vld [vmem:[#allocation2 + $0x288] sm:$0xff] }
  0x85   :  { %2871 = vmatprep.subr.bf16.mxu1 %v2870_v22  ;;  %v2922_v20 = vpack.c.bf16 %v1146_v19, %v1145_v14  ;;  %v1178_v22 = vld [vmem:[#allocation2 + $0x388] sm:$0xff]  ;;  %v3834_v19 = vld [vmem:[#allocation2 + $0x200] sm:$0xff] }
  0x86   :  { %2911 = vmatprep.subr.bf16.mxu0 %v2910_v40  ;;  %v2954_v30 = vpack.c.bf16 %v1178_v22, %v1177_v1 }
  0x87   :  { %2913 = vmatpush3.bf16.msra.mxu0 %v2912_v50 }
  0x88   :  { %977 = vperm.xlu0 %3073, %v2206_v6   ;;  %2873 = vmatpush3.bf16.msra.mxu1 %v2872_v33  ;;  %v1092_v6 = vld [vmem:[#allocation2 + $0xd8] sm:$0xff] }
  0x89   :  { %2875 = vmatprep.subr.bf16.mxu1 %v2874_v39  ;;  %v2878_v43 = vpack.c.bf16 %v1092_v6, %v1091_v41  ;;  %2915 = vmatprep.subr.bf16.mxu0 %v2914_v56 }
  0x8b   :  { %2917 = vmatpush3.bf16.msra.mxu0 %v2916_v59 }
  0x8c   :  { %2877 = vmatpush3.bf16.msra.mxu1 %v2876_v16  ;;  %2919 = vmatprep.subr.bf16.mxu0 %v2918_v3 }
  0x8d   :  { %2879 = vmatprep.subr.bf16.mxu1 %v2878_v43 }
  0x8f   :  { %2921 = vmatpush3.bf16.msra.mxu0 %v2920_v10 }
  0x90   :  { %2881 = vmatpush3.bf16.msra.mxu1 %v2880_v48  ;;  %2955 = vmatprep.subr.bf16.mxu0 %v2954_v30 }
  0x91   :  { %2883 = vmatprep.subr.bf16.mxu1 %v2882_v15  ;;  %v3794_v15 = vld [vmem:[%s4982_s4] ss:$0 sm:$0xff] }
  0x94   :  { %2885 = vmatpush3.bf16.msra.mxu1 %v2884_v58 }
  0x95   :  { %2887 = vmatprep.subr.bf16.mxu1 %v2886_v5 }
  0x98   :  { %2889 = vmatpush3.bf16.msra.mxu1 %v2888_v9 }
  0x99   :  { %2923 = vmatprep.subr.bf16.mxu1 %v2922_v20  ;;  %v3836_v20 = vld [vmem:[#allocation2 + $0x208] sm:$0xff] }
  0xae   :  { %v3087_v37 = vpop.permute.xlu1 %3086 }
  0xaf   :  { %v3802_v58 = vunpack.i.h.bf16 %v3087_v37  ;;  %v3804_v59 = vunpack.i.l.bf16 %v3087_v37 }
  0xb1   :  { %5125 = vst [vmem:[#allocation30_spill] sm:$0xff] %v3802_v58 }
  0xb2   :  { %v3092_v34 = vpop.permute.xlu1 %3091 }
  0xb3   :  { %v3731_v11 = vpop.permute.xlu0 %3075  ;;  %v3810_v2 = vunpack.i.h.bf16 %v3092_v34  ;;  %v3812_v3 = vunpack.i.l.bf16 %v3092_v34  ;;  %v3848_v34 = vld [vmem:[#allocation2 + $0x290] sm:$0xff] }
  0xb4   :  { %v3828_v10 = vunpack.i.h.bf16 %v3731_v11  ;;  %v3831_v14 = vunpack.i.l.bf16 %v3731_v11  ;;  %v3850_v11 = vld [vmem:[#allocation2 + $0x298] sm:$0xff] }
  0xb5   :  { %5127 = vst [vmem:[#allocation32_spill] sm:$0xff] %v3810_v2 }
  0xb6   :  { %v3102_v31 = vpop.permute.xlu1 %3101  ;;  %5134 = vst [vmem:[#allocation39_spill] sm:$0xff] %v3828_v10 }
  0xb7   :  { %v3733_v29 = vpop.permute.xlu0 %3080  ;;  %v3814_v4 = vunpack.i.h.bf16 %v3102_v31  ;;  %v3816_v5 = vunpack.i.l.bf16 %v3102_v31  ;;  %v3852_v31 = vld [vmem:[#allocation2 + $0x210] sm:$0xff] }
  0xb8   :  { %v3843_v30 = vunpack.i.h.bf16 %v3733_v29  ;;  %v3846_v37 = vunpack.i.l.bf16 %v3733_v29 }
  0xb9   :  { %5128 = vst [vmem:[#allocation33_spill] sm:$0xff] %v3814_v4  ;;  %5129 = vst [vmem:[#allocation34_spill] sm:$0xff] %v3816_v5 }
  0xba   :  { %v3112_v44 = vpop.permute.xlu1 %3111  ;;  %5136 = vst [vmem:[#allocation41_spill] sm:$0xff] %v3843_v30 }
  0xbb   :  { %v3735_v23 = vpop.permute.xlu0 %3096  ;;  %v3823_v8 = vunpack.i.h.bf16 %v3112_v44  ;;  %v3825_v9 = vunpack.i.l.bf16 %v3112_v44 }
  0xbc   :  { %v3855_v44 = vunpack.i.h.bf16 %v3735_v23 }
  0xbd   :  { %5132 = vst [vmem:[#allocation37_spill] sm:$0xff] %v3823_v8  ;;  %5133 = vst [vmem:[#allocation38_spill] sm:$0xff] %v3825_v9  ;;  %v3934_v9 = vld [vmem:[#allocation2 + $0x248] sm:$0xff] }
  0xbe   :  { %v3122_v17 = vpop.permute.xlu1 %3121  ;;  %5137 = vst [vmem:[#allocation42_spill] sm:$0xff] %v3855_v44  ;;  %5160 = vst [vmem:[#allocation65_spill] sm:$0xff] %v3934_v9 }
  0xbf   :  { %v3737_v24 = vpop.permute.xlu0 %3106  ;;  %v3838_v1 = vunpack.i.h.bf16 %v3122_v17  ;;  %v3840_v22 = vunpack.i.l.bf16 %v3122_v17 }
  0xc1   :  { %5135 = vst [vmem:[#allocation40_spill] sm:$0xff] %v3840_v22 }
  0xc2   :  { %v3132_v21 = vpop.permute.xlu1 %3131 }
  0xc3   :  { %v3739_v25 = vpop.permute.xlu0 %3116 }
  0xc6   :  { %v3757_v28 = vpop.permute.xlu1 %3141 }
  0xc7   :  { %v3741_v26 = vpop.permute.xlu0 %3126 }
  0xc8   :  { %5106 = vst [vmem:[#allocation11_spill] sm:$0xff] %v3741_v26 }
  0xca   :  { %v3761_v49 = vpop.permute.xlu1 %3151 }
  0xcb   :  { %v3743_v32 = vpop.permute.xlu0 %3136  ;;  %5114 = vst [vmem:[#allocation19_spill] sm:$0xff] %v3761_v49 }
  0xce   :  { %v3765_v61 = vpop.permute.xlu1 %3161 }
  0xcf   :  { %v3745_v33 = vpop.permute.xlu0 %3146  ;;  %5116 = vst [vmem:[#allocation21_spill] sm:$0xff] %v3765_v61 }
  0xd0   :  { %5107 = vst [vmem:[#allocation12_spill] sm:$0xff] %v3745_v33 }
  0xd2   :  { %v3769_v42 = vpop.permute.xlu1 %3171 }
  0xd3   :  { %v3747_v35 = vpop.permute.xlu0 %3156  ;;  %5118 = vst [vmem:[#allocation23_spill] sm:$0xff] %v3769_v42  ;;  %v3920_v42 = vld [vmem:[#allocation2 + $0x308] sm:$0xff] }
  0xd4   :  { %5108 = vst [vmem:[#allocation13_spill] sm:$0xff] %v3747_v35  ;;  %v3885_v35 = vld [vmem:[#allocation2 + $0x228] sm:$0xff] }
  0xd5   :  { %5147 = vst [vmem:[#allocation52_spill] sm:$0xff] %v3885_v35  ;;  %v4037_v35 = vld [vmem:[#allocation2 + $0x258] sm:$0xff] }
  0xd6   :  { %v3777_v48 = vpop.permute.xlu1 %824 }
  0xd7   :  { %v3749_v36 = vpop.permute.xlu0 %3166  ;;  %5120 = vst [vmem:[#allocation25_spill] sm:$0xff] %v3777_v48  ;;  %v3908_v48 = vunpack.i.l.bf16 %v3739_v25 }
  0xd8   :  { %5109 = vst [vmem:[#allocation14_spill] sm:$0xff] %v3749_v36 }
  0xda   :  { %v3787_v56 = vpop.permute.xlu1 %834 }
  0xdb   :  { %v3751_v12 = vpop.permute.xlu0 %819  ;;  %5122 = vst [vmem:[#allocation27_spill] sm:$0xff] %v3787_v56  ;;  %v3876_v56 = vunpack.i.l.bf16 %v3132_v21 }
  0xdc   :  { %5110 = vst [vmem:[#allocation15_spill] sm:$0xff] %v3751_v12  ;;  %v3922_v12 = vld [vmem:[#allocation2 + $0x2c0] sm:$0xff] }
  0xdd   :  { %5144 = vst [vmem:[#allocation49_spill] sm:$0xff] %v3876_v56  ;;  %5157 = vst [vmem:[#allocation62_spill] sm:$0xff] %v3922_v12 }
  0xde   :  { %v3818_v7 = vpop.permute.xlu1 %844 }
  0xdf   :  { %v3753_v39 = vpop.permute.xlu0 %829  ;;  %5130 = vst [vmem:[#allocation35_spill] sm:$0xff] %v3818_v7  ;;  %v3872_v7 = vld [vmem:[#allocation2 + $0x2a8] sm:$0xff] }
  0xe0   :  { %5111 = vst [vmem:[#allocation16_spill] sm:$0xff] %v3753_v39  ;;  %v3905_v39 = vld [vmem:[#allocation2 + $0x238] sm:$0xff] }
  0xe1   :  { %5155 = vst [vmem:[#allocation60_spill] sm:$0xff] %v3905_v39 }
  0xe3   :  { %v3755_v38 = vpop.permute.xlu0 %839 }
  0xe4   :  { %5112 = vst [vmem:[#allocation17_spill] sm:$0xff] %v3755_v38  ;;  %v3874_v38 = vunpack.i.h.bf16 %v3132_v21  ;;  %v3896_v21 = vunpack.i.h.bf16 %v3737_v24 }
  0xe6   :  { %5143 = vst [vmem:[#allocation48_spill] sm:$0xff] %v3874_v38  ;;  %5151 = vst [vmem:[#allocation56_spill] sm:$0xff] %v3896_v21  ;;  %v3910_v38 = vpop.permute.xlu1 %854 }
  0xe7   :  { %v3759_v16 = vpop.permute.xlu0 %849  ;;  %5156 = vst [vmem:[#allocation61_spill] sm:$0xff] %v3910_v38 }
  0xe8   :  { %5113 = vst [vmem:[#allocation18_spill] sm:$0xff] %v3759_v16  ;;  %v3870_v16 = vld [vmem:[#allocation2 + $0x2a0] sm:$0xff] }
  0xeb   :  { %v3763_v0 = vpop.permute.xlu0 %907 }
  0xec   :  { %5115 = vst [vmem:[#allocation20_spill] sm:$0xff] %v3763_v0  ;;  %v3901_v0 = vld [vmem:[#allocation2 + $0x2b8] sm:$0xff] }
  0xed   :  { %5153 = vst [vmem:[#allocation58_spill] sm:$0xff] %v3901_v0  ;;  %v4035_v0 = vld [vmem:[#allocation2 + $0x250] sm:$0xff] }
  0xef   :  { %v3767_v6 = vpop.permute.xlu0 %917 }
  0xf0   :  { %5117 = vst [vmem:[#allocation22_spill] sm:$0xff] %v3767_v6  ;;  %v3893_v6 = vunpack.i.l.bf16 %v3757_v28 }
  0xf2   :  { %5150 = vst [vmem:[#allocation55_spill] sm:$0xff] %v3893_v6  ;;  %v3946_v6 = vunpack.i.l.bf16 %v3749_v36 }
  0xf3   :  { %v3773_v47 = vpop.permute.xlu0 %927 }
  0xf4   :  { %5119 = vst [vmem:[#allocation24_spill] sm:$0xff] %v3773_v47  ;;  %v3890_v47 = vunpack.i.h.bf16 %v3757_v28  ;;  %5162 = vst [vmem:[#allocation67_spill] sm:$0xff] %v3946_v6 }
  0xf6   :  { %5149 = vst [vmem:[#allocation54_spill] sm:$0xff] %v3890_v47  ;;  %v3918_v47 = vld [vmem:[#allocation2 + $0x300] sm:$0xff] }
  0xf7   :  { %v3783_v52 = vpop.permute.xlu0 %937 }
  0xf8   :  { %5121 = vst [vmem:[#allocation26_spill] sm:$0xff] %v3783_v52  ;;  %v3887_v52 = vld [vmem:[#allocation2 + $0x2b0] sm:$0xff] }
  0xf9   :  { %5148 = vst [vmem:[#allocation53_spill] sm:$0xff] %v3887_v52 }
  0xfb   :  { %v3800_v13 = vpop.permute.xlu0 %947 }
  0xfc   :  { %5124 = vst [vmem:[#allocation29_spill] sm:$0xff] %v3800_v13  ;;  %v3868_v13 = vld [vmem:[#allocation2 + $0x218] sm:$0xff] }
  0xff   :  { %v3864_v54 = vpop.permute.xlu0 %957 }
 0x100   :  { %5141 = vst [vmem:[#allocation46_spill] sm:$0xff] %v3864_v54  ;;  %v3883_v54 = vld [vmem:[#allocation2 + $0x220] sm:$0xff] }
 0x101   :  { %5146 = vst [vmem:[#allocation51_spill] sm:$0xff] %v3883_v54  ;;  %v3977_v54 = vpop.permute.xlu1 %912 }
 0x102   :  { %5168 = vst [vmem:[#allocation73_spill] sm:$0xff] %v3977_v54 }
 0x103   :  { %v3948_v26 = vpop.permute.xlu0 %967 }
 0x104   :  { %5163 = vst [vmem:[#allocation68_spill] sm:$0xff] %v3948_v26 }
 0x107   :  { %v4007_v52 = vpop.permute.xlu0 %977 }
 0x108   :  { %5171 = vst [vmem:[#allocation76_spill] sm:$0xff] %v4007_v52 }
 0x11c   :  { %v2692_v41 = vpop.f32.mrb[0].mxu0 }
 0x11d   :  { %v166_v40 = vpop.f32.mrb[1].mxu0  ;;  %v172_v60 = vadd.f32 %v2692_v41, %v3794_v15  ;;  %v3858_v41 = vunpack.i.l.bf16 %v3735_v23 }
 0x11e   :  { %v167_v62 = vadd.f32 %v3794_v15, %v166_v40 }
 0x11f   :  { %5138 = vst [vmem:[#allocation43_spill] sm:$0xff] %v3858_v41  ;;  %v3860_v17 = vmax.f32 %v172_v60, 0.0 }
 0x120   :  { %v3771_v43 = vpop.f32.mrb[2].mxu0  ;;  %v3862_v40 = vmax.f32 %v167_v62, 0.0  ;;  %v3903_v62 = vld [vmem:[#allocation2 + $0x230] sm:$0xff] }
 0x121   :  { %v176_v46 = vpop.f32.mrb[3].mxu0  ;;  %5139 = vst [vmem:[#allocation44_spill] sm:$0xff] %v3860_v17  ;;  %5154 = vst [vmem:[#allocation59_spill] sm:$0xff] %v3903_v62  ;;  %v182_v28 = vadd.f32 %v3771_v43, %v3794_v15  ;;  %v3943_v43 = vld [vmem:[#allocation2 + $0x398] sm:$0xff] }
 0x122   :  { %5140 = vst [vmem:[#allocation45_spill] sm:$0xff] %v3862_v40  ;;  %v177_v23 = vadd.f32 %v3794_v15, %v176_v46  ;;  %v3899_v46 = vunpack.i.l.bf16 %v3737_v24  ;;  %v485_v22 = vrot.slane %v3862_v40, 7  ;;  %v3932_v24 = vld [vmem:[#allocation2 + $0x240] sm:$0xff]  ;;  %v728_v8 = vrot.slane %v3862_v40, 1 }
 0x123   :  { %5159 = vst [vmem:[#allocation64_spill] sm:$0xff] %v3932_v24 }
 0x124   :  { %v3775_v18 = vpop.f32.mrb[4].mxu0  ;;  %5152 = vst [vmem:[#allocation57_spill] sm:$0xff] %v3899_v46  ;;  %v3938_v61 = vmax.f32 %v177_v23, 0.0  ;;  %v3975_v23 = vld [vmem:[#allocation2 + $0x318] sm:$0xff] }
 0x125   :  { %v3779_v50 = vpop.f32.mrb[5].mxu0 }
 0x126   :  { %5161 = vst [vmem:[#allocation66_spill] sm:$0xff] %v3938_v61  ;;  %v487_v12 = vrot.slane %v3938_v61, 7  ;;  %v187_v4 = vadd.f32 %v3794_v15, %v3779_v50  ;;  %v730_v54 = vrot.slane %v3938_v61, 1  ;;  %v4021_v50 = vld [vmem:[#allocation2 + $0x2d8] sm:$0xff] }
 0x128   :  { %v3781_v45 = vpop.f32.mrb[6].mxu0  ;;  %v4039_v41 = vmax.f32 %v187_v4, 0.0 }
 0x129   :  { %v3785_v55 = vpop.f32.mrb[7].mxu0 }
 0x12a   :  { %5174 = vst [vmem:[#allocation78_spill] sm:$0xff] %v4039_v41 }
 0x12c   :  { %v3789_v27 = vpop.f32.mrb[8].mxu0 }
 0x12d   :  { %5123 = vst [vmem:[#allocation28_spill] sm:$0xff] %v3789_v27  ;;  %v3798_v53 = vpop.f32.mrb[9].mxu0  ;;  %v3955_v27 = vmax.f32 %v182_v28, 0.0  ;;  %v192_v28 = vadd.f32 %v3775_v18, %v3794_v15  ;;  %v4023_v18 = vld [vmem:[#allocation2 + $0x3a0] sm:$0xff] }
 0x12f   :  { %5164 = vst [vmem:[#allocation69_spill] sm:$0xff] %v3955_v27 }
 0x130   :  { %v3808_v63 = vpop.f32.mrb[10].mxu0 }
 0x131   :  { %5126 = vst [vmem:[#allocation31_spill] sm:$0xff] %v3808_v63  ;;  %v3821_v51 = vpop.f32.mrb[11].mxu0  ;;  %v729_v63 = vrot.slane %v3860_v17, 1 }
 0x132   :  { %5131 = vst [vmem:[#allocation36_spill] sm:$0xff] %v3821_v51  ;;  %v3941_v51 = vld [vmem:[#allocation2 + $0x390] sm:$0xff] }
 0x133   :  { %v3981_v36 = vsel %vm744_vm1, %v728_v8, %v729_v63 }
 0x134   :  { %v3866_v29 = vpop.f32.mrb[12].mxu0  ;;  %5169 = vst [vmem:[#allocation74_spill] sm:$0xff] %v3981_v36 }
 0x135   :  { %5142 = vst [vmem:[#allocation47_spill] sm:$0xff] %v3866_v29  ;;  %v3879_v60 = vpop.f32.mrb[13].mxu0  ;;  %v3930_v29 = vld [vmem:[#allocation2 + $0x2c8] sm:$0xff] }
 0x136   :  { %5145 = vst [vmem:[#allocation50_spill] sm:$0xff] %v3879_v60  ;;  %v486_v60 = vrot.slane %v3860_v17, 7  ;;  %5158 = vst [vmem:[#allocation63_spill] sm:$0xff] %v3930_v29 }
 0x138   :  { %v2713_v38 = vpop.f32.mrb[14].mxu0  ;;  %v3965_v26 = vsel %vm503_vm0, %v485_v22, %v486_v60 }
 0x139   :  { %v242_v21 = vadd.f32 %v2713_v38, %v3794_v15  ;;  %v236_v46 = vpop.f32.mrb[15].mxu0  ;;  %5166 = vst [vmem:[#allocation71_spill] sm:$0xff] %v3965_v26 }
 0x13a   :  { %v237_v5 = vadd.f32 %v3794_v15, %v236_v46 }
 0x13b   :  { %v3957_v38 = vmax.f32 %v242_v21, 0.0  ;;  %v3973_v21 = vld [vmem:[#allocation2 + $0x310] sm:$0xff] }
 0x13c   :  { %v3967_v46 = vmax.f32 %v237_v5, 0.0 }
 0x13d   :  { %5165 = vst [vmem:[#allocation70_spill] sm:$0xff] %v3957_v38  ;;  %v500_v5 = vrot.slane %v3957_v38, 7  ;;  %v5029_v29 = vrot.slane %v3957_v38, 1  ;;  %v712_v24 = vmul.f32 %v3831_v14, %v3957_v38 }
 0x13e   :  { %5167 = vst [vmem:[#allocation72_spill] sm:$0xff] %v3967_v46  ;;  %v5172_v9 = vrot.slane %v3967_v46, 7 }
 0x13f   :  { %v3997_v62 = vsel %vm744_vm1, %v5029_v29, %v728_v8  ;;  %v4001_v39 = vsel %vm503_vm0, %v500_v5, %v485_v22  ;;  %1280 = vmatprep.mubr.f32.mxu1 %v712_v24  ;;  %v4019_v29 = vld [vmem:[#allocation2 + $0x2d0] sm:$0xff]  ;;  %v762_v24 = vmul.f32 %v3846_v37, %v3981_v36  ;;  %v4050_v36 = vpop.permute.xlu1 %922 }
 0x140   :  { %5170 = vst [vmem:[#allocation75_spill] sm:$0xff] %v3997_v62  ;;  %v4013_v38 = vsel %vm503_vm0, %v5172_v9, %v500_v5  ;;  %v761_v8 = vmul.f32 %v3831_v14, %v3997_v62  ;;  %v873_v22 = vmul.f32 %v3828_v10, %v4001_v39  ;;  %v874_v5 = vmul.f32 %v3843_v30, %v3965_v26  ;;  %v4033_v62 = vld [vmem:[#allocation2 + $0x3a8] sm:$0xff] }
 0x141   :  { %5173 = vst [vmem:[#allocation77_spill] sm:$0xff] %v4013_v38  ;;  %v999_v46 = vmul.f32 %v4007_v52, %v4013_v38  ;;  %v600_v9 = vmul.f32 %v3831_v14, %v4013_v38  ;;  %v4044_v14 = vsel %vm503_vm0, %v486_v60, %v487_v12  ;;  %v4048_v52 = vsel %vm744_vm1, %v729_v63, %v730_v54  ;;  %v4084_v63 = vld [vmem:[#allocation2 + $0x3b8] sm:$0xff] }
 0x142   :  { %v857_v44 = vmul.f32 %v3908_v48, %v761_v8  ;;  %1425 = vmatprep.mubr.f32.mxu0 %v873_v22  ;;  %5175 = vst [vmem:[#allocation79_spill] sm:$0xff] %v4044_v14  ;;  %v601_v4 = vmul.f32 %v3846_v37, %v4001_v39  ;;  %v731_v8 = vrot.slane %v3955_v27, 1  ;;  %v713_v60 = vmul.f32 %v3846_v37, %v3862_v40 }
 0x143   :  { %v4053_v38 = vmul.f32 %v3946_v6, %v999_v46  ;;  %v696_v33 = vmul.f32 %v3828_v10, %v600_v9  ;;  %v2962_v22 = vpack.c.bf16 %v4033_v62, %v4023_v18  ;;  %v5177_v9 = vrot.slane %v3955_v27, 7  ;;  %v4080_v18 = vld [vmem:[#allocation2 + $0x328] sm:$0xff]  ;;  %v4082_v46 = vld [vmem:[#allocation2 + $0x3b0] sm:$0xff] }
 0x144   :  { %1426 = vmatmul.mubr.f32.vlgmr.msra.gmra.mrb[16].mxu0 %v857_v44  ;;  %v4075_v44 = vmax.f32 %v192_v28, 0.0  ;;  %v858_v37 = vmul.f32 %v3838_v1, %v762_v24  ;;  %v875_v62 = vmul.f32 %v3802_v58, %v4044_v14  ;;  %v4087_v40 = vunpack.i.h.bf16 %v3739_v25  ;;  %v4098_v24 = vld [vmem:[#allocation2 + $0x330] sm:$0xff] }
 0x145   :  { %5176 = vst [vmem:[#allocation80_spill] sm:$0xff] %v4053_v38  ;;  %v4067_v38 = vld [vmem:[#allocation2 + $0x320] sm:$0xff]  ;;  %v4073_v10 = vsel %vm503_vm0, %v487_v12, %v5177_v9  ;;  %1281 = vmatmul.mubr.f32.vlgmr.msra.gmra.mrb[0].mxu1 %v696_v33  ;;  %1430 = vmatprep.mubr.f32.mxu0 %v874_v5  ;;  %v197_v12 = vadd.f32 %v3794_v15, %v3785_v55  ;;  %v4100_v9 = vld [vmem:[#allocation2 + $0x338] sm:$0xff]  ;;  %v489_v25 = vrot.slane %v4039_v41, 7 }
 0x146   :  { %5178 = vst [vmem:[#allocation81_spill] sm:$0xff] %v4073_v10  ;;  %5179 = vst [vmem:[#allocation82_spill] sm:$0xff] %v4075_v44  ;;  %v5180_v33 = vpack.c.bf16 %v3836_v20, %v3834_v19  ;;  %1285 = vmatprep.mubr.f32.mxu1 %v713_v60  ;;  %v763_v28 = vmul.f32 %v3804_v59, %v4048_v52  ;;  %v602_v5 = vmul.f32 %v3804_v59, %v3965_v26 }
 0x147   :  { %v697_v6 = vmul.f32 %v3843_v30, %v601_v4  ;;  %v5181_v55 = vpack.c.bf16 %v3850_v11, %v3848_v34  ;;  %v4109_v19 = vsel %vm744_vm1, %v730_v54, %v731_v8  ;;  %v5050_v20 = vrot.slane %v4039_v41, 1  ;;  %v4222_v30 = vld [vmem:[#allocation2 + $0x2f0] sm:$0xff] }
 0x148   :  { %2925 = vmatpush3.bf16.msra.mxu1 %v5180_v33  ;;  %v5182_v60 = vpack.c.bf16 %v3920_v42, %v3918_v47  ;;  %v4116_v33 = vunpack.i.h.bf16 %v3743_v32  ;;  %1431 = vmatmul.mubr.f32.gmra.mrb[18].mxu0 %v858_v37  ;;  %v714_v4 = vmul.f32 %v3804_v59, %v3860_v17  ;;  %v5184_v34 = vpack.c.bf16 %v3943_v43, %v3941_v51  ;;  %v4129_v42 = vpop.permute.xlu1 %932  ;;  %v4138_v43 = vld [vmem:[#allocation2 + $0x2e8] sm:$0xff] }
 0x149   :  { %2927 = vmatprep.subr.bf16.mxu1 %v5181_v55  ;;  %v2964_v11 = vpack.c.bf16 %v4080_v18, %v4067_v38  ;;  %v2966_v54 = vpack.c.bf16 %v4084_v63, %v4082_v46  ;;  %v4127_v55 = vld [vmem:[#allocation2 + $0x2e0] sm:$0xff]  ;;  %5185 = vst [vmem:[#allocation84_spill] sm:$0xff] %v4129_v42  ;;  %v5049_v47 = vrot.slane %v4075_v44, 7  ;;  %v202_v37 = vadd.f32 %v3781_v45, %v3794_v15  ;;  %v4142_v63 = vld [vmem:[#allocation2 + $0x3c8] sm:$0xff]  ;;  %v4351_v42 = vld [vmem:[#allocation2 + $0x370] sm:$0xff] }
 0x14a   :  { %2957 = vmatpush3.bf16.msra.mxu0 %v5182_v60  ;;  %5183 = vst [vmem:[#allocation83_spill] sm:$0xff] %v4116_v33  ;;  %1286 = vmatmul.mubr.f32.gmra.mrb[2].mxu1 %v697_v6  ;;  %v876_v59 = vmul.f32 %v3810_v2, %v4073_v10  ;;  %v4140_v38 = vld [vmem:[#allocation2 + $0x3c0] sm:$0xff]  ;;  %v4144_v46 = vmax.f32 %v197_v12, 0.0  ;;  %v859_v18 = vmul.f32 %v3876_v56, %v763_v28  ;;  %v4179_v51 = vunpack.i.h.bf16 %v3761_v49 }
 0x14b   :  { %2959 = vmatprep.subr.bf16.mxu0 %v5184_v34  ;;  %1435 = vmatprep.mubr.f32.mxu0 %v875_v62  ;;  %v698_v6 = vmul.f32 %v3802_v58, %v602_v5  ;;  %v5186_v45 = vpack.c.bf16 %v3868_v13, %v3852_v31  ;;  %v764_v62 = vmul.f32 %v3812_v3, %v4109_v19  ;;  %v4153_v60 = vld [vmem:[#allocation2 + $0x260] sm:$0xff]  ;;  %v4155_v34 = vld [vmem:[#allocation2 + $0x268] sm:$0xff]  ;;  %v733_v5 = vrot.slane %v4075_v44, 1  ;;  %v4220_v58 = vld [vmem:[#allocation2 + $0x358] sm:$0xff] }
 0x14c   :  { %1290 = vmatprep.mubr.f32.mxu1 %v714_v4  ;;  %v603_v12 = vmul.f32 %v3812_v3, %v4044_v14  ;;  %v5187_v4 = vrot.slane %v3955_v27, 7  ;;  %v4169_v13 = vsel %vm744_vm1, %v731_v8, %v5050_v20  ;;  %v5189_v31 = vpack.c.bf16 %v3872_v7, %v3870_v16  ;;  %5191 = vst [vmem:[#allocation86_spill] sm:$0xff] %v4179_v51  ;;  %v4187_v7 = vld [vmem:[#allocation2 + $0x340] sm:$0xff]  ;;  %v4226_v14 = vpop.permute.xlu1 %942 }
 0x14d   :  { %2929 = vmatpush3.bf16.msra.mxu1 %v5186_v45  ;;  %v5190_v45 = vpack.c.bf16 %v3975_v23, %v3973_v21  ;;  %1436 = vmatmul.mubr.f32.gmra.mrb[20].mxu0 %v859_v18  ;;  %v2970_v16 = vpack.c.bf16 %v4142_v63, %v4140_v38  ;;  %v4195_v23 = vsel %vm503_vm0, %v489_v25, %v5049_v47  ;;  %v4197_v21 = vmax.f32 %v202_v37, 0.0  ;;  %v4203_v38 = vld [vmem:[#allocation2 + $0x3d0] sm:$0xff]  ;;  %v4205_v63 = vld [vmem:[#allocation2 + $0x3d8] sm:$0xff]  ;;  %v5197_v47 = vld [vmem:[#allocation52_spill] sm:$0xff] }
 0x14e   :  { %v4163_v28 = vsel %vm503_vm0, %v5187_v4, %v489_v25  ;;  %2931 = vmatprep.subr.bf16.mxu1 %v5189_v31  ;;  %v715_v4 = vmul.f32 %v3812_v3, %v3938_v61  ;;  %v4189_v31 = vld [vmem:[#allocation2 + $0x348] sm:$0xff]  ;;  %5192 = vst [vmem:[#allocation87_spill] sm:$0xff] %v4195_v23  ;;  %v207_v3 = vadd.f32 %v3794_v15, %v3798_v53  ;;  %v4207_v18 = vld [vmem:[#allocation2 + $0x350] sm:$0xff]  ;;  %v5195_v37 = vld [vmem:[#allocation42_spill] sm:$0xff]  ;;  %v5201_v17 = vrot.slane %v4039_v41, 1 }
 0x14f   :  { %5188 = vst [vmem:[#allocation85_spill] sm:$0xff] %v4163_v28  ;;  %2961 = vmatpush3.bf16.msra.mxu0 %v5190_v45  ;;  %1291 = vmatmul.mubr.f32.gmra.mrb[4].mxu1 %v698_v6  ;;  %v5193_v45 = vld [vmem:[#allocation12_spill] sm:$0xff]  ;;  %v860_v25 = vmul.f32 %v4116_v33, %v764_v62  ;;  %v877_v53 = vmul.f32 %v5195_v37, %v4163_v28  ;;  %v4224_v61 = vld [vmem:[#allocation2 + $0x2f8] sm:$0xff] }
 0x150   :  { %2963 = vmatprep.subr.bf16.mxu0 %v2962_v22  ;;  %1440 = vmatprep.mubr.f32.mxu0 %v876_v59  ;;  %v4210_v8 = vunpack.i.l.bf16 %v5193_v45  ;;  %v5196_v59 = vld [vmem:[#allocation43_spill] sm:$0xff]  ;;  %v699_v62 = vmul.f32 %v3810_v2, %v603_v12  ;;  %v4235_v26 = vsel %vm744_vm1, %v5201_v17, %v733_v5  ;;  %v2972_v2 = vpack.c.bf16 %v4189_v31, %v4187_v7  ;;  %v5205_v33 = vld [vmem:[#allocation28_spill] sm:$0xff] }
 0x151   :  { %1295 = vmatprep.mubr.f32.mxu1 %v715_v4  ;;  %v765_v6 = vmul.f32 %v5196_v59, %v4169_v13  ;;  %v5198_v22 = vld [vmem:[#allocation51_spill] sm:$0xff]  ;;  %5200 = vst [vmem:[#allocation43_spill] sm:$0xff] %v4226_v14  ;;  %v604_v4 = vmul.f32 %v5196_v59, %v4073_v10  ;;  %v491_v14 = vrot.slane %v4144_v46, 7  ;;  %1441 = vmatmul.mubr.f32.gmra.mrb[22].mxu0 %v860_v25  ;;  %v4257_v25 = vld [vmem:[#allocation2 + $0x3e8] sm:$0xff]  ;;  %v4259_v7 = vmax.f32 %v207_v3, 0.0 }
 0x152   :  { %5194 = vst [vmem:[#allocation12_spill] sm:$0xff] %v4210_v8  ;;  %v5199_v20 = vpack.c.bf16 %v5197_v47, %v5198_v22  ;;  %v5202_v47 = vld [vmem:[#allocation58_spill] sm:$0xff]  ;;  %v5203_v22 = vld [vmem:[#allocation53_spill] sm:$0xff]  ;;  %v716_v12 = vmul.f32 %v5196_v59, %v3955_v27  ;;  %v2974_v17 = vpack.c.bf16 %v4205_v63, %v4203_v38  ;;  %1445 = vmatprep.mubr.f32.mxu0 %v877_v53  ;;  %v5208_v59 = vld [vmem:[#allocation60_spill] sm:$0xff]  ;;  %v735_v10 = vrot.slane %v4197_v21, 1 }
 0x153   :  { %v5204_v49 = vpack.c.bf16 %v5202_v47, %v5203_v22  ;;  %2965 = vmatpush3.bf16.msra.mxu0 %v2964_v11  ;;  %v212_v47 = vadd.f32 %v5205_v33, %v3794_v15  ;;  %1296 = vmatmul.mubr.f32.gmra.mrb[6].mxu1 %v699_v62  ;;  %v861_v31 = vmul.f32 %v4210_v8, %v765_v6  ;;  %v5206_v38 = vld [vmem:[#allocation33_spill] sm:$0xff]  ;;  %v5207_v63 = vld [vmem:[#allocation34_spill] sm:$0xff]  ;;  %v5209_v62 = vld [vmem:[#allocation59_spill] sm:$0xff] }
 0x154   :  { %2933 = vmatpush3.bf16.msra.mxu1 %v5199_v20  ;;  %v734_v20 = vrot.slane %v4144_v46, 1  ;;  %2967 = vmatprep.subr.bf16.mxu0 %v2966_v54  ;;  %v4255_v54 = vld [vmem:[#allocation2 + $0x3e0] sm:$0xff]  ;;  %v878_v33 = vmul.f32 %v5206_v38, %v4195_v23  ;;  %v766_v53 = vmul.f32 %v5207_v63, %v4235_v26  ;;  %v5210_v22 = vpack.c.bf16 %v5208_v59, %v5209_v62  ;;  %v4269_v11 = vld [vmem:[#allocation2 + $0x270] sm:$0xff]  ;;  %v5212_v8 = vld [vmem:[#allocation62_spill] sm:$0xff] }
 0x155   :  { %2935 = vmatprep.subr.bf16.mxu1 %v5204_v49  ;;  %1300 = vmatprep.mubr.f32.mxu1 %v716_v12  ;;  %v4271_v49 = vld [vmem:[#allocation2 + $0x278] sm:$0xff]  ;;  %v700_v3 = vmul.f32 %v5195_v37, %v604_v4  ;;  %v605_v12 = vmul.f32 %v5207_v63, %v4163_v28  ;;  %v5211_v27 = vld [vmem:[#allocation63_spill] sm:$0xff]  ;;  %v5214_v59 = vpack.c.bf16 %v4100_v9, %v4098_v24  ;;  %v5219_v24 = vrot.slane %v4197_v21, 7 }
 0x156   :  { %v4278_v6 = vsel %vm744_vm1, %v733_v5, %v734_v20  ;;  %v5213_v56 = vpack.c.bf16 %v5211_v27, %v5212_v8  ;;  %v5215_v62 = vld [vmem:[#allocation11_spill] sm:$0xff]  ;;  %1446 = vmatmul.mubr.f32.gmra.mrb[24].mxu0 %v861_v31  ;;  %v717_v4 = vmul.f32 %v5207_v63, %v4039_v41  ;;  %v5217_v5 = vrot.slane %v4075_v44, 7  ;;  %v4300_v27 = vpop.permute.xlu1 %952  ;;  %v5221_v31 = vld [vmem:[#allocation36_spill] sm:$0xff] }
 0x157   :  { %2969 = vmatpush3.bf16.msra.mxu0 %v5214_v59  ;;  %5218 = vst [vmem:[#allocation51_spill] sm:$0xff] %v4300_v27  ;;  %v4306_v9 = vsel %vm503_vm0, %v491_v14, %v5219_v24  ;;  %v4308_v8 = vmax.f32 %v212_v47, 0.0  ;;  %v217_v63 = vadd.f32 %v3794_v15, %v5221_v31  ;;  %1301 = vmatmul.mubr.f32.gmra.mrb[8].mxu1 %v700_v3  ;;  %v4314_v59 = vld [vmem:[#allocation2 + $0x360] sm:$0xff]  ;;  %v5222_v47 = vld [vmem:[#allocation57_spill] sm:$0xff]  ;;  %v4329_v27 = vld [vmem:[#allocation2 + $0x3f8] sm:$0xff] }
 0x158   :  { %2937 = vmatpush3.bf16.msra.mxu1 %v5210_v22  ;;  %v4288_v22 = vunpack.i.h.bf16 %v5215_v62  ;;  %v4296_v37 = vsel %vm503_vm0, %v5217_v5, %v491_v14  ;;  %2971 = vmatprep.subr.bf16.mxu0 %v2970_v16  ;;  %v862_v14 = vmul.f32 %v4179_v51, %v766_v53  ;;  %v767_v5 = vmul.f32 %v5222_v47, %v4278_v6  ;;  %v5223_v3 = vld [vmem:[#allocation65_spill] sm:$0xff] }
 0x159   :  { %2939 = vmatprep.subr.bf16.mxu1 %v5213_v56  ;;  %v2978_v56 = vpack.c.bf16 %v4257_v25, %v4255_v54  ;;  %5220 = vst [vmem:[#allocation58_spill] sm:$0xff] %v4308_v8  ;;  %1450 = vmatprep.mubr.f32.mxu0 %v878_v33  ;;  %v4316_v54 = vld [vmem:[#allocation2 + $0x368] sm:$0xff]  ;;  %v493_v25 = vrot.slane %v4259_v7, 7  ;;  %v606_v24 = vmul.f32 %v5222_v47, %v4195_v23  ;;  %v4327_v16 = vld [vmem:[#allocation2 + $0x3f0] sm:$0xff]  ;;  %v736_v51 = vrot.slane %v4259_v7, 1 }
 0x15a   :  { %5216 = vst [vmem:[#allocation52_spill] sm:$0xff] %v4288_v22  ;;  %1305 = vmatprep.mubr.f32.mxu1 %v717_v4  ;;  %v5224_v33 = vld [vmem:[#allocation64_spill] sm:$0xff]  ;;  %v701_v41 = vmul.f32 %v5206_v38, %v605_v12  ;;  %v4336_v53 = vsel %vm744_vm1, %v734_v20, %v735_v10  ;;  %v5227_v23 = vpack.c.bf16 %v4021_v50, %v4019_v29  ;;  %v4354_v50 = vmax.f32 %v217_v63, 0.0 }
 0x15b   :  { %v5225_v31 = vpack.c.bf16 %v5223_v3, %v5224_v33  ;;  %v5226_v4 = vld [vmem:[#allocation56_spill] sm:$0xff]  ;;  %2973 = vmatpush3.bf16.msra.mxu0 %v2972_v2  ;;  %v5228_v3 = vld [vmem:[#allocation21_spill] sm:$0xff]  ;;  %v718_v38 = vmul.f32 %v5222_v47, %v4075_v44  ;;  %v2980_v20 = vpack.c.bf16 %v4316_v54, %v4314_v59  ;;  %v5232_v44 = vld [vmem:[#allocation14_spill] sm:$0xff]  ;;  %v5234_v29 = vpack.c.bf16 %v4037_v35, %v4035_v0 }
 0x15c   :  { %v879_v28 = vmul.f32 %v5226_v4, %v4296_v37  ;;  %v4343_v33 = vunpack.i.l.bf16 %v5228_v3  ;;  %1451 = vmatmul.mubr.f32.gmra.mrb[26].mxu0 %v862_v14  ;;  %2975 = vmatprep.subr.bf16.mxu0 %v2974_v17  ;;  %5230 = vst [vmem:[#allocation53_spill] sm:$0xff] %v4354_v50  ;;  %v5231_v2 = vld [vmem:[#allocation37_spill] sm:$0xff]  ;;  %v2982_v14 = vpack.c.bf16 %v4329_v27, %v4327_v16  ;;  %v1193_v17 = vld [vmem:[#allocation2 + $0x400] sm:$0xff]  ;;  %v1194_v47 = vld [vmem:[#allocation2 + $0x408] sm:$0xff]  ;;  %v4363_v59 = vunpack.i.h.bf16 %v5232_v44  ;;  %v4372_v27 = vpop.permute.xlu1 %962 }
 0x15d   :  { %2941 = vmatpush3.bf16.msra.mxu1 %v5225_v31  ;;  %v5229_v31 = vld [vmem:[#allocation31_spill] sm:$0xff]  ;;  %v702_v63 = vmul.f32 %v5226_v4, %v606_v24  ;;  %5235 = vst [vmem:[#allocation28_spill] sm:$0xff] %v4372_v27  ;;  %v5236_v44 = vrot.slane %v4197_v21, 7  ;;  %v737_v24 = vrot.slane %v4308_v8, 1  ;;  %v5237_v35 = vpack.c.bf16 %v4138_v43, %v4127_v55 }
 0x15e   :  { %2943 = vmatprep.subr.bf16.mxu1 %v5227_v23  ;;  %v222_v12 = vadd.f32 %v5229_v31, %v3794_v15  ;;  %1306 = vmatmul.mubr.f32.gmra.mrb[10].mxu1 %v701_v41  ;;  %v880_v23 = vmul.f32 %v5231_v2, %v4306_v9  ;;  %v4360_v31 = vld [vmem:[#allocation2 + $0x378] sm:$0xff]  ;;  %v863_v54 = vmul.f32 %v4343_v33, %v767_v5  ;;  %v5239_v4 = vrot.slane %v4308_v8, 7 }
 0x15f   :  { %1455 = vmatprep.mubr.f32.mxu0 %v879_v28  ;;  %1310 = vmatprep.mubr.f32.mxu1 %v718_v38  ;;  %v5233_v41 = vld [vmem:[#allocation38_spill] sm:$0xff]  ;;  %v4380_v38 = vsel %vm503_vm0, %v5236_v44, %v493_v25  ;;  %v4384_v5 = vsel %vm744_vm1, %v735_v10, %v736_v51  ;;  %v5238_v0 = vpack.c.bf16 %v4220_v58, %v4207_v18  ;;  %v5240_v58 = vld [vmem:[#allocation47_spill] sm:$0xff] }
 0x160   :  { %v768_v28 = vmul.f32 %v5233_v41, %v4336_v53  ;;  %v607_v16 = vmul.f32 %v5233_v41, %v4296_v37  ;;  %1456 = vmatmul.mubr.f32.gmra.mrb[28].mxu0 %v863_v54  ;;  %v719_v44 = vmul.f32 %v5233_v41, %v4144_v46  ;;  %v2984_v10 = vpack.c.bf16 %v4360_v31, %v4351_v42  ;;  %v5241_v18 = vld [vmem:[#allocation50_spill] sm:$0xff] }
 0x161   :  { %2945 = vmatpush3.bf16.msra.mxu1 %v5234_v29  ;;  %2977 = vmatpush3.bf16.msra.mxu0 %v5238_v0  ;;  %v4393_v29 = vmax.f32 %v222_v12, 0.0  ;;  %v4399_v27 = vpack.c.bf16 %v1194_v47, %v1193_v17  ;;  %v4405_v55 = vsel %vm503_vm0, %v493_v25, %v5239_v4  ;;  %v232_v43 = vadd.f32 %v5240_v58, %v3794_v15  ;;  %v5242_v17 = vld [vmem:[#allocation40_spill] sm:$0xff] }
 0x162   :  { %2947 = vmatprep.subr.bf16.mxu1 %v5237_v35  ;;  %2979 = vmatprep.subr.bf16.mxu0 %v2978_v56  ;;  %v227_v12 = vadd.f32 %v3794_v15, %v5241_v18  ;;  %v738_v56 = vrot.slane %v4354_v50, 1  ;;  %v3128_v42 = vunpack.i.l.bf16 %v5215_v62  ;;  %v864_v31 = vmul.f32 %v4363_v59, %v768_v28  ;;  %v4438_v35 = vpop.permute.xlu1 %972  ;;  %v5252_v18 = vld [vmem:[#allocation23_spill] sm:$0xff] }
 0x163   :  { %1311 = vmatmul.mubr.f32.gmra.mrb[12].mxu1 %v702_v63  ;;  %1460 = vmatprep.mubr.f32.mxu0 %v880_v23  ;;  %v881_v47 = vmul.f32 %v5242_v17, %v4380_v38  ;;  %v769_v25 = vmul.f32 %v4087_v40, %v4384_v5  ;;  %v5243_v4 = vpack.c.bf16 %v4155_v34, %v4153_v60  ;;  %v495_v15 = vrot.slane %v4354_v50, 7  ;;  %v5246_v60 = vld [vmem:[#allocation73_spill] sm:$0xff] }
 0x164   :  { %1315 = vmatprep.mubr.f32.mxu1 %v719_v44  ;;  %v703_v23 = vmul.f32 %v5231_v2, %v607_v16  ;;  %v608_v62 = vmul.f32 %v4087_v40, %v4306_v9  ;;  %v4427_v54 = vsel %vm744_vm1, %v736_v51, %v737_v24  ;;  %v5245_v63 = vpack.c.bf16 %v4224_v61, %v4222_v30 }
 0x165   :  { %2949 = vmatpush3.bf16.msra.mxu1 %v5243_v4  ;;  %5244 = vst [vmem:[#allocation34_spill] sm:$0xff] %v4427_v54  ;;  %2981 = vmatpush3.bf16.msra.mxu0 %v2980_v20  ;;  %v5085_v41 = vrot.slane %v4393_v29, 7  ;;  %v1034_v34 = vmul.f32 %v5246_v60, %v4109_v19  ;;  %v720_v28 = vmul.f32 %v4087_v40, %v4197_v21  ;;  %v739_v16 = vrot.slane %v4393_v29, 1  ;;  %v5250_v20 = vld [vmem:[#allocation15_spill] sm:$0xff] }
 0x166   :  { %2951 = vmatprep.subr.bf16.mxu1 %v5245_v63  ;;  %1461 = vmatmul.mubr.f32.gmra.mrb[30].mxu0 %v864_v31  ;;  %5247 = vst [vmem:[#allocation60_spill] sm:$0xff] %v4438_v35  ;;  %v4440_v51 = vmax.f32 %v232_v43, 0.0  ;;  %v4442_v0 = vmax.f32 %v227_v12, 0.0  ;;  %v882_v61 = vmul.f32 %v4288_v22, %v4405_v55  ;;  %v4448_v30 = vsel %vm744_vm1, %v737_v24, %v738_v56  ;;  %v5260_v63 = vld [vmem:[#allocation55_spill] sm:$0xff] }
 0x167   :  { %2983 = vmatprep.subr.bf16.mxu0 %v2982_v14  ;;  %1316 = vmatmul.mubr.f32.gmra.mrb[14].mxu1 %v703_v23  ;;  %5248 = vst [vmem:[#allocation59_spill] sm:$0xff] %v4448_v30  ;;  %v4451_v40 = vunpack.i.l.bf16 %v3743_v32  ;;  %v865_v14 = vmul.f32 %v5250_v20, %v769_v25  ;;  %v770_v44 = vmul.f32 %v3128_v42, %v4427_v54  ;;  %v4460_v12 = vunpack.i.h.bf16 %v5252_v18 }
 0x168   :  { %1465 = vmatprep.mubr.f32.mxu0 %v881_v47  ;;  %1320 = vmatprep.mubr.f32.mxu1 %v720_v28  ;;  %v609_v58 = vmul.f32 %v3128_v42, %v4380_v38  ;;  %v5251_v43 = vpack.c.bf16 %v4271_v49, %v4269_v11  ;;  %v704_v24 = vmul.f32 %v5242_v17, %v608_v62  ;;  %v5253_v31 = vrot.slane %v4308_v8, 7  ;;  %v5255_v47 = vld [vmem:[#allocation48_spill] sm:$0xff]  ;;  %v5257_v28 = vld [vmem:[#allocation25_spill] sm:$0xff] }
 0x169   :  { %5249 = vst [vmem:[#allocation63_spill] sm:$0xff] %v4451_v40  ;;  %v610_v25 = vmul.f32 %v5255_v47, %v4405_v55  ;;  %2985 = vmatpush3.bf16.msra.mxu0 %v2984_v10  ;;  %v4476_v49 = vsel %vm503_vm0, %v495_v15, %v5085_v41  ;;  %v721_v11 = vmul.f32 %v3128_v42, %v4259_v7  ;;  %v3149_v10 = vunpack.i.h.bf16 %v5193_v45  ;;  %v4495_v45 = vpop.permute.xlu1 %982 }
 0x16a   :  { %2953 = vmatpush3.bf16.msra.mxu1 %v5251_v43  ;;  %v4467_v32 = vsel %vm503_vm0, %v5253_v31, %v495_v15  ;;  %1466 = vmatmul.mubr.f32.gmra.mrb[32].mxu0 %v865_v14  ;;  %v771_v4 = vmul.f32 %v5255_v47, %v4448_v30  ;;  %v4483_v23 = vsel %vm744_vm1, %v738_v56, %v739_v16  ;;  %v497_v62 = vrot.slane %v4442_v0, 7  ;;  %v5271_v30 = vld [vmem:[#allocation83_spill] sm:$0xff] }
 0x16b   :  { %5254 = vst [vmem:[#allocation62_spill] sm:$0xff] %v4467_v32  ;;  %2987 = vmatprep.subr.bf16.mxu1 %v4399_v27  ;;  %5256 = vst [vmem:[#allocation11_spill] sm:$0xff] %v4483_v23  ;;  %1321 = vmatmul.mubr.f32.gmra.mrb[16].mxu1 %v704_v24  ;;  %v740_v15 = vrot.slane %v4442_v0, 1  ;;  %v866_v42 = vmul.f32 %v5257_v28, %v770_v44  ;;  %v705_v14 = vmul.f32 %v4288_v22, %v609_v58  ;;  %v5259_v24 = vld [vmem:[#allocation54_spill] sm:$0xff]  ;;  %v5261_v58 = vld [vmem:[#allocation16_spill] sm:$0xff] }
 0x16c   :  { %1470 = vmatprep.mubr.f32.mxu0 %v882_v61  ;;  %1325 = vmatprep.mubr.f32.mxu1 %v721_v11  ;;  %v883_v43 = vmul.f32 %v4451_v40, %v4467_v32  ;;  %v722_v56 = vmul.f32 %v5255_v47, %v4308_v8  ;;  %5258 = vst [vmem:[#allocation36_spill] sm:$0xff] %v4495_v45  ;;  %v5262_v47 = vld [vmem:[#allocation20_spill] sm:$0xff]  ;;  %v5280_v8 = vld [vmem:[#allocation19_spill] sm:$0xff] }
 0x16d   :  { %v706_v31 = vmul.f32 %v4451_v40, %v610_v25  ;;  %v884_v61 = vmul.f32 %v5259_v24, %v4476_v49  ;;  %v772_v11 = vmul.f32 %v5260_v63, %v4483_v23  ;;  %v611_v44 = vmul.f32 %v5260_v63, %v4467_v32 }
 0x16e   :  { %1471 = vmatmul.mubr.f32.gmra.mrb[34].mxu0 %v866_v42  ;;  %v867_v41 = vmul.f32 %v5261_v58, %v771_v4  ;;  %v1000_v35 = vmul.f32 %v4495_v45, %v4001_v39  ;;  %v1033_v22 = vmul.f32 %v5262_v47, %v4048_v52  ;;  %v4510_v25 = vmul.f32 %v3838_v1, %v1034_v34  ;;  %v5264_v42 = vld [vmem:[#allocation22_spill] sm:$0xff]  ;;  %v5269_v58 = vld [vmem:[#allocation49_spill] sm:$0xff] }
 0x16f   :  { %1326 = vmatmul.mubr.f32.gmra.mrb[18].mxu1 %v705_v14  ;;  %1475 = vmatprep.mubr.f32.mxu0 %v883_v43  ;;  %v4514_v40 = vsel %vm744_vm1, %v739_v16, %v740_v15  ;;  %v741_v23 = vrot.slane %v4440_v51, 1  ;;  %v1035_v4 = vmul.f32 %v5264_v42, %v4169_v13  ;;  %v1036_v39 = vmul.f32 %v4050_v36, %v4235_v26  ;;  %v5267_v14 = vld [vmem:[#allocation24_spill] sm:$0xff] }
 0x170   :  { %5263 = vst [vmem:[#allocation57_spill] sm:$0xff] %v4510_v25  ;;  %1330 = vmatprep.mubr.f32.mxu1 %v722_v56  ;;  %v4522_v45 = vmul.f32 %v4460_v12, %v1000_v35  ;;  %v4525_v34 = vmul.f32 %v3908_v48, %v1033_v22  ;;  %v1037_v43 = vmul.f32 %v5267_v14, %v4278_v6  ;;  %v5268_v16 = vld [vmem:[#allocation84_spill] sm:$0xff]  ;;  %v5273_v56 = vld [vmem:[#allocation26_spill] sm:$0xff]  ;;  %v5274_v35 = vld [vmem:[#allocation43_spill] sm:$0xff]  ;;  %v4556_v2 = vunpack.i.l.bf16 %v5280_v8 }
 0x171   :  { %v1038_v25 = vmul.f32 %v5268_v16, %v4336_v53  ;;  %v4532_v28 = vmul.f32 %v5269_v58, %v1035_v4  ;;  %v4535_v32 = vmul.f32 %v5271_v30, %v1036_v39  ;;  %v1039_v17 = vmul.f32 %v5273_v56, %v4384_v5  ;;  %v5276_v4 = vld [vmem:[#allocation12_spill] sm:$0xff]  ;;  %v5278_v39 = vld [vmem:[#allocation86_spill] sm:$0xff] }
 0x172   :  { %5265 = vst [vmem:[#allocation65_spill] sm:$0xff] %v4522_v45  ;;  %5266 = vst [vmem:[#allocation64_spill] sm:$0xff] %v4525_v34  ;;  %v1040_v45 = vmul.f32 %v5274_v35, %v4427_v54  ;;  %1476 = vmatmul.mubr.f32.gmra.mrb[36].mxu0 %v867_v41  ;;  %v723_v22 = vmul.f32 %v5260_v63, %v4354_v50  ;;  %v5275_v34 = vrot.slane %v4393_v29, 7  ;;  %v5284_v50 = vld [vmem:[#allocation13_spill] sm:$0xff] }
 0x173   :  { %5270 = vst [vmem:[#allocation21_spill] sm:$0xff] %v4532_v28  ;;  %5272 = vst [vmem:[#allocation31_spill] sm:$0xff] %v4535_v32  ;;  %v4550_v28 = vmul.f32 %v5276_v4, %v1037_v43  ;;  %v4553_v32 = vmul.f32 %v5278_v39, %v1038_v25  ;;  %1331 = vmatmul.mubr.f32.gmra.mrb[20].mxu1 %v706_v31  ;;  %1480 = vmatprep.mubr.f32.mxu0 %v884_v61  ;;  %v5286_v43 = vld [vmem:[#allocation27_spill] sm:$0xff]  ;;  %v3158_v61 = vunpack.i.l.bf16 %v5284_v50 }
 0x174   :  { %v4547_v20 = vsel %vm503_vm0, %v5275_v34, %v497_v62  ;;  %5281 = vst [vmem:[#allocation47_spill] sm:$0xff] %v4556_v2  ;;  %v4559_v41 = vmul.f32 %v4343_v33, %v1039_v17  ;;  %v4562_v63 = vmul.f32 %v4363_v59, %v1040_v45  ;;  %v4565_v34 = vunpack.i.h.bf16 %v5284_v50  ;;  %1335 = vmatprep.mubr.f32.mxu1 %v723_v22 }
 0x175   :  { %5277 = vst [vmem:[#allocation14_spill] sm:$0xff] %v4550_v28  ;;  %5279 = vst [vmem:[#allocation38_spill] sm:$0xff] %v4553_v32  ;;  %v868_v28 = vmul.f32 %v5286_v43, %v772_v11  ;;  %v773_v25 = vmul.f32 %v3149_v10, %v4514_v40  ;;  %v5287_v32 = vld [vmem:[#allocation72_spill] sm:$0xff]  ;;  %v707_v8 = vmul.f32 %v5259_v24, %v611_v44  ;;  %v5288_v22 = vrot.slane %v4440_v51, 7 }
 0x176   :  { %5282 = vst [vmem:[#allocation50_spill] sm:$0xff] %v4559_v41  ;;  %5283 = vst [vmem:[#allocation73_spill] sm:$0xff] %v4562_v63  ;;  %v742_v54 = vrot.slane %v5287_v32, 1  ;;  %v885_v31 = vmul.f32 %v4556_v2, %v4547_v20  ;;  %v612_v17 = vmul.f32 %v3149_v10, %v4476_v49  ;;  %v4576_v45 = vsel %vm744_vm1, %v740_v15, %v741_v23  ;;  %v5289_v63 = vld [vmem:[#allocation17_spill] sm:$0xff] }
 0x177   :  { %5285 = vst [vmem:[#allocation23_spill] sm:$0xff] %v4565_v34  ;;  %v4583_v11 = vsel %vm503_vm0, %v497_v62, %v5288_v22  ;;  %1481 = vmatmul.mubr.f32.gmra.mrb[38].mxu0 %v868_v28  ;;  %v724_v44 = vmul.f32 %v3149_v10, %v4393_v29  ;;  %1336 = vmatmul.mubr.f32.gmra.mrb[22].mxu1 %v707_v8  ;;  %v3164_v10 = vunpack.i.h.bf16 %v5228_v3  ;;  %v5291_v8 = vmov %v5288_v22 }
 0x178   :  { %1485 = vmatprep.mubr.f32.mxu0 %v885_v31  ;;  %v869_v41 = vmul.f32 %v5289_v63, %v773_v25  ;;  %v774_v24 = vmul.f32 %v3158_v61, %v4576_v45  ;;  %v708_v15 = vmul.f32 %v4556_v2, %v612_v17  ;;  %v886_v50 = vmul.f32 %v4565_v34, %v4583_v11  ;;  %v5292_v17 = vld [vmem:[#allocation35_spill] sm:$0xff]  ;;  %v5294_v2 = vld [vmem:[#allocation70_spill] sm:$0xff] }
 0x179   :  { %1340 = vmatprep.mubr.f32.mxu1 %v724_v44  ;;  %v613_v43 = vmul.f32 %v3158_v61, %v4547_v20  ;;  %v4594_v62 = vsel %vm744_vm1, %v741_v23, %v742_v54  ;;  %v725_v28 = vmul.f32 %v3158_v61, %v4442_v0  ;;  %v5290_v25 = vrot.slane %v5287_v32, 7 }
 0x17a   :  { %v870_v22 = vmul.f32 %v5292_v17, %v774_v24  ;;  %v775_v23 = vmul.f32 %v3164_v10, %v4594_v62  ;;  %v614_v44 = vmul.f32 %v3164_v10, %v4583_v11  ;;  %v5295_v63 = vrot.slane %v5294_v2, 1 }
 0x17b   :  { %1486 = vmatmul.mubr.f32.gmra.mrb[40].mxu0 %v869_v41  ;;  %v4604_v31 = vsel %vm503_vm0, %v5291_v8, %v5290_v25  ;;  %1341 = vmatmul.mubr.f32.gmra.mrb[24].mxu1 %v708_v15  ;;  %v709_v3 = vmul.f32 %v4565_v34, %v613_v43  ;;  %v5293_v41 = vld [vmem:[#allocation67_spill] sm:$0xff]  ;;  %v3173_v15 = vunpack.i.l.bf16 %v5252_v18  ;;  %v726_v24 = vmul.f32 %v3164_v10, %v4440_v51  ;;  %v5296_v43 = vld [vmem:[#allocation18_spill] sm:$0xff]  ;;  %v5297_v34 = vld [vmem:[#allocation77_spill] sm:$0xff] }
 0x17c   :  { %1490 = vmatprep.mubr.f32.mxu0 %v886_v50  ;;  %1345 = vmatprep.mubr.f32.mxu1 %v725_v28  ;;  %v887_v61 = vmul.f32 %v5293_v41, %v4604_v31  ;;  %v4616_v25 = vsel %vm744_vm1, %v742_v54, %v5295_v63  ;;  %v871_v50 = vmul.f32 %v5296_v43, %v775_v23  ;;  %v5298_v18 = vld [vmem:[#allocation71_spill] sm:$0xff]  ;;  %v5299_v10 = vld [vmem:[#allocation61_spill] sm:$0xff]  ;;  %v5300_v23 = vld [vmem:[#allocation44_spill] sm:$0xff] }
 0x17d   :  { %v776_v28 = vmul.f32 %v3173_v15, %v4616_v25  ;;  %v710_v8 = vmul.f32 %v5293_v41, %v614_v44  ;;  %v888_v2 = vmul.f32 %v4460_v12, %v5297_v34  ;;  %v615_v57 = vmul.f32 %v3173_v15, %v4604_v31  ;;  %v5301_v34 = vld [vmem:[#allocation74_spill] sm:$0xff]  ;;  %v1195_v44 = vld [vmem:[#allocation2 + $0x410] sm:$0xff] }
 0x17e   :  { %v727_v54 = vmul.f32 %v3173_v15, %v5287_v32  ;;  %v985_v63 = vmul.f32 %v5262_v47, %v5298_v18  ;;  %v5305_v18 = vld [vmem:[#allocation45_spill] sm:$0xff] }
 0x17f   :  { %1491 = vmatmul.mubr.f32.gmra.mrb[42].mxu0 %v870_v22  ;;  %1346 = vmatmul.mubr.f32.gmra.mrb[26].mxu1 %v709_v3  ;;  %v872_v22 = vmul.f32 %v5299_v10, %v776_v28  ;;  %v1017_v3 = vmul.f32 %v5262_v47, %v5300_v23  ;;  %v711_v41 = vmul.f32 %v4460_v12, %v615_v57  ;;  %v5304_v28 = vld [vmem:[#allocation66_spill] sm:$0xff]  ;;  %v1197_v57 = vld [vmem:[#allocation2 + $0x420] sm:$0xff] }
 0x180   :  { %1495 = vmatprep.mubr.f32.mxu0 %v887_v61  ;;  %1350 = vmatprep.mubr.f32.mxu1 %v726_v24  ;;  %v889_v61 = vmul.f32 %v3908_v48, %v5301_v34  ;;  %v1196_v24 = vld [vmem:[#allocation2 + $0x418] sm:$0xff]  ;;  %v890_v12 = vmul.f32 %v3838_v1, %v4048_v52  ;;  %v1198_v48 = vld [vmem:[#allocation2 + $0x428] sm:$0xff]  ;;  %v891_v52 = vmul.f32 %v5269_v58, %v4109_v19  ;;  %v1199_v1 = vld [vmem:[#allocation2 + $0x430] sm:$0xff] }
 0x181   :  { %v2990_v47 = vpack.c.bf16 %v1196_v24, %v1195_v44  ;;  %v2994_v44 = vpack.c.bf16 %v1198_v48, %v1197_v57  ;;  %v1200_v24 = vld [vmem:[#allocation2 + $0x438] sm:$0xff]  ;;  %v892_v19 = vmul.f32 %v5271_v30, %v4169_v13  ;;  %v1201_v58 = vld [vmem:[#allocation2 + $0x440] sm:$0xff]  ;;  %v5313_v57 = vld [vmem:[#allocation32_spill] sm:$0xff]  ;;  %v893_v13 = vmul.f32 %v5276_v4, %v4235_v26 }
 0x182   :  { %v1203_v30 = vld [vmem:[#allocation2 + $0x450] sm:$0xff]  ;;  %v894_v26 = vmul.f32 %v5278_v39, %v4278_v6  ;;  %v1205_v4 = vld [vmem:[#allocation2 + $0x460] sm:$0xff]  ;;  %v895_v6 = vmul.f32 %v4343_v33, %v4336_v53  ;;  %v896_v53 = vmul.f32 %v4363_v59, %v4384_v5  ;;  %v5324_v5 = vld [vmem:[#allocation62_spill] sm:$0xff] }
 0x183   :  { %1496 = vmatmul.mubr.f32.gmra.mrb[44].mxu0 %v871_v50  ;;  %1351 = vmatmul.mubr.f32.gmra.mrb[28].mxu1 %v710_v8  ;;  %v5303_v50 = vld [vmem:[#allocation79_spill] sm:$0xff]  ;;  %v1207_v39 = vld [vmem:[#allocation2 + $0x470] sm:$0xff] }
 0x184   :  { %1500 = vmatprep.mubr.f32.mxu0 %v888_v2  ;;  %1355 = vmatprep.mubr.f32.mxu1 %v727_v54  ;;  %v5302_v2 = vld [vmem:[#allocation39_spill] sm:$0xff]  ;;  %v986_v8 = vmul.f32 %v5246_v60, %v5303_v50  ;;  %v1018_v54 = vmul.f32 %v5246_v60, %v5304_v28  ;;  %v5318_v33 = vld [vmem:[#allocation29_spill] sm:$0xff] }
 0x185   :  { %v1001_v15 = vmul.f32 %v5302_v2, %v985_v63  ;;  %v5309_v2 = vld [vmem:[#allocation30_spill] sm:$0xff] }
 0x187   :  { %1501 = vmatmul.mubr.f32.gmra.mrb[46].mxu0 %v872_v22  ;;  %1356 = vmatmul.mubr.f32.gmra.mrb[30].mxu1 %v711_v41  ;;  %v5306_v22 = vld [vmem:[#allocation81_spill] sm:$0xff] }
 0x188   :  { %1715 = vmatprep.mubr.f32.mxu0 %v1017_v3  ;;  %1570 = vmatprep.mubr.f32.mxu1 %v889_v61  ;;  %v987_v63 = vmul.f32 %v5264_v42, %v5306_v22  ;;  %v5307_v3 = vld [vmem:[#allocation41_spill] sm:$0xff]  ;;  %v5314_v22 = vld [vmem:[#allocation82_spill] sm:$0xff] }
 0x189   :  { %v1002_v41 = vmul.f32 %v5307_v3, %v986_v8  ;;  %v5308_v61 = vld [vmem:[#allocation69_spill] sm:$0xff]  ;;  %v5311_v8 = vld [vmem:[#allocation78_spill] sm:$0xff] }
 0x18a   :  { %v1019_v60 = vmul.f32 %v5264_v42, %v5308_v61  ;;  %v1020_v42 = vmul.f32 %v4050_v36, %v5311_v8  ;;  %v1204_v3 = vld [vmem:[#allocation2 + $0x458] sm:$0xff] }
 0x18b   :  { %1716 = vmatmul.mubr.f32.vlgmr.msra.gmra.mrb[48].mxu0 %v1001_v15  ;;  %1571 = vmatmul.mubr.f32.vlgmr.msra.gmra.mrb[32].mxu1 %v5305_v18  ;;  %v5310_v15 = vld [vmem:[#allocation85_spill] sm:$0xff] }
 0x18c   :  { %1720 = vmatprep.mubr.f32.mxu0 %v1018_v54  ;;  %2989 = vmatpush3.bf16.msra.mxu1 %v4399_v27  ;;  %v1003_v27 = vmul.f32 %v5309_v2, %v987_v63  ;;  %v988_v50 = vmul.f32 %v4050_v36, %v5310_v15  ;;  %v2998_v54 = vpack.c.bf16 %v1200_v24, %v1199_v1  ;;  %v1208_v2 = vld [vmem:[#allocation2 + $0x478] sm:$0xff] }
 0x18d   :  { %1575 = vmatprep.mubr.f32.mxu1 %v890_v12  ;;  %2991 = vmatprep.subr.bf16.mxu1 %v2990_v47  ;;  %v1202_v12 = vld [vmem:[#allocation2 + $0x448] sm:$0xff]  ;;  %v1021_v36 = vmul.f32 %v5267_v14, %v5314_v22  ;;  %v992_v15 = vmul.f32 %v5274_v35, %v4380_v38  ;;  %v5320_v38 = vld [vmem:[#allocation58_spill] sm:$0xff] }
 0x18e   :  { %v1004_v48 = vmul.f32 %v5313_v57, %v988_v50  ;;  %v3002_v63 = vpack.c.bf16 %v1202_v12, %v1201_v58  ;;  %v3014_v50 = vpack.c.bf16 %v1208_v2, %v1207_v39  ;;  %v5322_v58 = vld [vmem:[#allocation15_spill] sm:$0xff] }
 0x18f   :  { %1721 = vmatmul.mubr.f32.gmra.mrb[50].mxu0 %v1002_v41  ;;  %1576 = vmatmul.mubr.f32.gmra.mrb[34].mxu1 %v5300_v23  ;;  %v5312_v23 = vld [vmem:[#allocation87_spill] sm:$0xff] }
 0x190   :  { %1725 = vmatprep.mubr.f32.mxu0 %v1019_v60  ;;  %1580 = vmatprep.mubr.f32.mxu1 %v891_v52  ;;  %v990_v60 = vmul.f32 %v5268_v16, %v4296_v37  ;;  %v1206_v52 = vld [vmem:[#allocation2 + $0x468] sm:$0xff]  ;;  %v5316_v37 = vld [vmem:[#allocation33_spill] sm:$0xff]  ;;  %v5339_v39 = vld [vmem:[#allocation47_spill] sm:$0xff] }
 0x191   :  { %2993 = vmatpush3.bf16.msra.mxu1 %v2990_v47  ;;  %v989_v47 = vmul.f32 %v5267_v14, %v5312_v23  ;;  %v1022_v14 = vmul.f32 %v5268_v16, %v4144_v46  ;;  %v1023_v16 = vmul.f32 %v5273_v56, %v4197_v21  ;;  %v3010_v24 = vpack.c.bf16 %v1206_v52, %v1205_v4  ;;  %v5335_v4 = vld [vmem:[#allocation27_spill] sm:$0xff] }
 0x192   :  { %2995 = vmatprep.subr.bf16.mxu1 %v2994_v44  ;;  %v1006_v1 = vmul.f32 %v5316_v37, %v990_v60  ;;  %v900_v52 = vmul.f32 %v5335_v4, %v4514_v40 }
 0x193   :  { %1726 = vmatmul.mubr.f32.gmra.mrb[52].mxu0 %v1003_v27  ;;  %1581 = vmatmul.mubr.f32.gmra.mrb[36].mxu1 %v5304_v28  ;;  %v5315_v28 = vld [vmem:[#allocation42_spill] sm:$0xff] }
 0x194   :  { %1730 = vmatprep.mubr.f32.mxu0 %v1020_v42  ;;  %1585 = vmatprep.mubr.f32.mxu1 %v892_v19  ;;  %v1005_v41 = vmul.f32 %v5315_v28, %v989_v47  ;;  %v5319_v42 = vld [vmem:[#allocation37_spill] sm:$0xff]  ;;  %v1025_v19 = vmul.f32 %v5318_v33, %v5320_v38  ;;  %v5331_v28 = vld [vmem:[#allocation11_spill] sm:$0xff] }
 0x195   :  { %2997 = vmatpush3.bf16.msra.mxu1 %v2994_v44  ;;  %v3006_v44 = vpack.c.bf16 %v1204_v3, %v1203_v30  ;;  %v5326_v47 = vld [vmem:[#allocation53_spill] sm:$0xff] }
 0x196   :  { %2999 = vmatprep.subr.bf16.mxu1 %v2998_v54 }
 0x197   :  { %1731 = vmatmul.mubr.f32.gmra.mrb[54].mxu0 %v1004_v48  ;;  %1586 = vmatmul.mubr.f32.gmra.mrb[38].mxu1 %v5308_v61  ;;  %v991_v61 = vmul.f32 %v5273_v56, %v4306_v9  ;;  %v5317_v9 = vld [vmem:[#allocation56_spill] sm:$0xff]  ;;  %v1024_v56 = vmul.f32 %v5274_v35, %v4259_v7  ;;  %v5321_v35 = vld [vmem:[#allocation34_spill] sm:$0xff]  ;;  %v5327_v48 = vld [vmem:[#allocation59_spill] sm:$0xff] }
 0x198   :  { %1735 = vmatprep.mubr.f32.mxu0 %v1021_v36  ;;  %1590 = vmatprep.mubr.f32.mxu1 %v893_v13  ;;  %v897_v12 = vmul.f32 %v5322_v58, %v5321_v35  ;;  %v5330_v13 = vld [vmem:[#allocation52_spill] sm:$0xff]  ;;  %v5347_v35 = vld [vmem:[#allocation65_spill] sm:$0xff] }
 0x199   :  { %3001 = vmatpush3.bf16.msra.mxu1 %v2998_v54  ;;  %v1007_v27 = vmul.f32 %v5317_v9, %v991_v61  ;;  %v1008_v54 = vmul.f32 %v5319_v42, %v992_v15  ;;  %v5336_v61 = vld [vmem:[#allocation68_spill] sm:$0xff]  ;;  %v902_v15 = vmul.f32 %v5292_v17, %v4594_v62 }
 0x19a   :  { %3003 = vmatprep.subr.bf16.mxu1 %v3002_v63  ;;  %v997_v37 = vmul.f32 %v5336_v61, %v4583_v11  ;;  %v5340_v9 = vld [vmem:[#allocation60_spill] sm:$0xff] }
 0x19b   :  { %1736 = vmatmul.mubr.f32.gmra.mrb[56].mxu0 %v1005_v41  ;;  %1591 = vmatmul.mubr.f32.gmra.mrb[40].mxu1 %v5311_v8  ;;  %v993_v8 = vmul.f32 %v5318_v33, %v4405_v55  ;;  %v5325_v55 = vld [vmem:[#allocation51_spill] sm:$0xff]  ;;  %v5332_v41 = vld [vmem:[#allocation16_spill] sm:$0xff]  ;;  %v1030_v11 = vmul.f32 %v5340_v9, %v5287_v32 }
 0x19c   :  { %1740 = vmatprep.mubr.f32.mxu0 %v1022_v14  ;;  %1595 = vmatprep.mubr.f32.mxu1 %v894_v26  ;;  %v994_v23 = vmul.f32 %v5325_v55, %v5324_v5  ;;  %v1026_v57 = vmul.f32 %v5325_v55, %v5326_v47  ;;  %v899_v60 = vmul.f32 %v5332_v41, %v5331_v28  ;;  %v5333_v14 = vld [vmem:[#allocation63_spill] sm:$0xff]  ;;  %v5344_v42 = vld [vmem:[#allocation36_spill] sm:$0xff] }
 0x19d   :  { %3005 = vmatpush3.bf16.msra.mxu1 %v3002_v63  ;;  %v1013_v2 = vmul.f32 %v5339_v39, %v997_v37  ;;  %v1041_v5 = vmul.f32 %v5318_v33, %v5327_v48  ;;  %v1968_v37 = vld [vmem:[#allocation5 + $0x58] sm:$0xff]  ;;  %v1970_v39 = vld [vmem:[#allocation5 + $0x68] sm:$0xff] }
 0x19e   :  { %3007 = vmatprep.subr.bf16.mxu1 %v3006_v44  ;;  %v1010_v30 = vmul.f32 %v5330_v13, %v994_v23  ;;  %v5354_v23 = vld [vmem:[#allocation50_spill] sm:$0xff] }
 0x19f   :  { %1741 = vmatmul.mubr.f32.gmra.mrb[58].mxu0 %v1006_v1  ;;  %1596 = vmatmul.mubr.f32.gmra.mrb[42].mxu1 %v5314_v22  ;;  %v5328_v22 = vld [vmem:[#allocation25_spill] sm:$0xff]  ;;  %v5337_v1 = vld [vmem:[#allocation54_spill] sm:$0xff] }
 0x1a0   :  { %1745 = vmatprep.mubr.f32.mxu0 %v1023_v16  ;;  %1600 = vmatprep.mubr.f32.mxu1 %v895_v6  ;;  %v898_v36 = vmul.f32 %v5328_v22, %v5327_v48 }
 0x1a1   :  { %3009 = vmatpush3.bf16.msra.mxu1 %v3006_v44  ;;  %v5334_v44 = vld [vmem:[#allocation28_spill] sm:$0xff] }
 0x1a2   :  { %3011 = vmatprep.subr.bf16.mxu1 %v3010_v24  ;;  %v996_v26 = vmul.f32 %v5334_v44, %v4547_v20  ;;  %v5338_v20 = vld [vmem:[#allocation17_spill] sm:$0xff]  ;;  %v1044_v33 = vmul.f32 %v5334_v44, %v4576_v45 }
 0x1a3   :  { %1746 = vmatmul.mubr.f32.gmra.mrb[60].mxu0 %v1007_v27  ;;  %1601 = vmatmul.mubr.f32.gmra.mrb[44].mxu1 %v4144_v46  ;;  %v5323_v46 = vld [vmem:[#allocation40_spill] sm:$0xff]  ;;  %v901_v6 = vmul.f32 %v5338_v20, %v4576_v45  ;;  %v998_v27 = vmul.f32 %v5340_v9, %v4604_v31  ;;  %v903_v31 = vmul.f32 %v5296_v43, %v4616_v25 }
 0x1a4   :  { %1750 = vmatprep.mubr.f32.mxu0 %v1024_v56  ;;  %1605 = vmatprep.mubr.f32.mxu1 %v896_v53  ;;  %v1009_v59 = vmul.f32 %v5323_v46, %v993_v8  ;;  %v1012_v16 = vmul.f32 %v5337_v1, %v996_v26  ;;  %v5341_v56 = vld [vmem:[#allocation23_spill] sm:$0xff]  ;;  %v5343_v53 = vld [vmem:[#allocation76_spill] sm:$0xff]  ;;  %v5350_v46 = vld [vmem:[#allocation21_spill] sm:$0xff]  ;;  %v1048_v45 = vmul.f32 %v5344_v42, %v5301_v34 }
 0x1a5   :  { %3013 = vmatpush3.bf16.msra.mxu1 %v3010_v24  ;;  %v1029_v24 = vmul.f32 %v5336_v61, %v4440_v51 }
 0x1a6   :  { %3015 = vmatprep.subr.bf16.mxu1 %v3014_v50 }
 0x1a7   :  { %1751 = vmatmul.mubr.f32.gmra.mrb[62].mxu0 %v1008_v54  ;;  %1606 = vmatmul.mubr.f32.gmra.mrb[46].mxu1 %v4197_v21  ;;  %v5329_v21 = vld [vmem:[#allocation46_spill] sm:$0xff]  ;;  %v1032_v54 = vmul.f32 %v5344_v42, %v5305_v18  ;;  %v5351_v18 = vld [vmem:[#allocation31_spill] sm:$0xff] }
 0x1a8   :  { %1755 = vmatprep.mubr.f32.mxu0 %v1025_v19  ;;  %1610 = vmatprep.mubr.f32.mxu1 %v897_v12  ;;  %v995_v63 = vmul.f32 %v5329_v21, %v4476_v49  ;;  %v1027_v3 = vmul.f32 %v5329_v21, %v4393_v29  ;;  %v1028_v49 = vmul.f32 %v5334_v44, %v4442_v0  ;;  %v5348_v12 = vld [vmem:[#allocation64_spill] sm:$0xff]  ;;  %v1964_v44 = vld [vmem:[#allocation5 + $0x38] sm:$0xff] }
 0x1a9   :  { %3017 = vmatpush3.bf16.msra.mxu1 %v3014_v50  ;;  %v5342_v50 = vld [vmem:[#allocation70_spill] sm:$0xff] }
 0x1aa   :  { %v1031_v8 = vmul.f32 %v5343_v53, %v5342_v50 }
 0x1ab   :  { %1756 = vmatmul.mubr.f32.gmra.mrb[64].mxu0 %v1009_v59  ;;  %1611 = vmatmul.mubr.f32.gmra.mrb[48].mxu1 %v4259_v7  ;;  %v1011_v7 = vmul.f32 %v5333_v14, %v995_v63  ;;  %v5352_v59 = vld [vmem:[#allocation14_spill] sm:$0xff]  ;;  %v5355_v63 = vld [vmem:[#allocation73_spill] sm:$0xff] }
 0x1ac   :  { %1760 = vmatprep.mubr.f32.mxu0 %v1026_v57  ;;  %1615 = vmatprep.mubr.f32.mxu1 %v898_v36  ;;  %v1057_v57 = vmul.f32 %v1041_v5, %v5322_v58  ;;  %v1043_v36 = vmul.f32 %v5329_v21, %v4514_v40  ;;  %v1060_v58 = vmul.f32 %v1044_v33, %v5335_v4  ;;  %v1960_v14 = vld [vmem:[#allocation5 + $0x18] sm:$0xff]  ;;  %v1966_v4 = vld [vmem:[#allocation5 + $0x48] sm:$0xff] }
 0x1ad   :  { %v1046_v40 = vmul.f32 %v5340_v9, %v4616_v25  ;;  %v1957_v25 = vld [vmem:[#allocation5] sm:$0xff] }
 0x1ae   :  { %v1059_v48 = vmul.f32 %v1043_v36, %v5332_v41  ;;  %v4789_v9 = vld [vmem:[%s4984_s6] ss:$0 sm:$0xff] }
 0x1af   :  { %1761 = vmatmul.mubr.f32.gmra.mrb[66].mxu0 %v1010_v30  ;;  %1616 = vmatmul.mubr.f32.gmra.mrb[50].mxu1 %v5320_v38  ;;  %v5345_v38 = vld [vmem:[#allocation80_spill] sm:$0xff]  ;;  %v1045_v30 = vmul.f32 %v5336_v61, %v4594_v62  ;;  %v1062_v21 = vmul.f32 %v1046_v40, %v5292_v17  ;;  %v1961_v17 = vld [vmem:[#allocation5 + $0x20] sm:$0xff]  ;;  %v1967_v61 = vld [vmem:[#allocation5 + $0x50] sm:$0xff] }
 0x1b0   :  { %1765 = vmatprep.mubr.f32.mxu0 %v1027_v3  ;;  %1620 = vmatprep.mubr.f32.mxu1 %v899_v60  ;;  %v1064_v3 = vmul.f32 %v1048_v45, %v5299_v10  ;;  %v1959_v60 = vld [vmem:[#allocation5 + $0x10] sm:$0xff]  ;;  %v3038_v1 = vpack.c.bf16 %v1968_v37, %v1967_v61 }
 0x1b3   :  { %1766 = vmatmul.mubr.f32.gmra.mrb[68].mxu0 %v1011_v7  ;;  %1621 = vmatmul.mubr.f32.gmra.mrb[52].mxu1 %v5326_v47  ;;  %v1042_v47 = vmul.f32 %v5325_v55, %v5331_v28  ;;  %v1958_v28 = vld [vmem:[#allocation5 + $0x8] sm:$0xff]  ;;  %v3022_v7 = vpack.c.bf16 %v1960_v14, %v1959_v60 }
 0x1b4   :  { %1770 = vmatprep.mubr.f32.mxu0 %v1028_v49  ;;  %1625 = vmatprep.mubr.f32.mxu1 %v900_v52  ;;  %v3018_v41 = vpack.c.bf16 %v1958_v28, %v1957_v25  ;;  %v1965_v49 = vld [vmem:[#allocation5 + $0x40] sm:$0xff] }
 0x1b5   :  { %v1058_v13 = vmul.f32 %v1042_v47, %v5328_v22  ;;  %v1061_v22 = vmul.f32 %v1045_v30, %v5338_v20  ;;  %v3034_v52 = vpack.c.bf16 %v1966_v4, %v1965_v49 }
 0x1b6   :  { %3019 = vmatprep.subr.bf16.mxu0 %v3018_v41  ;;  %3050 = vmatprep.subr.bf16.mxu1 %v3018_v41 }
 0x1b7   :  { %1771 = vmatmul.mubr.f32.gmra.mrb[70].mxu0 %v1012_v16  ;;  %1626 = vmatmul.mubr.f32.gmra.mrb[54].mxu1 %v4393_v29  ;;  %v1014_v29 = vmul.f32 %v5341_v56, %v998_v27 }
 0x1b8   :  { %1775 = vmatprep.mubr.f32.mxu0 %v1029_v24  ;;  %1630 = vmatprep.mubr.f32.mxu1 %v901_v6  ;;  %v1969_v6 = vld [vmem:[#allocation5 + $0x60] sm:$0xff] }
 0x1b9   :  { %3021 = vmatpush3.bf16.msra.mxu0 %v3018_v41 }
 0x1ba   :  { %3023 = vmatprep.subr.bf16.mxu0 %v3022_v7 }
 0x1bb   :  { %1776 = vmatmul.mubr.f32.gmra.mrb[72].mxu0 %v1013_v2  ;;  %1631 = vmatmul.mubr.f32.gmra.mrb[56].mxu1 %v4442_v0  ;;  %v5346_v0 = vld [vmem:[#allocation75_spill] sm:$0xff] }
 0x1bc   :  { %1780 = vmatprep.mubr.f32.mxu0 %v1030_v11  ;;  %1635 = vmatprep.mubr.f32.mxu1 %v902_v15  ;;  %v904_v19 = vmul.f32 %v5299_v10, %v5346_v0  ;;  %v1047_v55 = vmul.f32 %v5343_v53, %v5346_v0  ;;  %v1963_v10 = vld [vmem:[#allocation5 + $0x30] sm:$0xff]  ;;  %v3042_v11 = vpack.c.bf16 %v1970_v39, %v1969_v6 }
 0x1bd   :  { %3025 = vmatpush3.bf16.msra.mxu0 %v3022_v7  ;;  %v3030_v26 = vpack.c.bf16 %v1964_v44, %v1963_v10 }
 0x1be   :  { %v1063_v62 = vmul.f32 %v1047_v55, %v5296_v43  ;;  %v1962_v43 = vld [vmem:[#allocation5 + $0x28] sm:$0xff] }
 0x1bf   :  { %1781 = vmatmul.mubr.f32.gmra.mrb[74].mxu0 %v1014_v29  ;;  %1636 = vmatmul.mubr.f32.gmra.mrb[58].mxu1 %v4440_v51  ;;  %v5349_v51 = vld [vmem:[#allocation57_spill] sm:$0xff]  ;;  %v3026_v34 = vpack.c.bf16 %v1962_v43, %v1961_v17 }
 0x1c0   :  { %1785 = vmatprep.mubr.f32.mxu0 %v1031_v8  ;;  %1640 = vmatprep.mubr.f32.mxu1 %v903_v31  ;;  %v1971_v8 = vld [vmem:[#allocation5 + $0x70] sm:$0xff]  ;;  %v1972_v31 = vld [vmem:[#allocation5 + $0x78] sm:$0xff] }
 0x1c1   :  { %3027 = vmatprep.subr.bf16.mxu0 %v3026_v34 }
 0x1c2   :  { %3029 = vmatpush3.bf16.msra.mxu0 %v3026_v34 }
 0x1c3   :  { %1786 = vmatmul.mubr.f32.gmra.mrb[76].mxu0 %v5345_v38  ;;  %1641 = vmatmul.mubr.f32.gmra.mrb[60].mxu1 %v5287_v32  ;;  %v5353_v32 = vld [vmem:[#allocation38_spill] sm:$0xff]  ;;  %v3046_v38 = vpack.c.bf16 %v1972_v31, %v1971_v8 }
 0x1c4   :  { %1790 = vmatprep.mubr.f32.mxu0 %v1032_v54  ;;  %1645 = vmatprep.mubr.f32.mxu1 %v904_v19 }
 0x1c5   :  { %3031 = vmatprep.subr.bf16.mxu0 %v3030_v26 }
 0x1c6   :  { %3033 = vmatpush3.bf16.msra.mxu0 %v3030_v26 }
 0x1c7   :  { %1791 = vmatmul.mubr.f32.gmra.mrb[78].mxu0 %v5347_v35  ;;  %1646 = vmatmul.mubr.f32.gmra.mrb[62].mxu1 %v5342_v50 }
 0x1c8   :  { %2746 = vmatprep.mubr.f32.mxu1 %v5348_v12  ;;  %3035 = vmatprep.subr.bf16.mxu0 %v3034_v52 }
 0x1ca   :  { %3037 = vmatpush3.bf16.msra.mxu0 %v3034_v52 }
 0x1cb   :  { %2747 = vmatmul.mubr.f32.vlgmr.msra.gmra.mrb[64].mxu1 %v5349_v51  ;;  %3039 = vmatprep.subr.bf16.mxu0 %v3038_v1 }
 0x1cc   :  { %2749 = vmatprep.mubr.f32.mxu1 %v5350_v46  ;;  %3058 = vmatpush3.bf16.msra.mxu1 %v3018_v41 }
 0x1cd   :  { %3051 = vmatprep.subr.bf16.mxu1 %v3022_v7 }
 0x1ce   :  { %3041 = vmatpush3.bf16.msra.mxu0 %v3038_v1 }
 0x1cf   :  { %2750 = vmatmul.mubr.f32.gmra.mrb[66].mxu1 %v5351_v18  ;;  %3043 = vmatprep.subr.bf16.mxu0 %v3042_v11 }
 0x1d0   :  { %2752 = vmatprep.mubr.f32.mxu1 %v5352_v59  ;;  %3059 = vmatpush3.bf16.msra.mxu1 %v3022_v7 }
 0x1d1   :  { %3052 = vmatprep.subr.bf16.mxu1 %v3026_v34 }
 0x1d2   :  { %3045 = vmatpush3.bf16.msra.mxu0 %v3042_v11 }
 0x1d3   :  { %2753 = vmatmul.mubr.f32.gmra.mrb[68].mxu1 %v5353_v32  ;;  %3047 = vmatprep.subr.bf16.mxu0 %v3046_v38 }
 0x1d4   :  { %2755 = vmatprep.mubr.f32.mxu1 %v5354_v23  ;;  %3060 = vmatpush3.bf16.msra.mxu1 %v3026_v34 }
 0x1d5   :  { %3053 = vmatprep.subr.bf16.mxu1 %v3030_v26 }
 0x1d6   :  { %3049 = vmatpush3.bf16.msra.mxu0 %v3046_v38 }
 0x1d7   :  { %2756 = vmatmul.mubr.f32.gmra.mrb[70].mxu1 %v5355_v63 }
 0x1d8   :  { %2758 = vmatprep.mubr.f32.mxu1 %v1057_v57  ;;  %3061 = vmatpush3.bf16.msra.mxu1 %v3030_v26 }
 0x1d9   :  { %3054 = vmatprep.subr.bf16.mxu1 %v3034_v52 }
 0x1db   :  { %2759 = vmatmul.mubr.f32.gmra.mrb[72].mxu1 %v1058_v13 }
 0x1dc   :  { %2761 = vmatprep.mubr.f32.mxu1 %v1059_v48  ;;  %3062 = vmatpush3.bf16.msra.mxu1 %v3034_v52 }
 0x1dd   :  { %3055 = vmatprep.subr.bf16.mxu1 %v3038_v1 }
 0x1df   :  { %2762 = vmatmul.mubr.f32.gmra.mrb[74].mxu1 %v1060_v58 }
 0x1e0   :  { %2764 = vmatprep.mubr.f32.mxu1 %v1061_v22  ;;  %3063 = vmatpush3.bf16.msra.mxu1 %v3038_v1 }
 0x1e1   :  { %3056 = vmatprep.subr.bf16.mxu1 %v3042_v11 }
 0x1e3   :  { %2765 = vmatmul.mubr.f32.gmra.mrb[76].mxu1 %v1062_v21 }
 0x1e4   :  { %2767 = vmatprep.mubr.f32.mxu1 %v1063_v62  ;;  %3064 = vmatpush3.bf16.msra.mxu1 %v3042_v11 }
 0x1e5   :  { %3057 = vmatprep.subr.bf16.mxu1 %v3046_v38 }
 0x1e7   :  { %2768 = vmatmul.mubr.f32.gmra.mrb[78].mxu1 %v1064_v3 }
 0x1e8   :  { %3065 = vmatpush3.bf16.msra.mxu1 %v3046_v38 }
 0x217   :  { %v2386_v16 = vpop.f32.mrb[16].mxu0 }
 0x218   :  { %v2306_v24 = vpop.f32.mrb[0].mxu1  ;;  %v2387_v20 = vpop.f32.mrb[17].mxu0 }
 0x219   :  { %v2388_v2 = vadd.f32 %v2387_v20, %v2386_v16  ;;  %v2307_v27 = vpop.f32.mrb[1].mxu1 }
 0x21a   :  { %v2308_v15 = vadd.f32 %v2307_v27, %v2306_v24 }
 0x21b   :  { %v2389_v56 = vpop.f32.mrb[18].mxu0 }
 0x21c   :  { %v1283_v29 = vadd.f32 %v2308_v15, %v4789_v9  ;;  %v2390_v53 = vpop.f32.mrb[19].mxu0 }
 0x21d   :  { %v2309_v50 = vpop.f32.mrb[2].mxu1  ;;  %v2391_v42 = vadd.f32 %v2390_v53, %v2389_v56 }
 0x21e   :  { %v2310_v54 = vpop.f32.mrb[3].mxu1  ;;  %v4792_v19 = vadd.f32 %v2388_v2, %v1283_v29 }
 0x21f   :  { %v2311_v0 = vadd.f32 %v2310_v54, %v2309_v50 }
 0x220   :  { %v2392_v35 = vpop.f32.mrb[20].mxu0 }
 0x221   :  { %v1288_v12 = vadd.f32 %v2311_v0, %v4789_v9  ;;  %v2393_v46 = vpop.f32.mrb[21].mxu0 }
 0x222   :  { %v2312_v51 = vpop.f32.mrb[4].mxu1  ;;  %v2394_v18 = vadd.f32 %v2393_v46, %v2392_v35 }
 0x223   :  { %v2313_v59 = vpop.f32.mrb[5].mxu1  ;;  %v4795_v32 = vadd.f32 %v2391_v42, %v1288_v12 }
 0x224   :  { %v2314_v5 = vadd.f32 %v2313_v59, %v2312_v51  ;;  %v2395_v23 = vpop.f32.mrb[22].mxu0 }
 0x225   :  { %v2396_v36 = vpop.f32.mrb[23].mxu0 }
 0x226   :  { %v1293_v47 = vadd.f32 %v2314_v5, %v4789_v9  ;;  %v2315_v57 = vpop.f32.mrb[6].mxu1  ;;  %v2397_v63 = vadd.f32 %v2396_v36, %v2395_v23 }
 0x227   :  { %v2316_v13 = vpop.f32.mrb[7].mxu1 }
 0x228   :  { %v2317_v33 = vadd.f32 %v2316_v13, %v2315_v57  ;;  %v4798_v48 = vadd.f32 %v2394_v18, %v1293_v47 }
 0x229   :  { %v2398_v30 = vpop.f32.mrb[24].mxu0 }
 0x22a   :  { %v1298_v58 = vadd.f32 %v2317_v33, %v4789_v9  ;;  %v2318_v40 = vpop.f32.mrb[8].mxu1  ;;  %v2399_v55 = vpop.f32.mrb[25].mxu0 }
 0x22b   :  { %v2400_v22 = vadd.f32 %v2399_v55, %v2398_v30  ;;  %v2319_v45 = vpop.f32.mrb[9].mxu1 }
 0x22c   :  { %v2320_v21 = vadd.f32 %v2319_v45, %v2318_v40  ;;  %v4801_v62 = vadd.f32 %v2397_v63, %v1298_v58 }
 0x22e   :  { %v1303_v25 = vadd.f32 %v2320_v21, %v4789_v9 }
 0x22f   :  { %v2401_v3 = vpop.f32.mrb[26].mxu0 }
 0x230   :  { %v2402_v41 = vpop.f32.mrb[27].mxu0  ;;  %v4804_v17 = vadd.f32 %v2400_v22, %v1303_v25 }
 0x231   :  { %v2321_v28 = vpop.f32.mrb[10].mxu1  ;;  %v2403_v60 = vadd.f32 %v2402_v41, %v2401_v3 }
 0x232   :  { %v2322_v14 = vpop.f32.mrb[11].mxu1 }
 0x233   :  { %v2323_v7 = vadd.f32 %v2322_v14, %v2321_v28  ;;  %v2404_v43 = vpop.f32.mrb[28].mxu0 }
 0x234   :  { %v2405_v44 = vpop.f32.mrb[29].mxu0 }
 0x235   :  { %v1308_v34 = vadd.f32 %v2323_v7, %v4789_v9  ;;  %v2406_v26 = vadd.f32 %v2405_v44, %v2404_v43 }
 0x236   :  { %v2324_v10 = vpop.f32.mrb[12].mxu1 }
 0x237   :  { %v2325_v49 = vpop.f32.mrb[13].mxu1  ;;  %v4807_v52 = vadd.f32 %v2403_v60, %v1308_v34 }
 0x238   :  { %v2326_v4 = vadd.f32 %v2325_v49, %v2324_v10 }
 0x239   :  { %v2407_v61 = vpop.f32.mrb[30].mxu0 }
 0x23a   :  { %v1313_v37 = vadd.f32 %v2326_v4, %v4789_v9  ;;  %v2327_v1 = vpop.f32.mrb[14].mxu1  ;;  %v2408_v16 = vpop.f32.mrb[31].mxu0 }
 0x23b   :  { %v2409_v24 = vadd.f32 %v2408_v16, %v2407_v61  ;;  %v2328_v20 = vpop.f32.mrb[15].mxu1 }
 0x23c   :  { %v2329_v6 = vadd.f32 %v2328_v20, %v2327_v1  ;;  %v4810_v39 = vadd.f32 %v2406_v26, %v1313_v37 }
 0x23d   :  { %v2410_v2 = vpop.f32.mrb[32].mxu0 }
 0x23e   :  { %v1318_v27 = vadd.f32 %v2329_v6, %v4789_v9  ;;  %v2330_v11 = vpop.f32.mrb[16].mxu1  ;;  %v2411_v15 = vpop.f32.mrb[33].mxu0 }
 0x23f   :  { %v2412_v56 = vadd.f32 %v2411_v15, %v2410_v2  ;;  %v2331_v29 = vpop.f32.mrb[17].mxu1 }
 0x240   :  { %v2332_v50 = vadd.f32 %v2331_v29, %v2330_v11  ;;  %v4813_v53 = vadd.f32 %v2409_v24, %v1318_v27 }
 0x241   :  { %v2413_v8 = vpop.f32.mrb[34].mxu0 }
 0x242   :  { %v1323_v31 = vadd.f32 %v2332_v50, %v4789_v9  ;;  %v2333_v42 = vpop.f32.mrb[18].mxu1  ;;  %v2414_v54 = vpop.f32.mrb[35].mxu0 }
 0x243   :  { %v2415_v38 = vadd.f32 %v2414_v54, %v2413_v8  ;;  %v2334_v0 = vpop.f32.mrb[19].mxu1 }
 0x244   :  { %v2335_v35 = vadd.f32 %v2334_v0, %v2333_v42  ;;  %v4816_v12 = vadd.f32 %v2412_v56, %v1323_v31 }
 0x245   :  { %v2416_v51 = vpop.f32.mrb[36].mxu0 }
 0x246   :  { %v1328_v46 = vadd.f32 %v2335_v35, %v4789_v9  ;;  %v2336_v18 = vpop.f32.mrb[20].mxu1  ;;  %v2417_v59 = vpop.f32.mrb[37].mxu0 }
 0x247   :  { %v2418_v5 = vadd.f32 %v2417_v59, %v2416_v51  ;;  %v2337_v23 = vpop.f32.mrb[21].mxu1 }
 0x248   :  { %v2338_v47 = vadd.f32 %v2337_v23, %v2336_v18  ;;  %v4819_v57 = vadd.f32 %v2415_v38, %v1328_v46 }
 0x24a   :  { %v2419_v36 = vpop.f32.mrb[38].mxu0  ;;  %v1333_v63 = vadd.f32 %v2338_v47, %v4789_v9  ;;  %v2339_v13 = vpop.f32.mrb[22].mxu1 }
 0x24b   :  { %v2420_v33 = vpop.f32.mrb[39].mxu0  ;;  %v2340_v58 = vpop.f32.mrb[23].mxu1 }
 0x24c   :  { %v2421_v30 = vadd.f32 %v2420_v33, %v2419_v36  ;;  %v2341_v40 = vadd.f32 %v2340_v58, %v2339_v13  ;;  %v4822_v55 = vadd.f32 %v2418_v5, %v1333_v63 }
 0x24e   :  { %v2422_v22 = vpop.f32.mrb[40].mxu0  ;;  %v1338_v45 = vadd.f32 %v2341_v40, %v4789_v9  ;;  %v2342_v21 = vpop.f32.mrb[24].mxu1 }
 0x24f   :  { %v2423_v3 = vpop.f32.mrb[41].mxu0  ;;  %v2343_v28 = vpop.f32.mrb[25].mxu1 }
 0x250   :  { %v2424_v25 = vadd.f32 %v2423_v3, %v2422_v22  ;;  %v2344_v41 = vadd.f32 %v2343_v28, %v2342_v21  ;;  %v4825_v60 = vadd.f32 %v2421_v30, %v1338_v45 }
 0x252   :  { %v2425_v14 = vpop.f32.mrb[42].mxu0  ;;  %v1343_v7 = vadd.f32 %v2344_v41, %v4789_v9  ;;  %v2345_v43 = vpop.f32.mrb[26].mxu1 }
 0x253   :  { %v2426_v34 = vpop.f32.mrb[43].mxu0  ;;  %v2346_v44 = vpop.f32.mrb[27].mxu1 }
 0x254   :  { %v2427_v10 = vadd.f32 %v2426_v34, %v2425_v14  ;;  %v2347_v26 = vadd.f32 %v2346_v44, %v2345_v43  ;;  %v4828_v49 = vadd.f32 %v2424_v25, %v1343_v7 }
 0x256   :  { %v2428_v4 = vpop.f32.mrb[44].mxu0  ;;  %v1348_v61 = vadd.f32 %v2347_v26, %v4789_v9  ;;  %v2348_v37 = vpop.f32.mrb[28].mxu1 }
 0x257   :  { %v2429_v1 = vpop.f32.mrb[45].mxu0  ;;  %v2349_v24 = vpop.f32.mrb[29].mxu1 }
 0x258   :  { %v2430_v16 = vadd.f32 %v2429_v1, %v2428_v4  ;;  %v2350_v20 = vadd.f32 %v2349_v24, %v2348_v37  ;;  %v4831_v6 = vadd.f32 %v2427_v10, %v1348_v61 }
 0x25a   :  { %v2431_v2 = vpop.f32.mrb[46].mxu0  ;;  %v1353_v27 = vadd.f32 %v2350_v20, %v4789_v9  ;;  %v2351_v11 = vpop.f32.mrb[30].mxu1 }
 0x25b   :  { %v2432_v15 = vpop.f32.mrb[47].mxu0  ;;  %v2352_v29 = vpop.f32.mrb[31].mxu1 }
 0x25c   :  { %v2433_v56 = vadd.f32 %v2432_v15, %v2431_v2  ;;  %v2353_v50 = vadd.f32 %v2352_v29, %v2351_v11  ;;  %v4834_v8 = vadd.f32 %v2430_v16, %v1353_v27 }
 0x25e   :  { %v2546_v31 = vpop.f32.mrb[48].mxu0  ;;  %v1358_v42 = vadd.f32 %v2353_v50, %v4789_v9  ;;  %v2466_v54 = vpop.f32.mrb[32].mxu1 }
 0x25f   :  { %v2547_v38 = vpop.f32.mrb[49].mxu0  ;;  %v2467_v35 = vpop.f32.mrb[33].mxu1 }
 0x260   :  { %v2548_v0 = vadd.f32 %v2547_v38, %v2546_v31  ;;  %v2468_v51 = vadd.f32 %v2467_v35, %v2466_v54  ;;  %v4837_v46 = vadd.f32 %v2433_v56, %v1358_v42 }
 0x262   :  { %v2549_v18 = vpop.f32.mrb[50].mxu0  ;;  %v1573_v59 = vadd.f32 %v2468_v51, %v4792_v19  ;;  %v2469_v5 = vpop.f32.mrb[34].mxu1 }
 0x263   :  { %v2550_v23 = vpop.f32.mrb[51].mxu0  ;;  %v2470_v36 = vpop.f32.mrb[35].mxu1 }
 0x264   :  { %v2551_v47 = vadd.f32 %v2550_v23, %v2549_v18  ;;  %v2471_v63 = vadd.f32 %v2470_v36, %v2469_v5  ;;  %v4840_v13 = vadd.f32 %v2548_v0, %v1573_v59 }
 0x266   :  { %v2552_v33 = vpop.f32.mrb[52].mxu0  ;;  %v1578_v9 = vadd.f32 %v2471_v63, %v4795_v32  ;;  %v2472_v30 = vpop.f32.mrb[36].mxu1 }
 0x267   :  { %v2553_v58 = vpop.f32.mrb[53].mxu0  ;;  %v2473_v22 = vpop.f32.mrb[37].mxu1 }
 0x268   :  { %v2554_v40 = vadd.f32 %v2553_v58, %v2552_v33  ;;  %v2474_v45 = vadd.f32 %v2473_v22, %v2472_v30  ;;  %v4843_v21 = vadd.f32 %v2551_v47, %v1578_v9 }
 0x26a   :  { %v2555_v3 = vpop.f32.mrb[54].mxu0  ;;  %v1583_v19 = vadd.f32 %v2474_v45, %v4798_v48  ;;  %v2475_v25 = vpop.f32.mrb[38].mxu1 }
 0x26b   :  { %v2556_v28 = vpop.f32.mrb[55].mxu0  ;;  %v2476_v14 = vpop.f32.mrb[39].mxu1 }
 0x26c   :  { %v2557_v41 = vadd.f32 %v2556_v28, %v2555_v3  ;;  %v2477_v7 = vadd.f32 %v2476_v14, %v2475_v25  ;;  %v4846_v43 = vadd.f32 %v2554_v40, %v1583_v19 }
 0x26e   :  { %v2558_v34 = vpop.f32.mrb[56].mxu0  ;;  %v1588_v32 = vadd.f32 %v2477_v7, %v4801_v62  ;;  %v2478_v10 = vpop.f32.mrb[40].mxu1 }
 0x26f   :  { %v2559_v44 = vpop.f32.mrb[57].mxu0  ;;  %v2479_v4 = vpop.f32.mrb[41].mxu1 }
 0x270   :  { %v2560_v26 = vadd.f32 %v2559_v44, %v2558_v34  ;;  %v2480_v61 = vadd.f32 %v2479_v4, %v2478_v10  ;;  %v4849_v37 = vadd.f32 %v2557_v41, %v1588_v32 }
 0x272   :  { %v2561_v1 = vpop.f32.mrb[58].mxu0  ;;  %v1593_v48 = vadd.f32 %v2480_v61, %v4804_v17  ;;  %v2481_v16 = vpop.f32.mrb[42].mxu1 }
 0x273   :  { %v2562_v24 = vpop.f32.mrb[59].mxu0  ;;  %v2482_v2 = vpop.f32.mrb[43].mxu1 }
 0x274   :  { %v2563_v20 = vadd.f32 %v2562_v24, %v2561_v1  ;;  %v2483_v27 = vadd.f32 %v2482_v2, %v2481_v16  ;;  %v4852_v11 = vadd.f32 %v2560_v26, %v1593_v48 }
 0x276   :  { %v2564_v15 = vpop.f32.mrb[60].mxu0  ;;  %v1598_v62 = vadd.f32 %v2483_v27, %v4807_v52  ;;  %v2484_v56 = vpop.f32.mrb[44].mxu1 }
 0x277   :  { %v2565_v29 = vpop.f32.mrb[61].mxu0  ;;  %v2485_v31 = vpop.f32.mrb[45].mxu1 }
 0x278   :  { %v2566_v50 = vadd.f32 %v2565_v29, %v2564_v15  ;;  %v2486_v42 = vadd.f32 %v2485_v31, %v2484_v56  ;;  %v4855_v54 = vadd.f32 %v2563_v20, %v1598_v62 }
 0x27a   :  { %v2567_v38 = vpop.f32.mrb[62].mxu0  ;;  %v1603_v17 = vadd.f32 %v2486_v42, %v4810_v39  ;;  %v2487_v0 = vpop.f32.mrb[46].mxu1 }
 0x27b   :  { %v2568_v35 = vpop.f32.mrb[63].mxu0  ;;  %v2488_v18 = vpop.f32.mrb[47].mxu1 }
 0x27c   :  { %v2569_v51 = vadd.f32 %v2568_v35, %v2567_v38  ;;  %v2489_v59 = vadd.f32 %v2488_v18, %v2487_v0  ;;  %v4858_v5 = vadd.f32 %v2566_v50, %v1603_v17 }
 0x27e   :  { %v2570_v23 = vpop.f32.mrb[64].mxu0  ;;  %v1608_v52 = vadd.f32 %v2489_v59, %v4813_v53  ;;  %v2490_v47 = vpop.f32.mrb[48].mxu1 }
 0x27f   :  { %v2571_v36 = vpop.f32.mrb[65].mxu0  ;;  %v2491_v33 = vpop.f32.mrb[49].mxu1 }
 0x280   :  { %v2572_v63 = vadd.f32 %v2571_v36, %v2570_v23  ;;  %v2492_v9 = vadd.f32 %v2491_v33, %v2490_v47  ;;  %v4861_v30 = vadd.f32 %v2569_v51, %v1608_v52 }
 0x282   :  { %v2573_v58 = vpop.f32.mrb[66].mxu0  ;;  %v1613_v39 = vadd.f32 %v2492_v9, %v4816_v12  ;;  %v2493_v40 = vpop.f32.mrb[50].mxu1 }
 0x283   :  { %v2574_v22 = vpop.f32.mrb[67].mxu0  ;;  %v2494_v3 = vpop.f32.mrb[51].mxu1 }
 0x284   :  { %v2575_v45 = vadd.f32 %v2574_v22, %v2573_v58  ;;  %v2495_v19 = vadd.f32 %v2494_v3, %v2493_v40  ;;  %v4864_v25 = vadd.f32 %v2572_v63, %v1613_v39 }
 0x286   :  { %v2576_v28 = vpop.f32.mrb[68].mxu0  ;;  %v1618_v53 = vadd.f32 %v2495_v19, %v4819_v57  ;;  %v2496_v41 = vpop.f32.mrb[52].mxu1 }
 0x287   :  { %v2577_v14 = vpop.f32.mrb[69].mxu0  ;;  %v2497_v34 = vpop.f32.mrb[53].mxu1 }
 0x288   :  { %v2578_v7 = vadd.f32 %v2577_v14, %v2576_v28  ;;  %v2498_v32 = vadd.f32 %v2497_v34, %v2496_v41  ;;  %v4867_v10 = vadd.f32 %v2575_v45, %v1618_v53 }
 0x28a   :  { %v2579_v44 = vpop.f32.mrb[70].mxu0  ;;  %v1623_v12 = vadd.f32 %v2498_v32, %v4822_v55  ;;  %v2499_v26 = vpop.f32.mrb[54].mxu1 }
 0x28b   :  { %v2580_v4 = vpop.f32.mrb[71].mxu0  ;;  %v2500_v1 = vpop.f32.mrb[55].mxu1 }
 0x28c   :  { %v2581_v61 = vadd.f32 %v2580_v4, %v2579_v44  ;;  %v2501_v48 = vadd.f32 %v2500_v1, %v2499_v26  ;;  %v4870_v16 = vadd.f32 %v2578_v7, %v1623_v12 }
 0x28e   :  { %v2582_v24 = vpop.f32.mrb[72].mxu0  ;;  %v1628_v57 = vadd.f32 %v2501_v48, %v4825_v60  ;;  %v2502_v20 = vpop.f32.mrb[56].mxu1 }
 0x28f   :  { %v2583_v2 = vpop.f32.mrb[73].mxu0  ;;  %v2503_v15 = vpop.f32.mrb[57].mxu1 }
 0x290   :  { %v2584_v27 = vadd.f32 %v2583_v2, %v2582_v24  ;;  %v2504_v62 = vadd.f32 %v2503_v15, %v2502_v20  ;;  %v4873_v56 = vadd.f32 %v2581_v61, %v1628_v57 }
 0x292   :  { %v2585_v29 = vpop.f32.mrb[74].mxu0  ;;  %v1633_v55 = vadd.f32 %v2504_v62, %v4828_v49  ;;  %v2505_v50 = vpop.f32.mrb[58].mxu1 }
 0x293   :  { %v2586_v31 = vpop.f32.mrb[75].mxu0  ;;  %v2506_v38 = vpop.f32.mrb[59].mxu1 }
 0x294   :  { %v2587_v42 = vadd.f32 %v2586_v31, %v2585_v29  ;;  %v2507_v17 = vadd.f32 %v2506_v38, %v2505_v50  ;;  %v4876_v0 = vadd.f32 %v2584_v27, %v1633_v55 }
 0x296   :  { %v2588_v35 = vpop.f32.mrb[76].mxu0  ;;  %v1638_v60 = vadd.f32 %v2507_v17, %v4831_v6  ;;  %v2508_v51 = vpop.f32.mrb[60].mxu1 }
 0x297   :  { %v2589_v18 = vpop.f32.mrb[77].mxu0  ;;  %v2509_v23 = vpop.f32.mrb[61].mxu1 }
 0x298   :  { %v2590_v59 = vadd.f32 %v2589_v18, %v2588_v35  ;;  %v2510_v52 = vadd.f32 %v2509_v23, %v2508_v51  ;;  %v1783_v47 = vadd.f32 %v2587_v42, %v1638_v60  ;;  %v4897_v18 = vld [vmem:[%s4986_s8] ss:$0 sm:$0xff] }
 0x29a   :  { %v2591_v36 = vpop.f32.mrb[78].mxu0  ;;  %v1643_v63 = vadd.f32 %v2510_v52, %v4834_v8  ;;  %v2511_v49 = vpop.f32.mrb[62].mxu1 }
 0x29b   :  { %v2592_v33 = vpop.f32.mrb[79].mxu0  ;;  %v2512_v58 = vpop.f32.mrb[63].mxu1 }
 0x29c   :  { %v2593_v9 = vadd.f32 %v2592_v33, %v2591_v36  ;;  %v2513_v39 = vadd.f32 %v2512_v58, %v2511_v49  ;;  %v1788_v40 = vadd.f32 %v2590_v59, %v1643_v63  ;;  %v3176_v63 = vld [vmem:[%s4978_s0] sm:$0xff] }
 0x29e   :  { %v1648_v22 = vadd.f32 %v2513_v39, %v4837_v46  ;;  %v2748_v45 = vpop.f32.mrb[64].mxu1 }
 0x29f   :  { %v1868_v6 = vadd.f32 %v2748_v45, %v4843_v21  ;;  %v1862_v3 = vpop.f32.mrb[65].mxu1  ;;  %v3178_v45 = vld [vmem:[%s4978_s0 + $0x10] sm:$0xff] }
 0x2a0   :  { %v1863_v19 = vadd.f32 %v1862_v3, %v4840_v13  ;;  %v1793_v28 = vadd.f32 %v2593_v9, %v1648_v22 }
 0x2a1   :  { %v1942_v14 = vmax.f32 %v1868_v6, 0.0 }
 0x2a2   :  { %v1941_v53 = vmax.f32 %v1863_v19, 0.0  ;;  %v2751_v41 = vpop.f32.mrb[66].mxu1 }
 0x2a3   :  { %v1878_v8 = vadd.f32 %v2751_v41, %v4849_v37  ;;  %v1872_v7 = vpop.f32.mrb[67].mxu1  ;;  %v3179_v41 = vld [vmem:[%s4978_s0 + $0x28] sm:$0xff] }
 0x2a4   :  { %v1873_v34 = vadd.f32 %v1872_v7, %v4846_v43  ;;  %2802 = vmatprep.mubr.f32.mxu0 %v1941_v53 }
 0x2a5   :  { %2803 = vmatmul.mubr.f32.vlgmr.msra.gmra.mrb[80].mxu0 %v1942_v14  ;;  %v1944_v46 = vmax.f32 %v1878_v8, 0.0  ;;  %v3180_v8 = vld [vmem:[%s4978_s0 + $0x20] sm:$0xff] }
 0x2a6   :  { %v1943_v32 = vmax.f32 %v1873_v34, 0.0  ;;  %v2754_v44 = vpop.f32.mrb[68].mxu1 }
 0x2a7   :  { %v1888_v12 = vadd.f32 %v2754_v44, %v4855_v54  ;;  %v1882_v21 = vpop.f32.mrb[69].mxu1 }
 0x2a8   :  { %v1883_v26 = vadd.f32 %v1882_v21, %v4852_v11  ;;  %2805 = vmatprep.mubr.f32.mxu0 %v1943_v32 }
 0x2a9   :  { %2806 = vmatmul.mubr.f32.gmra.mrb[82].mxu0 %v1944_v46  ;;  %v1946_v61 = vmax.f32 %v1888_v12, 0.0  ;;  %v3181_v12 = vld [vmem:[%s4978_s0 + $0x38] sm:$0xff] }
 0x2aa   :  { %v1945_v13 = vmax.f32 %v1883_v26, 0.0  ;;  %v2757_v4 = vpop.f32.mrb[70].mxu1  ;;  %v3182_v26 = vld [vmem:[%s4978_s0 + $0x30] sm:$0xff] }
 0x2ab   :  { %v1898_v37 = vadd.f32 %v2757_v4, %v4861_v30  ;;  %v1892_v1 = vpop.f32.mrb[71].mxu1 }
 0x2ac   :  { %v1893_v43 = vadd.f32 %v1892_v1, %v4858_v5  ;;  %2808 = vmatprep.mubr.f32.mxu0 %v1945_v13 }
 0x2ad   :  { %2809 = vmatmul.mubr.f32.gmra.mrb[84].mxu0 %v1946_v61  ;;  %v1948_v57 = vmax.f32 %v1898_v37, 0.0 }
 0x2ae   :  { %v1947_v48 = vmax.f32 %v1893_v43, 0.0  ;;  %v2760_v24 = vpop.f32.mrb[72].mxu1  ;;  %v3183_v43 = vld [vmem:[%s4978_s0 + $0x48] sm:$0xff] }
 0x2af   :  { %v1908_v54 = vadd.f32 %v2760_v24, %v4867_v10  ;;  %v1902_v20 = vpop.f32.mrb[73].mxu1  ;;  %v3184_v24 = vld [vmem:[%s4978_s0 + $0x40] sm:$0xff] }
 0x2b0   :  { %v1903_v11 = vadd.f32 %v1902_v20, %v4864_v25  ;;  %2811 = vmatprep.mubr.f32.mxu0 %v1947_v48 }
 0x2b1   :  { %2812 = vmatmul.mubr.f32.gmra.mrb[86].mxu0 %v1948_v57  ;;  %v1950_v15 = vmax.f32 %v1908_v54, 0.0 }
 0x2b2   :  { %v1949_v2 = vmax.f32 %v1903_v11, 0.0  ;;  %v2763_v27 = vpop.f32.mrb[74].mxu1 }
 0x2b3   :  { %v1918_v30 = vadd.f32 %v2763_v27, %v4873_v56  ;;  %v1912_v62 = vpop.f32.mrb[75].mxu1  ;;  %v3185_v27 = vld [vmem:[%s4978_s0 + $0x58] sm:$0xff] }
 0x2b4   :  { %v1913_v5 = vadd.f32 %v1912_v62, %v4870_v16  ;;  %2814 = vmatprep.mubr.f32.mxu1 %v1949_v2 }
 0x2b5   :  { %2815 = vmatmul.mubr.f32.vlgmr.msra.gmra.mrb[80].mxu1 %v1950_v15  ;;  %v1952_v50 = vmax.f32 %v1918_v30, 0.0  ;;  %v3186_v30 = vld [vmem:[%s4978_s0 + $0x50] sm:$0xff] }
 0x2b6   :  { %v1951_v29 = vmax.f32 %v1913_v5, 0.0  ;;  %v2766_v55 = vpop.f32.mrb[76].mxu1 }
 0x2b7   :  { %v1928_v31 = vadd.f32 %v2766_v55, %v1783_v47  ;;  %v1922_v10 = vpop.f32.mrb[77].mxu1  ;;  %v3175_v47 = vld [vmem:[%s4978_s0 + $0x8] sm:$0xff] }
 0x2b8   :  { %v1923_v42 = vadd.f32 %v1922_v10, %v4876_v0  ;;  %2817 = vmatprep.mubr.f32.mxu1 %v1951_v29 }
 0x2b9   :  { %2818 = vmatmul.mubr.f32.gmra.mrb[82].mxu1 %v1952_v50  ;;  %v1954_v17 = vmax.f32 %v1928_v31, 0.0  ;;  %v3187_v31 = vld [vmem:[%s4978_s0 + $0x68] sm:$0xff] }
 0x2ba   :  { %v1953_v25 = vmax.f32 %v1923_v42, 0.0  ;;  %v2769_v38 = vpop.f32.mrb[78].mxu1  ;;  %v3188_v42 = vld [vmem:[%s4978_s0 + $0x60] sm:$0xff] }
 0x2bb   :  { %v1938_v35 = vadd.f32 %v2769_v38, %v1793_v28  ;;  %v1932_v60 = vpop.f32.mrb[79].mxu1 }
 0x2bc   :  { %v1933_v56 = vadd.f32 %v1932_v60, %v1788_v40  ;;  %2820 = vmatprep.mubr.f32.mxu1 %v1953_v25  ;;  %v3177_v40 = vld [vmem:[%s4978_s0 + $0x18] sm:$0xff] }
 0x2bd   :  { %2821 = vmatmul.mubr.f32.gmra.mrb[84].mxu1 %v1954_v17  ;;  %v1956_v51 = vmax.f32 %v1938_v35, 0.0 }
 0x2be   :  { %v1955_v16 = vmax.f32 %v1933_v56, 0.0  ;;  %v3189_v56 = vld [vmem:[%s4978_s0 + $0x78] sm:$0xff] }
 0x2c0   :  { %2823 = vmatprep.mubr.f32.mxu1 %v1955_v16 }
 0x2c1   :  { %2824 = vmatmul.mubr.f32.gmra.mrb[86].mxu1 %v1956_v51  ;;  %v3190_v51 = vld [vmem:[%s4978_s0 + $0x70] sm:$0xff] }
 0x378   :  { %v2804_v0 = vpop.f32.mrb[80].mxu0 }
 0x379   :  { %v2052_v59 = vadd.f32 %v2804_v0, %v4897_v18  ;;  %v2046_v23 = vpop.f32.mrb[81].mxu0 }
 0x37a   :  { %v2047_v52 = vadd.f32 %v4897_v18, %v2046_v23 }
 0x37b   :  { %v2126_v36 = vadd.f32 %v3175_v47, %v2052_v59 }
 0x37c   :  { %v2125_v49 = vadd.f32 %v3176_v63, %v2047_v52  ;;  %v2807_v33 = vpop.f32.mrb[82].mxu0 }
 0x37d   :  { %2142 = vst [vmem:[#allocation7 + $0x8] sm:$0xff] %v2126_v36  ;;  %v2062_v9 = vadd.f32 %v2807_v33, %v4897_v18  ;;  %v2056_v58 = vpop.f32.mrb[83].mxu0 }
 0x37e   :  { %2141 = vst [vmem:[#allocation7] sm:$0xff] %v2125_v49  ;;  %v2057_v39 = vadd.f32 %v4897_v18, %v2056_v58 }
 0x37f   :  { %v2128_v22 = vadd.f32 %v3177_v40, %v2062_v9 }
 0x380   :  { %v2127_v6 = vadd.f32 %v3178_v45, %v2057_v39  ;;  %v2810_v3 = vpop.f32.mrb[84].mxu0 }
 0x381   :  { %2144 = vst [vmem:[#allocation7 + $0x18] sm:$0xff] %v2128_v22  ;;  %v2072_v19 = vadd.f32 %v2810_v3, %v4897_v18  ;;  %v2066_v28 = vpop.f32.mrb[85].mxu0 }
 0x382   :  { %2143 = vst [vmem:[#allocation7 + $0x10] sm:$0xff] %v2127_v6  ;;  %v2067_v53 = vadd.f32 %v4897_v18, %v2066_v28 }
 0x383   :  { %v2130_v14 = vadd.f32 %v3179_v41, %v2072_v19 }
 0x384   :  { %v2129_v7 = vadd.f32 %v3180_v8, %v2067_v53  ;;  %v2813_v34 = vpop.f32.mrb[86].mxu0 }
 0x385   :  { %2146 = vst [vmem:[#allocation7 + $0x28] sm:$0xff] %v2130_v14  ;;  %v2082_v32 = vadd.f32 %v2813_v34, %v4897_v18  ;;  %v2076_v44 = vpop.f32.mrb[87].mxu0 }
 0x386   :  { %2145 = vst [vmem:[#allocation7 + $0x20] sm:$0xff] %v2129_v7  ;;  %v2077_v46 = vadd.f32 %v4897_v18, %v2076_v44 }
 0x387   :  { %v2132_v21 = vadd.f32 %v3181_v12, %v2082_v32 }
 0x388   :  { %v2131_v13 = vadd.f32 %v3182_v26, %v2077_v46  ;;  %v2816_v4 = vpop.f32.mrb[80].mxu1 }
 0x389   :  { %2148 = vst [vmem:[#allocation7 + $0x38] sm:$0xff] %v2132_v21  ;;  %v2092_v61 = vadd.f32 %v2816_v4, %v4897_v18  ;;  %v2086_v37 = vpop.f32.mrb[81].mxu1 }
 0x38a   :  { %2147 = vst [vmem:[#allocation7 + $0x30] sm:$0xff] %v2131_v13  ;;  %v2087_v1 = vadd.f32 %v4897_v18, %v2086_v37 }
 0x38b   :  { %v2134_v48 = vadd.f32 %v3183_v43, %v2092_v61 }
 0x38c   :  { %v2133_v57 = vadd.f32 %v3184_v24, %v2087_v1  ;;  %v2819_v54 = vpop.f32.mrb[82].mxu1 }
 0x38d   :  { %2150 = vst [vmem:[#allocation7 + $0x48] sm:$0xff] %v2134_v48  ;;  %v2102_v20 = vadd.f32 %v2819_v54, %v4897_v18  ;;  %v2096_v11 = vpop.f32.mrb[83].mxu1 }
 0x38e   :  { %2149 = vst [vmem:[#allocation7 + $0x40] sm:$0xff] %v2133_v57  ;;  %v2097_v2 = vadd.f32 %v4897_v18, %v2096_v11 }
 0x38f   :  { %v2136_v15 = vadd.f32 %v3185_v27, %v2102_v20 }
 0x390   :  { %v2135_v62 = vadd.f32 %v3186_v30, %v2097_v2  ;;  %v2822_v5 = vpop.f32.mrb[84].mxu1 }
 0x391   :  { %2152 = vst [vmem:[#allocation7 + $0x58] sm:$0xff] %v2136_v15  ;;  %v2112_v29 = vadd.f32 %v2822_v5, %v4897_v18  ;;  %v2106_v55 = vpop.f32.mrb[85].mxu1 }
 0x392   :  { %2151 = vst [vmem:[#allocation7 + $0x50] sm:$0xff] %v2135_v62  ;;  %v2107_v50 = vadd.f32 %v4897_v18, %v2106_v55 }
 0x393   :  { %v2138_v10 = vadd.f32 %v3187_v31, %v2112_v29 }
 0x394   :  { %v2137_v25 = vadd.f32 %v3188_v42, %v2107_v50  ;;  %v2825_v38 = vpop.f32.mrb[86].mxu1 }
 0x395   :  { %2154 = vst [vmem:[#allocation7 + $0x68] sm:$0xff] %v2138_v10  ;;  %v2122_v17 = vadd.f32 %v2825_v38, %v4897_v18  ;;  %v2116_v35 = vpop.f32.mrb[87].mxu1 }
 0x396   :  { %2153 = vst [vmem:[#allocation7 + $0x60] sm:$0xff] %v2137_v25  ;;  %v2117_v60 = vadd.f32 %v4897_v18, %v2116_v35 }
 0x397   :  { %v2140_v16 = vadd.f32 %v3189_v56, %v2122_v17 }
 0x398   :  { %v2139_v0 = vadd.f32 %v3190_v51, %v2117_v60 }
 0x399   :  { %2156 = vst [vmem:[#allocation7 + $0x78] sm:$0xff] %v2140_v16 }
 0x39a   :  { %2155 = vst [vmem:[#allocation7 + $0x70] sm:$0xff] %v2139_v0 }
 0x39b   :  { %3246 = shalt.err (!%p3243_p6)
}
 0x39c   :  { %s3247_s21 = scalar_lea.hbm %s4987_s9, 2048 }
 0x39d   :  { %p3248_p7 = scmp.ne.s32.totalorder %s4987_s9, %s3247_s21  ;;  %p3251_p8 = scmp.lt.u32.totalorder %s3247_s21, %s4987_s9 }
 0x39f   :  { %p3253_p9 = pnand %p3251_p8, %p3248_p7 }
 0x3a1   :  { %3256 = shalt.err (!%p3253_p9)
}
 0x3a2   :  { %2168 = dma.vmem_to_hbm [thread:$0]  %s2163_s15, 2048, %s4987_s9, [#allocation4], %s3264_s19, %s3264_s19, %s3265_s20  }
 0x3a3   :  { %3261 = dma.done.wait [#allocation4], 2048  }
 0x3a4   :  { %3262 = vsyncadd [#allocation4], 4294965248 }
 0x3a5   :  { %2172 = vsyncpa [#allocation3], 1 }
 0x3a6   :  { %2173 = vsyncpa [#allocation6], 1 }
 0x3a7   :  { %2174 = vsyncpa [#allocation4], 1 }

</bundles_post_ra>
